<compile_context>
chip_gen: v7x
topology: tpu7x:2x2x1
jax: 0.10.0
libtpu: 0.0.40
codegen_flags: <defaults>
</compile_context>

<pallas_src>
import jax
import jax.numpy as jnp
from jax import lax
from jax.experimental import pallas as pl
from jax.experimental.pallas import tpu as pltpu

BN_EPS = 1e-5


def _round_up(a, m):
    return ((a + m - 1) // m) * m


def _const_index_map(ndim):
    return lambda b: (0,) * ndim


def make_kernel(TB, N1, N2, P, L3, L4):
    """Kernel closure over static (Python-int) tile / padded-length constants."""

    def kernel(a1_ref,
               w1_ref, b1_ref, w2_ref, b2_ref,
               w3_ref, b3_ref, w4_ref, b4_ref,
               fw1_ref, fb1_ref, fw2_ref, fb2_ref, fw3_ref, fb3_ref,
               out_ref):
        f32 = jnp.float32

        # --- Conv2d(1, 32, (6, 4)) + ReLU.  Input is already im2col'd on the
        #     host: a single (TB*N1, 24) @ (24, 32) matmul (batch*length = M). ---
        a1 = a1_ref[...].reshape(TB * N1, 24)
        h1 = jnp.dot(a1, w1_ref[...], preferred_element_type=f32) + b1_ref[...]
        h1 = jnp.maximum(h1, 0.0).reshape(TB, N1, 32)

        # --- Flatten(start_dim=2) is a no-op (trailing spatial dim == 1). ---

        # --- Conv1d(32, 64, 3) + ReLU: in-kernel im2col (K = 96), one matmul. ---
        a2 = jnp.concatenate([h1[:, k:k + N2, :] for k in range(3)], axis=-1)   # (TB, N2, 96)
        a2 = a2.reshape(TB * N2, 96)
        h2 = jnp.dot(a2, w2_ref[...], preferred_element_type=f32) + b2_ref[...]
        h2 = jnp.maximum(h2, 0.0).reshape(TB, N2, 64)

        # --- MaxPool1d(3): kernel=3, stride=3, floor.  Batched 3-row max per
        #     output position (only valid rows are read). ---
        hp = [jnp.max(h2[:, 3 * p:3 * p + 3, :], axis=1) for p in range(P)]      # P x (TB, 64)

        # --- BatchNorm1d(64) (eval mode) is folded into w3 / b3. ---

        # --- Conv1d(64, 128, 3) + ReLU: position-unrolled, M = TB, K = 192. ---
        h3 = []
        for j in range(L3):
            a3 = jnp.concatenate([hp[j], hp[j + 1], hp[j + 2]], axis=-1)         # (TB, 192)
            h3.append(jnp.maximum(
                jnp.dot(a3, w3_ref[...], preferred_element_type=f32) + b3_ref[...], 0.0))

        # --- Conv1d(128, 256, 3) + ReLU + AdaptiveAvgPool1d(1), fused on the fly. ---
        feat = jnp.zeros((TB, 256), f32)
        for j in range(L4):
            a4 = jnp.concatenate([h3[j], h3[j + 1], h3[j + 2]], axis=-1)         # (TB, 384)
            feat = feat + jnp.maximum(
                jnp.dot(a4, w4_ref[...], preferred_element_type=f32) + b4_ref[...], 0.0)
        feat = feat * (1.0 / L4)

        # --- BatchNorm1d(256) (eval mode) is folded into fw1 / fb1. ---

        # --- FC head (Dropout == identity in eval mode).  Last layer is padded
        #     to 128 output lanes for a lane-dense (TB, 128) store. ---
        z = jnp.maximum(jnp.dot(feat, fw1_ref[...], preferred_element_type=f32) + fb1_ref[...], 0.0)
        z = jnp.maximum(jnp.dot(z, fw2_ref[...], preferred_element_type=f32) + fb2_ref[...], 0.0)
        out_ref[...] = jnp.dot(z, fw3_ref[...], preferred_element_type=f32) + fb3_ref[...]

    return kernel


def init_params(key):
    ks = jax.random.split(key, 18)

    def n(k, shape, scale=0.1):
        return (scale * jax.random.normal(k, shape)).astype(jnp.float32)

    p = {}
    p['c2d_w'] = n(ks[0], (32, 1, 6, 4));  p['c2d_b'] = n(ks[1], (32,))
    p['c1_w'] = n(ks[2], (64, 32, 3));     p['c1_b'] = n(ks[3], (64,))
    p['bn1_g'] = 1.0 + n(ks[4], (64,));    p['bn1_b'] = n(ks[5], (64,))
    p['c2_w'] = n(ks[6], (128, 64, 3));    p['c2_b'] = n(ks[7], (128,))
    p['c3_w'] = n(ks[8], (256, 128, 3));   p['c3_b'] = n(ks[9], (256,))
    p['bn2_g'] = 1.0 + n(ks[10], (256,));  p['bn2_b'] = n(ks[11], (256,))
    p['fc1_w'] = n(ks[12], (64, 256));     p['fc1_b'] = n(ks[13], (64,))
    p['fc2_w'] = n(ks[14], (8, 64));       p['fc2_b'] = n(ks[15], (8,))
    p['fc3_w'] = n(ks[16], (2, 8));        p['fc3_b'] = n(ks[17], (2,))
    return p


def pack_kernel_params(p):
    """PyTorch-layout params -> im2col (taps*Cin, Cout) slabs, BN folded in."""
    f32 = jnp.float32
    row = lambda v: v.reshape(1, -1).astype(f32)

    # Eval-mode BatchNorm (running_mean=0, running_var=1): y = s*x + t.
    s1 = (p['bn1_g'] / jnp.sqrt(1.0 + BN_EPS)).astype(f32)    # (64,)
    t1 = p['bn1_b'].astype(f32)
    s2 = (p['bn2_g'] / jnp.sqrt(1.0 + BN_EPS)).astype(f32)    # (256,)
    t2 = p['bn2_b'].astype(f32)

    # Conv2d(1,32,(6,4)) -> (6*4, 32) im2col layout (rows: tap-major, width-minor).
    w1 = jnp.transpose(p['c2d_w'][:, 0], (1, 2, 0)).reshape(24, 32).astype(f32)
    b1 = row(p['c2d_b'])

    # Conv1d(32,64,3) -> (3*32, 64).
    w2 = jnp.transpose(p['c1_w'], (2, 1, 0)).reshape(96, 64).astype(f32)
    b2 = row(p['c1_b'])

    # Conv1d(64,128,3) with BN1 folded: conv(s1*x + t1) == (s1-scaled W) @ x + const.
    w3_t = jnp.transpose(p['c2_w'], (2, 1, 0)).astype(f32)    # (3, 64, 128)
    w3 = (w3_t * s1[None, :, None]).reshape(192, 128)
    b3 = row(p['c2_b'].astype(f32) + jnp.einsum('c,kco->o', t1, w3_t))

    # Conv1d(128,256,3) -> (3*128, 256).
    w4 = jnp.transpose(p['c3_w'], (2, 1, 0)).reshape(384, 256).astype(f32)
    b4 = row(p['c3_b'])

    # Linear(256,64) with BN2 folded (BN2 and mean-pool are both affine, so they commute).
    fw1_t = p['fc1_w'].T.astype(f32)                          # (256, 64)
    fw1 = fw1_t * s2[:, None]
    fb1 = row(p['fc1_b'].astype(f32) + t2 @ fw1_t)

    fw2 = p['fc2_w'].T.astype(f32)
    fb2 = row(p['fc2_b'])

    # Linear(8,2) padded to 128 output lanes for a lane-dense store.
    fw3 = jnp.zeros((8, 128), f32).at[:, :2].set(p['fc3_w'].T.astype(f32))
    fb3 = jnp.zeros((1, 128), f32).at[:, :2].set(p['fc3_b'].astype(f32).reshape(1, 2))

    return [w1, b1, w2, b2, w3, b3, w4, b4, fw1, fb1, fw2, fb2, fw3, fb3]


def cnn_v6_pallas(x, params, batch_tile=None):
    """x: (B, 1, L, 4) NCHW float32 -> (B, 2) float32."""
    B, C, L, W = x.shape
    assert C == 1 and W == 4
    L1 = L - 5            # Conv2d(1,32,(6,4)) output length
    L2 = L1 - 2           # Conv1d(32,64,3)
    P = L2 // 3           # MaxPool1d(3)
    L3 = P - 2            # Conv1d(64,128,3)
    L4 = L3 - 2           # Conv1d(128,256,3)
    assert L4 >= 1, "input length too short for cnn_v6"
    N2 = _round_up(L2, 8)           # padded per-sample length of conv1 output
    N1 = _round_up(N2 + 2, 8)       # padded per-sample length of conv2d output

    # Batch tile: multiple of 8, capped so activations stay well under the
    # scoped-VMEM limit on v5e/v6e/v7x.
    TB = batch_tile or min(128, _round_up(B, 8))
    Bp = _round_up(B, TB)

    # Host-side layout plumbing: im2col of the (6,4)-kernel conv input plus
    # zero padding of batch / length so in-kernel reshapes are tile aligned.
    x2 = x[:, 0, :, :].astype(jnp.float32)                                     # (B, L, 4)
    a1 = jnp.concatenate([x2[:, i:i + L1, :] for i in range(6)], axis=-1)      # (B, L1, 24)
    a1 = jnp.pad(a1, ((0, Bp - B), (0, N1 - L1), (0, 0)))                      # (Bp, N1, 24)

    kp = pack_kernel_params(params)
    kernel = make_kernel(TB, N1, N2, P, L3, L4)

    in_specs = [pl.BlockSpec((TB, N1, 24), lambda b: (b, 0, 0))]
    for a in kp:
        in_specs.append(pl.BlockSpec(a.shape, _const_index_map(a.ndim)))

    flops = 2 * Bp * (N1 * 24 * 32 + N2 * 96 * 64 + L3 * 192 * 128
                      + L4 * 384 * 256 + 256 * 64 + 64 * 8 + 8 * 128)
    bytes_accessed = 4 * (Bp * N1 * 24 + sum(int(a.size) for a in kp) + Bp * 128)

    fn = pl.pallas_call(
        kernel,
        out_shape=jax.ShapeDtypeStruct((Bp, 128), jnp.float32),
        grid=(Bp // TB,),
        in_specs=in_specs,
        out_specs=pl.BlockSpec((TB, 128), lambda b: (b, 0)),
        compiler_params=pltpu.CompilerParams(dimension_semantics=("parallel",)),
        cost_estimate=pl.CostEstimate(flops=flops, transcendentals=0,
                                      bytes_accessed=bytes_accessed),
    )
    out = fn(a1, *kp)
    return out[:B, :2]


def ref_forward(x, p):
    """Pure-JAX reference (eval mode), mirrors the PyTorch nn.Sequential."""
    y = lax.conv_general_dilated(x, p['c2d_w'], (1, 1), 'VALID',
                                 dimension_numbers=('NCHW', 'OIHW', 'NCHW'))
    y = jnp.maximum(y + p['c2d_b'][None, :, None, None], 0.0)
    y = y.reshape(y.shape[0], y.shape[1], -1)          # Flatten(start_dim=2)

    def conv1d(z, w, b):
        o = lax.conv_general_dilated(z, w, (1,), 'VALID',
                                     dimension_numbers=('NCH', 'OIH', 'NCH'))
        return o + b[None, :, None]

    y = jnp.maximum(conv1d(y, p['c1_w'], p['c1_b']), 0.0)
    P = y.shape[2] // 3
    y = jnp.max(y[:, :, :3 * P].reshape(y.shape[0], y.shape[1], P, 3), axis=-1)
    s1 = p['bn1_g'] / jnp.sqrt(1.0 + BN_EPS)
    y = y * s1[None, :, None] + p['bn1_b'][None, :, None]
    y = jnp.maximum(conv1d(y, p['c2_w'], p['c2_b']), 0.0)
    y = jnp.maximum(conv1d(y, p['c3_w'], p['c3_b']), 0.0)
    s2 = p['bn2_g'] / jnp.sqrt(1.0 + BN_EPS)
    y = y * s2[None, :, None] + p['bn2_b'][None, :, None]
    feat = jnp.mean(y, axis=2)
    z = jnp.maximum(feat @ p['fc1_w'].T + p['fc1_b'], 0.0)
    z = jnp.maximum(z @ p['fc2_w'].T + p['fc2_b'], 0.0)
    z = z @ p['fc3_w'].T + p['fc3_b']
    return z


if __name__ == "__main__":
    key = jax.random.PRNGKey(0)
    kx, kparam = jax.random.split(key)
    B, L = 2, 34                                       # small DNA-like input
    x = jax.random.normal(kx, (B, 1, L, 4), jnp.float32)
    params = init_params(kparam)

    out = jax.block_until_ready(cnn_v6_pallas(x, params))
    ref = ref_forward(x, params)

    assert out.shape == (B, 2), out.shape
    assert jnp.all(jnp.isfinite(out))
    assert jnp.allclose(out, ref, atol=1e-4, rtol=1e-4), (out, ref)
    print("KERNEL_OK")
</pallas_src>

<mosaic_0001>
module attributes {stable_mosaic.version = 11 : i64} {
  func.func @kernel(%arg0: i32, %arg1: memref<8x40x24xf32, #tpu.memory_space<vmem>>, %arg2: memref<24x32xf32, #tpu.memory_space<vmem>>, %arg3: memref<1x32xf32, #tpu.memory_space<vmem>>, %arg4: memref<96x64xf32, #tpu.memory_space<vmem>>, %arg5: memref<1x64xf32, #tpu.memory_space<vmem>>, %arg6: memref<192x128xf32, #tpu.memory_space<vmem>>, %arg7: memref<1x128xf32, #tpu.memory_space<vmem>>, %arg8: memref<384x256xf32, #tpu.memory_space<vmem>>, %arg9: memref<1x256xf32, #tpu.memory_space<vmem>>, %arg10: memref<256x64xf32, #tpu.memory_space<vmem>>, %arg11: memref<1x64xf32, #tpu.memory_space<vmem>>, %arg12: memref<64x8xf32, #tpu.memory_space<vmem>>, %arg13: memref<1x8xf32, #tpu.memory_space<vmem>>, %arg14: memref<8x128xf32, #tpu.memory_space<vmem>>, %arg15: memref<1x128xf32, #tpu.memory_space<vmem>>, %arg16: memref<8x128xf32, #tpu.memory_space<vmem>>) attributes {dimension_semantics = [#tpu.dimension_semantics<parallel>], iteration_bounds = array<i64: 1>, scalar_prefetch = 0 : i64, scratch_operands = 0 : i64, tpu.core_type = #tpu.core_type<tc>, window_params = [{transform_indices = @transform_0, window_bounds = array<i64: 8, 40, 24>}, {pipeline_mode = #tpu.pipeline_mode<synchronous>, transform_indices = @transform_1, window_bounds = array<i64: 24, 32>}, {pipeline_mode = #tpu.pipeline_mode<synchronous>, transform_indices = @transform_2, window_bounds = array<i64: 1, 32>}, {pipeline_mode = #tpu.pipeline_mode<synchronous>, transform_indices = @transform_3, window_bounds = array<i64: 96, 64>}, {pipeline_mode = #tpu.pipeline_mode<synchronous>, transform_indices = @transform_4, window_bounds = array<i64: 1, 64>}, {pipeline_mode = #tpu.pipeline_mode<synchronous>, transform_indices = @transform_5, window_bounds = array<i64: 192, 128>}, {pipeline_mode = #tpu.pipeline_mode<synchronous>, transform_indices = @transform_6, window_bounds = array<i64: 1, 128>}, {pipeline_mode = #tpu.pipeline_mode<synchronous>, transform_indices = @transform_7, window_bounds = array<i64: 384, 256>}, {pipeline_mode = #tpu.pipeline_mode<synchronous>, transform_indices = @transform_8, window_bounds = array<i64: 1, 256>}, {pipeline_mode = #tpu.pipeline_mode<synchronous>, transform_indices = @transform_9, window_bounds = array<i64: 256, 64>}, {pipeline_mode = #tpu.pipeline_mode<synchronous>, transform_indices = @transform_10, window_bounds = array<i64: 1, 64>}, {pipeline_mode = #tpu.pipeline_mode<synchronous>, transform_indices = @transform_11, window_bounds = array<i64: 64, 8>}, {pipeline_mode = #tpu.pipeline_mode<synchronous>, transform_indices = @transform_12, window_bounds = array<i64: 1, 8>}, {pipeline_mode = #tpu.pipeline_mode<synchronous>, transform_indices = @transform_13, window_bounds = array<i64: 8, 128>}, {pipeline_mode = #tpu.pipeline_mode<synchronous>, transform_indices = @transform_14, window_bounds = array<i64: 1, 128>}, {transform_indices = @transform_15, window_bounds = array<i64: 8, 128>}]} {
    %c0 = arith.constant 0 : index
    %c0_0 = arith.constant 0 : index
    %c0_1 = arith.constant 0 : index
    %0 = vector.load %arg1[%c0, %c0_0, %c0_1] : memref<8x40x24xf32, #tpu.memory_space<vmem>>, vector<8x40x24xf32>
    %1 = vector.shape_cast %0 : vector<8x40x24xf32> to vector<320x24xf32>
    %c0_2 = arith.constant 0 : index
    %c0_3 = arith.constant 0 : index
    %2 = vector.load %arg2[%c0_2, %c0_3] : memref<24x32xf32, #tpu.memory_space<vmem>>, vector<24x32xf32>
    %cst = arith.constant dense<0.000000e+00> : vector<320x32xf32>
    %3 = tpu.matmul %1, %2, %cst {dimension_numbers = #tpu.dot_dimension_numbers<[1], [0], [0], [1], [0, 0, 1, 1], [], []>} : vector<320x24xf32>, vector<24x32xf32>, vector<320x32xf32> -> vector<320x32xf32>
    %c0_4 = arith.constant 0 : index
    %c0_5 = arith.constant 0 : index
    %4 = vector.load %arg3[%c0_4, %c0_5] : memref<1x32xf32, #tpu.memory_space<vmem>>, vector<1x32xf32>
    %5 = vector.broadcast %4 : vector<1x32xf32> to vector<320x32xf32>
    %6 = arith.addf %3, %5 : vector<320x32xf32>
    %cst_6 = arith.constant 0.000000e+00 : f32
    %7 = vector.broadcast %cst_6 : f32 to vector<320x32xf32>
    %8 = arith.maximumf %6, %7 : vector<320x32xf32>
    %9 = vector.shape_cast %8 : vector<320x32xf32> to vector<8x40x32xf32>
    %10 = vector.extract_strided_slice %9 {offsets = [0, 0, 0], sizes = [8, 32, 32], strides = [1, 1, 1]} : vector<8x40x32xf32> to vector<8x32x32xf32>
    %11 = vector.extract_strided_slice %9 {offsets = [0, 1, 0], sizes = [8, 32, 32], strides = [1, 1, 1]} : vector<8x40x32xf32> to vector<8x32x32xf32>
    %12 = vector.extract_strided_slice %9 {offsets = [0, 2, 0], sizes = [8, 32, 32], strides = [1, 1, 1]} : vector<8x40x32xf32> to vector<8x32x32xf32>
    %13 = tpu.concatenate %10, %11, %12 in 2 : vector<8x32x32xf32>, vector<8x32x32xf32>, vector<8x32x32xf32> -> vector<8x32x96xf32>
    %14 = vector.shape_cast %13 : vector<8x32x96xf32> to vector<256x96xf32>
    %c0_7 = arith.constant 0 : index
    %c0_8 = arith.constant 0 : index
    %15 = vector.load %arg4[%c0_7, %c0_8] : memref<96x64xf32, #tpu.memory_space<vmem>>, vector<96x64xf32>
    %cst_9 = arith.constant dense<0.000000e+00> : vector<256x64xf32>
    %16 = tpu.matmul %14, %15, %cst_9 {dimension_numbers = #tpu.dot_dimension_numbers<[1], [0], [0], [1], [0, 0, 1, 1], [], []>} : vector<256x96xf32>, vector<96x64xf32>, vector<256x64xf32> -> vector<256x64xf32>
    %c0_10 = arith.constant 0 : index
    %c0_11 = arith.constant 0 : index
    %17 = vector.load %arg5[%c0_10, %c0_11] : memref<1x64xf32, #tpu.memory_space<vmem>>, vector<1x64xf32>
    %18 = vector.broadcast %17 : vector<1x64xf32> to vector<256x64xf32>
    %19 = arith.addf %16, %18 : vector<256x64xf32>
    %cst_12 = arith.constant 0.000000e+00 : f32
    %20 = vector.broadcast %cst_12 : f32 to vector<256x64xf32>
    %21 = arith.maximumf %19, %20 : vector<256x64xf32>
    %22 = vector.shape_cast %21 : vector<256x64xf32> to vector<8x32x64xf32>
    %23 = vector.extract_strided_slice %22 {offsets = [0, 0, 0], sizes = [8, 3, 64], strides = [1, 1, 1]} : vector<8x32x64xf32> to vector<8x3x64xf32>
    %cst_13 = arith.constant dense<0xFF800000> : vector<8x64xf32>
    %24 = vector.multi_reduction <maximumf>, %23, %cst_13 [1] : vector<8x3x64xf32> to vector<8x64xf32>
    %25 = vector.extract_strided_slice %22 {offsets = [0, 3, 0], sizes = [8, 3, 64], strides = [1, 1, 1]} : vector<8x32x64xf32> to vector<8x3x64xf32>
    %cst_14 = arith.constant dense<0xFF800000> : vector<8x64xf32>
    %26 = vector.multi_reduction <maximumf>, %25, %cst_14 [1] : vector<8x3x64xf32> to vector<8x64xf32>
    %27 = vector.extract_strided_slice %22 {offsets = [0, 6, 0], sizes = [8, 3, 64], strides = [1, 1, 1]} : vector<8x32x64xf32> to vector<8x3x64xf32>
    %cst_15 = arith.constant dense<0xFF800000> : vector<8x64xf32>
    %28 = vector.multi_reduction <maximumf>, %27, %cst_15 [1] : vector<8x3x64xf32> to vector<8x64xf32>
    %29 = vector.extract_strided_slice %22 {offsets = [0, 9, 0], sizes = [8, 3, 64], strides = [1, 1, 1]} : vector<8x32x64xf32> to vector<8x3x64xf32>
    %cst_16 = arith.constant dense<0xFF800000> : vector<8x64xf32>
    %30 = vector.multi_reduction <maximumf>, %29, %cst_16 [1] : vector<8x3x64xf32> to vector<8x64xf32>
    %31 = vector.extract_strided_slice %22 {offsets = [0, 12, 0], sizes = [8, 3, 64], strides = [1, 1, 1]} : vector<8x32x64xf32> to vector<8x3x64xf32>
    %cst_17 = arith.constant dense<0xFF800000> : vector<8x64xf32>
    %32 = vector.multi_reduction <maximumf>, %31, %cst_17 [1] : vector<8x3x64xf32> to vector<8x64xf32>
    %33 = vector.extract_strided_slice %22 {offsets = [0, 15, 0], sizes = [8, 3, 64], strides = [1, 1, 1]} : vector<8x32x64xf32> to vector<8x3x64xf32>
    %cst_18 = arith.constant dense<0xFF800000> : vector<8x64xf32>
    %34 = vector.multi_reduction <maximumf>, %33, %cst_18 [1] : vector<8x3x64xf32> to vector<8x64xf32>
    %35 = vector.extract_strided_slice %22 {offsets = [0, 18, 0], sizes = [8, 3, 64], strides = [1, 1, 1]} : vector<8x32x64xf32> to vector<8x3x64xf32>
    %cst_19 = arith.constant dense<0xFF800000> : vector<8x64xf32>
    %36 = vector.multi_reduction <maximumf>, %35, %cst_19 [1] : vector<8x3x64xf32> to vector<8x64xf32>
    %37 = vector.extract_strided_slice %22 {offsets = [0, 21, 0], sizes = [8, 3, 64], strides = [1, 1, 1]} : vector<8x32x64xf32> to vector<8x3x64xf32>
    %cst_20 = arith.constant dense<0xFF800000> : vector<8x64xf32>
    %38 = vector.multi_reduction <maximumf>, %37, %cst_20 [1] : vector<8x3x64xf32> to vector<8x64xf32>
    %39 = vector.extract_strided_slice %22 {offsets = [0, 24, 0], sizes = [8, 3, 64], strides = [1, 1, 1]} : vector<8x32x64xf32> to vector<8x3x64xf32>
    %cst_21 = arith.constant dense<0xFF800000> : vector<8x64xf32>
    %40 = vector.multi_reduction <maximumf>, %39, %cst_21 [1] : vector<8x3x64xf32> to vector<8x64xf32>
    %41 = tpu.concatenate %24, %26, %28 in 1 : vector<8x64xf32>, vector<8x64xf32>, vector<8x64xf32> -> vector<8x192xf32>
    %c0_22 = arith.constant 0 : index
    %c0_23 = arith.constant 0 : index
    %42 = vector.load %arg6[%c0_22, %c0_23] : memref<192x128xf32, #tpu.memory_space<vmem>>, vector<192x128xf32>
    %cst_24 = arith.constant dense<0.000000e+00> : vector<8x128xf32>
    %43 = tpu.matmul %41, %42, %cst_24 {dimension_numbers = #tpu.dot_dimension_numbers<[1], [0], [0], [1], [0, 0, 1, 1], [], []>} : vector<8x192xf32>, vector<192x128xf32>, vector<8x128xf32> -> vector<8x128xf32>
    %c0_25 = arith.constant 0 : index
    %c0_26 = arith.constant 0 : index
    %44 = vector.load %arg7[%c0_25, %c0_26] : memref<1x128xf32, #tpu.memory_space<vmem>>, vector<1x128xf32>
    %45 = vector.broadcast %44 : vector<1x128xf32> to vector<8x128xf32>
    %46 = arith.addf %43, %45 : vector<8x128xf32>
    %cst_27 = arith.constant 0.000000e+00 : f32
    %47 = vector.broadcast %cst_27 : f32 to vector<8x128xf32>
    %48 = arith.maximumf %46, %47 : vector<8x128xf32>
    %49 = tpu.concatenate %26, %28, %30 in 1 : vector<8x64xf32>, vector<8x64xf32>, vector<8x64xf32> -> vector<8x192xf32>
    %c0_28 = arith.constant 0 : index
    %c0_29 = arith.constant 0 : index
    %50 = vector.load %arg6[%c0_28, %c0_29] : memref<192x128xf32, #tpu.memory_space<vmem>>, vector<192x128xf32>
    %cst_30 = arith.constant dense<0.000000e+00> : vector<8x128xf32>
    %51 = tpu.matmul %49, %50, %cst_30 {dimension_numbers = #tpu.dot_dimension_numbers<[1], [0], [0], [1], [0, 0, 1, 1], [], []>} : vector<8x192xf32>, vector<192x128xf32>, vector<8x128xf32> -> vector<8x128xf32>
    %c0_31 = arith.constant 0 : index
    %c0_32 = arith.constant 0 : index
    %52 = vector.load %arg7[%c0_31, %c0_32] : memref<1x128xf32, #tpu.memory_space<vmem>>, vector<1x128xf32>
    %53 = vector.broadcast %52 : vector<1x128xf32> to vector<8x128xf32>
    %54 = arith.addf %51, %53 : vector<8x128xf32>
    %cst_33 = arith.constant 0.000000e+00 : f32
    %55 = vector.broadcast %cst_33 : f32 to vector<8x128xf32>
    %56 = arith.maximumf %54, %55 : vector<8x128xf32>
    %57 = tpu.concatenate %28, %30, %32 in 1 : vector<8x64xf32>, vector<8x64xf32>, vector<8x64xf32> -> vector<8x192xf32>
    %c0_34 = arith.constant 0 : index
    %c0_35 = arith.constant 0 : index
    %58 = vector.load %arg6[%c0_34, %c0_35] : memref<192x128xf32, #tpu.memory_space<vmem>>, vector<192x128xf32>
    %cst_36 = arith.constant dense<0.000000e+00> : vector<8x128xf32>
    %59 = tpu.matmul %57, %58, %cst_36 {dimension_numbers = #tpu.dot_dimension_numbers<[1], [0], [0], [1], [0, 0, 1, 1], [], []>} : vector<8x192xf32>, vector<192x128xf32>, vector<8x128xf32> -> vector<8x128xf32>
    %c0_37 = arith.constant 0 : index
    %c0_38 = arith.constant 0 : index
    %60 = vector.load %arg7[%c0_37, %c0_38] : memref<1x128xf32, #tpu.memory_space<vmem>>, vector<1x128xf32>
    %61 = vector.broadcast %60 : vector<1x128xf32> to vector<8x128xf32>
    %62 = arith.addf %59, %61 : vector<8x128xf32>
    %cst_39 = arith.constant 0.000000e+00 : f32
    %63 = vector.broadcast %cst_39 : f32 to vector<8x128xf32>
    %64 = arith.maximumf %62, %63 : vector<8x128xf32>
    %65 = tpu.concatenate %30, %32, %34 in 1 : vector<8x64xf32>, vector<8x64xf32>, vector<8x64xf32> -> vector<8x192xf32>
    %c0_40 = arith.constant 0 : index
    %c0_41 = arith.constant 0 : index
    %66 = vector.load %arg6[%c0_40, %c0_41] : memref<192x128xf32, #tpu.memory_space<vmem>>, vector<192x128xf32>
    %cst_42 = arith.constant dense<0.000000e+00> : vector<8x128xf32>
    %67 = tpu.matmul %65, %66, %cst_42 {dimension_numbers = #tpu.dot_dimension_numbers<[1], [0], [0], [1], [0, 0, 1, 1], [], []>} : vector<8x192xf32>, vector<192x128xf32>, vector<8x128xf32> -> vector<8x128xf32>
    %c0_43 = arith.constant 0 : index
    %c0_44 = arith.constant 0 : index
    %68 = vector.load %arg7[%c0_43, %c0_44] : memref<1x128xf32, #tpu.memory_space<vmem>>, vector<1x128xf32>
    %69 = vector.broadcast %68 : vector<1x128xf32> to vector<8x128xf32>
    %70 = arith.addf %67, %69 : vector<8x128xf32>
    %cst_45 = arith.constant 0.000000e+00 : f32
    %71 = vector.broadcast %cst_45 : f32 to vector<8x128xf32>
    %72 = arith.maximumf %70, %71 : vector<8x128xf32>
    %73 = tpu.concatenate %32, %34, %36 in 1 : vector<8x64xf32>, vector<8x64xf32>, vector<8x64xf32> -> vector<8x192xf32>
    %c0_46 = arith.constant 0 : index
    %c0_47 = arith.constant 0 : index
    %74 = vector.load %arg6[%c0_46, %c0_47] : memref<192x128xf32, #tpu.memory_space<vmem>>, vector<192x128xf32>
    %cst_48 = arith.constant dense<0.000000e+00> : vector<8x128xf32>
    %75 = tpu.matmul %73, %74, %cst_48 {dimension_numbers = #tpu.dot_dimension_numbers<[1], [0], [0], [1], [0, 0, 1, 1], [], []>} : vector<8x192xf32>, vector<192x128xf32>, vector<8x128xf32> -> vector<8x128xf32>
    %c0_49 = arith.constant 0 : index
    %c0_50 = arith.constant 0 : index
    %76 = vector.load %arg7[%c0_49, %c0_50] : memref<1x128xf32, #tpu.memory_space<vmem>>, vector<1x128xf32>
    %77 = vector.broadcast %76 : vector<1x128xf32> to vector<8x128xf32>
    %78 = arith.addf %75, %77 : vector<8x128xf32>
    %cst_51 = arith.constant 0.000000e+00 : f32
    %79 = vector.broadcast %cst_51 : f32 to vector<8x128xf32>
    %80 = arith.maximumf %78, %79 : vector<8x128xf32>
    %81 = tpu.concatenate %34, %36, %38 in 1 : vector<8x64xf32>, vector<8x64xf32>, vector<8x64xf32> -> vector<8x192xf32>
    %c0_52 = arith.constant 0 : index
    %c0_53 = arith.constant 0 : index
    %82 = vector.load %arg6[%c0_52, %c0_53] : memref<192x128xf32, #tpu.memory_space<vmem>>, vector<192x128xf32>
    %cst_54 = arith.constant dense<0.000000e+00> : vector<8x128xf32>
    %83 = tpu.matmul %81, %82, %cst_54 {dimension_numbers = #tpu.dot_dimension_numbers<[1], [0], [0], [1], [0, 0, 1, 1], [], []>} : vector<8x192xf32>, vector<192x128xf32>, vector<8x128xf32> -> vector<8x128xf32>
    %c0_55 = arith.constant 0 : index
    %c0_56 = arith.constant 0 : index
    %84 = vector.load %arg7[%c0_55, %c0_56] : memref<1x128xf32, #tpu.memory_space<vmem>>, vector<1x128xf32>
    %85 = vector.broadcast %84 : vector<1x128xf32> to vector<8x128xf32>
    %86 = arith.addf %83, %85 : vector<8x128xf32>
    %cst_57 = arith.constant 0.000000e+00 : f32
    %87 = vector.broadcast %cst_57 : f32 to vector<8x128xf32>
    %88 = arith.maximumf %86, %87 : vector<8x128xf32>
    %89 = tpu.concatenate %36, %38, %40 in 1 : vector<8x64xf32>, vector<8x64xf32>, vector<8x64xf32> -> vector<8x192xf32>
    %c0_58 = arith.constant 0 : index
    %c0_59 = arith.constant 0 : index
    %90 = vector.load %arg6[%c0_58, %c0_59] : memref<192x128xf32, #tpu.memory_space<vmem>>, vector<192x128xf32>
    %cst_60 = arith.constant dense<0.000000e+00> : vector<8x128xf32>
    %91 = tpu.matmul %89, %90, %cst_60 {dimension_numbers = #tpu.dot_dimension_numbers<[1], [0], [0], [1], [0, 0, 1, 1], [], []>} : vector<8x192xf32>, vector<192x128xf32>, vector<8x128xf32> -> vector<8x128xf32>
    %c0_61 = arith.constant 0 : index
    %c0_62 = arith.constant 0 : index
    %92 = vector.load %arg7[%c0_61, %c0_62] : memref<1x128xf32, #tpu.memory_space<vmem>>, vector<1x128xf32>
    %93 = vector.broadcast %92 : vector<1x128xf32> to vector<8x128xf32>
    %94 = arith.addf %91, %93 : vector<8x128xf32>
    %cst_63 = arith.constant 0.000000e+00 : f32
    %95 = vector.broadcast %cst_63 : f32 to vector<8x128xf32>
    %96 = arith.maximumf %94, %95 : vector<8x128xf32>
    %cst_64 = arith.constant 0.000000e+00 : f32
    %97 = vector.broadcast %cst_64 : f32 to vector<8x256xf32>
    %98 = tpu.concatenate %48, %56, %64 in 1 : vector<8x128xf32>, vector<8x128xf32>, vector<8x128xf32> -> vector<8x384xf32>
    %c0_65 = arith.constant 0 : index
    %c0_66 = arith.constant 0 : index
    %99 = vector.load %arg8[%c0_65, %c0_66] : memref<384x256xf32, #tpu.memory_space<vmem>>, vector<384x256xf32>
    %cst_67 = arith.constant dense<0.000000e+00> : vector<8x256xf32>
    %100 = tpu.matmul %98, %99, %cst_67 {dimension_numbers = #tpu.dot_dimension_numbers<[1], [0], [0], [1], [0, 0, 1, 1], [], []>} : vector<8x384xf32>, vector<384x256xf32>, vector<8x256xf32> -> vector<8x256xf32>
    %c0_68 = arith.constant 0 : index
    %c0_69 = arith.constant 0 : index
    %101 = vector.load %arg9[%c0_68, %c0_69] : memref<1x256xf32, #tpu.memory_space<vmem>>, vector<1x256xf32>
    %102 = vector.broadcast %101 : vector<1x256xf32> to vector<8x256xf32>
    %103 = arith.addf %100, %102 : vector<8x256xf32>
    %cst_70 = arith.constant 0.000000e+00 : f32
    %104 = vector.broadcast %cst_70 : f32 to vector<8x256xf32>
    %105 = arith.maximumf %103, %104 : vector<8x256xf32>
    %106 = arith.addf %97, %105 : vector<8x256xf32>
    %107 = tpu.concatenate %56, %64, %72 in 1 : vector<8x128xf32>, vector<8x128xf32>, vector<8x128xf32> -> vector<8x384xf32>
    %c0_71 = arith.constant 0 : index
    %c0_72 = arith.constant 0 : index
    %108 = vector.load %arg8[%c0_71, %c0_72] : memref<384x256xf32, #tpu.memory_space<vmem>>, vector<384x256xf32>
    %cst_73 = arith.constant dense<0.000000e+00> : vector<8x256xf32>
    %109 = tpu.matmul %107, %108, %cst_73 {dimension_numbers = #tpu.dot_dimension_numbers<[1], [0], [0], [1], [0, 0, 1, 1], [], []>} : vector<8x384xf32>, vector<384x256xf32>, vector<8x256xf32> -> vector<8x256xf32>
    %c0_74 = arith.constant 0 : index
    %c0_75 = arith.constant 0 : index
    %110 = vector.load %arg9[%c0_74, %c0_75] : memref<1x256xf32, #tpu.memory_space<vmem>>, vector<1x256xf32>
    %111 = vector.broadcast %110 : vector<1x256xf32> to vector<8x256xf32>
    %112 = arith.addf %109, %111 : vector<8x256xf32>
    %cst_76 = arith.constant 0.000000e+00 : f32
    %113 = vector.broadcast %cst_76 : f32 to vector<8x256xf32>
    %114 = arith.maximumf %112, %113 : vector<8x256xf32>
    %115 = arith.addf %106, %114 : vector<8x256xf32>
    %116 = tpu.concatenate %64, %72, %80 in 1 : vector<8x128xf32>, vector<8x128xf32>, vector<8x128xf32> -> vector<8x384xf32>
    %c0_77 = arith.constant 0 : index
    %c0_78 = arith.constant 0 : index
    %117 = vector.load %arg8[%c0_77, %c0_78] : memref<384x256xf32, #tpu.memory_space<vmem>>, vector<384x256xf32>
    %cst_79 = arith.constant dense<0.000000e+00> : vector<8x256xf32>
    %118 = tpu.matmul %116, %117, %cst_79 {dimension_numbers = #tpu.dot_dimension_numbers<[1], [0], [0], [1], [0, 0, 1, 1], [], []>} : vector<8x384xf32>, vector<384x256xf32>, vector<8x256xf32> -> vector<8x256xf32>
    %c0_80 = arith.constant 0 : index
    %c0_81 = arith.constant 0 : index
    %119 = vector.load %arg9[%c0_80, %c0_81] : memref<1x256xf32, #tpu.memory_space<vmem>>, vector<1x256xf32>
    %120 = vector.broadcast %119 : vector<1x256xf32> to vector<8x256xf32>
    %121 = arith.addf %118, %120 : vector<8x256xf32>
    %cst_82 = arith.constant 0.000000e+00 : f32
    %122 = vector.broadcast %cst_82 : f32 to vector<8x256xf32>
    %123 = arith.maximumf %121, %122 : vector<8x256xf32>
    %124 = arith.addf %115, %123 : vector<8x256xf32>
    %125 = tpu.concatenate %72, %80, %88 in 1 : vector<8x128xf32>, vector<8x128xf32>, vector<8x128xf32> -> vector<8x384xf32>
    %c0_83 = arith.constant 0 : index
    %c0_84 = arith.constant 0 : index
    %126 = vector.load %arg8[%c0_83, %c0_84] : memref<384x256xf32, #tpu.memory_space<vmem>>, vector<384x256xf32>
    %cst_85 = arith.constant dense<0.000000e+00> : vector<8x256xf32>
    %127 = tpu.matmul %125, %126, %cst_85 {dimension_numbers = #tpu.dot_dimension_numbers<[1], [0], [0], [1], [0, 0, 1, 1], [], []>} : vector<8x384xf32>, vector<384x256xf32>, vector<8x256xf32> -> vector<8x256xf32>
    %c0_86 = arith.constant 0 : index
    %c0_87 = arith.constant 0 : index
    %128 = vector.load %arg9[%c0_86, %c0_87] : memref<1x256xf32, #tpu.memory_space<vmem>>, vector<1x256xf32>
    %129 = vector.broadcast %128 : vector<1x256xf32> to vector<8x256xf32>
    %130 = arith.addf %127, %129 : vector<8x256xf32>
    %cst_88 = arith.constant 0.000000e+00 : f32
    %131 = vector.broadcast %cst_88 : f32 to vector<8x256xf32>
    %132 = arith.maximumf %130, %131 : vector<8x256xf32>
    %133 = arith.addf %124, %132 : vector<8x256xf32>
    %134 = tpu.concatenate %80, %88, %96 in 1 : vector<8x128xf32>, vector<8x128xf32>, vector<8x128xf32> -> vector<8x384xf32>
    %c0_89 = arith.constant 0 : index
    %c0_90 = arith.constant 0 : index
    %135 = vector.load %arg8[%c0_89, %c0_90] : memref<384x256xf32, #tpu.memory_space<vmem>>, vector<384x256xf32>
    %cst_91 = arith.constant dense<0.000000e+00> : vector<8x256xf32>
    %136 = tpu.matmul %134, %135, %cst_91 {dimension_numbers = #tpu.dot_dimension_numbers<[1], [0], [0], [1], [0, 0, 1, 1], [], []>} : vector<8x384xf32>, vector<384x256xf32>, vector<8x256xf32> -> vector<8x256xf32>
    %c0_92 = arith.constant 0 : index
    %c0_93 = arith.constant 0 : index
    %137 = vector.load %arg9[%c0_92, %c0_93] : memref<1x256xf32, #tpu.memory_space<vmem>>, vector<1x256xf32>
    %138 = vector.broadcast %137 : vector<1x256xf32> to vector<8x256xf32>
    %139 = arith.addf %136, %138 : vector<8x256xf32>
    %cst_94 = arith.constant 0.000000e+00 : f32
    %140 = vector.broadcast %cst_94 : f32 to vector<8x256xf32>
    %141 = arith.maximumf %139, %140 : vector<8x256xf32>
    %142 = arith.addf %133, %141 : vector<8x256xf32>
    %cst_95 = arith.constant 2.000000e-01 : f32
    %143 = vector.broadcast %cst_95 : f32 to vector<8x256xf32>
    %144 = arith.mulf %142, %143 : vector<8x256xf32>
    %c0_96 = arith.constant 0 : index
    %c0_97 = arith.constant 0 : index
    %145 = vector.load %arg10[%c0_96, %c0_97] : memref<256x64xf32, #tpu.memory_space<vmem>>, vector<256x64xf32>
    %cst_98 = arith.constant dense<0.000000e+00> : vector<8x64xf32>
    %146 = tpu.matmul %144, %145, %cst_98 {dimension_numbers = #tpu.dot_dimension_numbers<[1], [0], [0], [1], [0, 0, 1, 1], [], []>} : vector<8x256xf32>, vector<256x64xf32>, vector<8x64xf32> -> vector<8x64xf32>
    %c0_99 = arith.constant 0 : index
    %c0_100 = arith.constant 0 : index
    %147 = vector.load %arg11[%c0_99, %c0_100] : memref<1x64xf32, #tpu.memory_space<vmem>>, vector<1x64xf32>
    %148 = vector.broadcast %147 : vector<1x64xf32> to vector<8x64xf32>
    %149 = arith.addf %146, %148 : vector<8x64xf32>
    %cst_101 = arith.constant 0.000000e+00 : f32
    %150 = vector.broadcast %cst_101 : f32 to vector<8x64xf32>
    %151 = arith.maximumf %149, %150 : vector<8x64xf32>
    %c0_102 = arith.constant 0 : index
    %c0_103 = arith.constant 0 : index
    %152 = vector.load %arg12[%c0_102, %c0_103] : memref<64x8xf32, #tpu.memory_space<vmem>>, vector<64x8xf32>
    %cst_104 = arith.constant dense<0.000000e+00> : vector<8x8xf32>
    %153 = tpu.matmul %151, %152, %cst_104 {dimension_numbers = #tpu.dot_dimension_numbers<[1], [0], [0], [1], [0, 0, 1, 1], [], []>} : vector<8x64xf32>, vector<64x8xf32>, vector<8x8xf32> -> vector<8x8xf32>
    %c0_105 = arith.constant 0 : index
    %c0_106 = arith.constant 0 : index
    %154 = vector.load %arg13[%c0_105, %c0_106] : memref<1x8xf32, #tpu.memory_space<vmem>>, vector<1x8xf32>
    %155 = vector.broadcast %154 : vector<1x8xf32> to vector<8x8xf32>
    %156 = arith.addf %153, %155 : vector<8x8xf32>
    %cst_107 = arith.constant 0.000000e+00 : f32
    %157 = vector.broadcast %cst_107 : f32 to vector<8x8xf32>
    %158 = arith.maximumf %156, %157 : vector<8x8xf32>
    %c0_108 = arith.constant 0 : index
    %c0_109 = arith.constant 0 : index
    %159 = vector.load %arg14[%c0_108, %c0_109] : memref<8x128xf32, #tpu.memory_space<vmem>>, vector<8x128xf32>
    %cst_110 = arith.constant dense<0.000000e+00> : vector<8x128xf32>
    %160 = tpu.matmul %158, %159, %cst_110 {dimension_numbers = #tpu.dot_dimension_numbers<[1], [0], [0], [1], [0, 0, 1, 1], [], []>} : vector<8x8xf32>, vector<8x128xf32>, vector<8x128xf32> -> vector<8x128xf32>
    %c0_111 = arith.constant 0 : index
    %c0_112 = arith.constant 0 : index
    %161 = vector.load %arg15[%c0_111, %c0_112] : memref<1x128xf32, #tpu.memory_space<vmem>>, vector<1x128xf32>
    %162 = vector.broadcast %161 : vector<1x128xf32> to vector<8x128xf32>
    %163 = arith.addf %160, %162 : vector<8x128xf32>
    %c0_113 = arith.constant 0 : index
    %c0_114 = arith.constant 0 : index
    %164 = vector.load %arg16[%c0_113, %c0_114] : memref<8x128xf32, #tpu.memory_space<vmem>>, vector<8x128xf32>
    tpu.vector_store %arg16[%c0_113, %c0_114], %163 {strides = array<i32>} : memref<8x128xf32, #tpu.memory_space<vmem>>, vector<8x128xf32>,
    return
  }
  func.func @transform_0(%arg0: i32) -> (i32, i32, i32) {
    %c0_i32 = arith.constant 0 : i32
    %c0_i32_0 = arith.constant 0 : i32
    %c0_i32_1 = arith.constant 0 : i32
    return %arg0, %c0_i32, %c0_i32_0 : i32, i32, i32
  }
  func.func @transform_1(%arg0: i32) -> (i32, i32) {
    %c0_i32 = arith.constant 0 : i32
    %c0_i32_0 = arith.constant 0 : i32
    %c0_i32_1 = arith.constant 0 : i32
    return %c0_i32, %c0_i32_0 : i32, i32
  }
  func.func @transform_2(%arg0: i32) -> (i32, i32) {
    %c0_i32 = arith.constant 0 : i32
    %c0_i32_0 = arith.constant 0 : i32
    %c0_i32_1 = arith.constant 0 : i32
    return %c0_i32, %c0_i32_0 : i32, i32
  }
  func.func @transform_3(%arg0: i32) -> (i32, i32) {
    %c0_i32 = arith.constant 0 : i32
    %c0_i32_0 = arith.constant 0 : i32
    %c0_i32_1 = arith.constant 0 : i32
    return %c0_i32, %c0_i32_0 : i32, i32
  }
  func.func @transform_4(%arg0: i32) -> (i32, i32) {
    %c0_i32 = arith.constant 0 : i32
    %c0_i32_0 = arith.constant 0 : i32
    %c0_i32_1 = arith.constant 0 : i32
    return %c0_i32, %c0_i32_0 : i32, i32
  }
  func.func @transform_5(%arg0: i32) -> (i32, i32) {
    %c0_i32 = arith.constant 0 : i32
    %c0_i32_0 = arith.constant 0 : i32
    %c0_i32_1 = arith.constant 0 : i32
    return %c0_i32, %c0_i32_0 : i32, i32
  }
  func.func @transform_6(%arg0: i32) -> (i32, i32) {
    %c0_i32 = arith.constant 0 : i32
    %c0_i32_0 = arith.constant 0 : i32
    %c0_i32_1 = arith.constant 0 : i32
    return %c0_i32, %c0_i32_0 : i32, i32
  }
  func.func @transform_7(%arg0: i32) -> (i32, i32) {
    %c0_i32 = arith.constant 0 : i32
    %c0_i32_0 = arith.constant 0 : i32
    %c0_i32_1 = arith.constant 0 : i32
    return %c0_i32, %c0_i32_0 : i32, i32
  }
  func.func @transform_8(%arg0: i32) -> (i32, i32) {
    %c0_i32 = arith.constant 0 : i32
    %c0_i32_0 = arith.constant 0 : i32
    %c0_i32_1 = arith.constant 0 : i32
    return %c0_i32, %c0_i32_0 : i32, i32
  }
  func.func @transform_9(%arg0: i32) -> (i32, i32) {
    %c0_i32 = arith.constant 0 : i32
    %c0_i32_0 = arith.constant 0 : i32
    %c0_i32_1 = arith.constant 0 : i32
    return %c0_i32, %c0_i32_0 : i32, i32
  }
  func.func @transform_10(%arg0: i32) -> (i32, i32) {
    %c0_i32 = arith.constant 0 : i32
    %c0_i32_0 = arith.constant 0 : i32
    %c0_i32_1 = arith.constant 0 : i32
    return %c0_i32, %c0_i32_0 : i32, i32
  }
  func.func @transform_11(%arg0: i32) -> (i32, i32) {
    %c0_i32 = arith.constant 0 : i32
    %c0_i32_0 = arith.constant 0 : i32
    %c0_i32_1 = arith.constant 0 : i32
    return %c0_i32, %c0_i32_0 : i32, i32
  }
  func.func @transform_12(%arg0: i32) -> (i32, i32) {
    %c0_i32 = arith.constant 0 : i32
    %c0_i32_0 = arith.constant 0 : i32
    %c0_i32_1 = arith.constant 0 : i32
    return %c0_i32, %c0_i32_0 : i32, i32
  }
  func.func @transform_13(%arg0: i32) -> (i32, i32) {
    %c0_i32 = arith.constant 0 : i32
    %c0_i32_0 = arith.constant 0 : i32
    %c0_i32_1 = arith.constant 0 : i32
    return %c0_i32, %c0_i32_0 : i32, i32
  }
  func.func @transform_14(%arg0: i32) -> (i32, i32) {
    %c0_i32 = arith.constant 0 : i32
    %c0_i32_0 = arith.constant 0 : i32
    %c0_i32_1 = arith.constant 0 : i32
    return %c0_i32, %c0_i32_0 : i32, i32
  }
  func.func @transform_15(%arg0: i32) -> (i32, i32) {
    %c0_i32 = arith.constant 0 : i32
    %c0_i32_0 = arith.constant 0 : i32
    return %arg0, %c0_i32 : i32, i32
  }
}

</mosaic_0001>

<bundles_post_ra>
// kernel: tpu_custom_call.1
= control target key start
LH: loop header
LB: loop body
LE: loop exit
PB: predicated region body
PF: predicated region fallthrough
CT: control target
= control target key end

     0   :  { %vm101_vm0 = vcmask 195584   ;;  %s7393_s0 = inlined_call_operand.vmem [shape: f32[8,40,24], index: 0, kind: input, shape index: {}]   ;;  %s7394_s1 = inlined_call_operand.vmem [shape: f32[24,32], index: 1, kind: input, shape index: {}]   ;;  %s7395_s2 = inlined_call_operand.vmem [shape: f32[1,32], index: 2, kind: input, shape index: {}]   ;;  %s7396_s3 = inlined_call_operand.vmem [shape: f32[96,64], index: 3, kind: input, shape index: {}]   ;;  %s7397_s4 = inlined_call_operand.vmem [shape: f32[1,64], index: 4, kind: input, shape index: {}]   ;;  %s7398_s5 = inlined_call_operand.vmem [shape: f32[192,128], index: 5, kind: input, shape index: {}]   ;;  %s7399_s6 = inlined_call_operand.vmem [shape: f32[1,128], index: 6, kind: input, shape index: {}]   ;;  %s7400_s7 = inlined_call_operand.vmem [shape: f32[384,256], index: 7, kind: input, shape index: {}]   ;;  %s7401_s8 = inlined_call_operand.vmem [shape: f32[1,256], index: 8, kind: input, shape index: {}]   ;;  %s7402_s9 = inlined_call_operand.vmem [shape: f32[256,64], index: 9, kind: input, shape index: {}]   ;;  %s7403_s10 = inlined_call_operand.vmem [shape: f32[1,64], index: 10, kind: input, shape index: {}]   ;;  %s7404_s11 = inlined_call_operand.vmem [shape: f32[64,8], index: 11, kind: input, shape index: {}]   ;;  %s7405_s12 = inlined_call_operand.vmem [shape: f32[1,8], index: 12, kind: input, shape index: {}]   ;;  %s7406_s13 = inlined_call_operand.vmem [shape: f32[8,128], index: 13, kind: input, shape index: {}]   ;;  %s7407_s14 = inlined_call_operand.vmem [shape: f32[1,128], index: 14, kind: input, shape index: {}]   ;;  %s7408_s15 = inlined_call_operand.hbm [shape: f32[8,128], index: 15, kind: output, shape index: {}]  }
   0x1   :  { %v91_v0 = vld [vmem:[%s7394_s1] sm:$0xff]  ;;  %v92_v1 = vld [vmem:[%s7394_s1 + $0x8] sm:$0xff]  ;;  %v93_v4 = vld [vmem:[%s7394_s1 + $0x10] sm:$0xff] }
   0x2   :  { %v4127_v2 = vpack.c.bf16 %v92_v1, %v91_v0  ;;  %v51_v3 = vld [vmem:[%s7393_s0] sm:$0xff]  ;;  %v52_v5 = vld [vmem:[%s7393_s0 + $0x8] sm:$0xff]  ;;  %v53_v6 = vld [vmem:[%s7393_s0 + $0x10] sm:$0xff] }
   0x3   :  { %3971 = vmatprep.mubr.msk.f32.mxu0 %vm101_vm0, %v51_v3  ;;  %v54_v7 = vld [vmem:[%s7393_s0 + $0x18] sm:$0xff]  ;;  %v55_v8 = vld [vmem:[%s7393_s0 + $0x20] sm:$0xff]  ;;  %v56_v9 = vld [vmem:[%s7393_s0 + $0x28] sm:$0xff] }
   0x4   :  { %4128 = vmatprep.subr.bf16.mxu0 %v4127_v2 }
   0x5   :  { %4130 = vmatpush3.bf16.msra.mxu0 %v4127_v2 }
   0x6   :  { %3969 = vmatprep.subr.mxu0 %v93_v4 }
   0x9   :  { %3970 = vmatpush3.msra.mxu0 %v93_v4 }
   0xa   :  { %3972 = vmatmul.mubr.msk.f32.vlgmr.msra.gmra.mrb[0].mxu0 %vm101_vm0, %v52_v5 }
   0xb   :  { %3974 = vmatprep.mubr.msk.f32.mxu0 %vm101_vm0, %v53_v6 }
   0xe   :  { %3975 = vmatmul.mubr.msk.f32.gmra.mrb[2].mxu0 %vm101_vm0, %v54_v7 }
   0xf   :  { %3977 = vmatprep.mubr.msk.f32.mxu0 %vm101_vm0, %v55_v8 }
  0x10   :  { %20 = vsyncpa [#allocation3], 0  ;;  %v57_v10 = vld [vmem:[%s7393_s0 + $0x30] sm:$0xff]  ;;  %v58_v11 = vld [vmem:[%s7393_s0 + $0x38] sm:$0xff]  ;;  %vm736_vm1 = vcmask 1045504   ;;  %vm567_vm2 = vcmask 1046528  }
  0x11   :  { %v59_v12 = vld [vmem:[%s7393_s0 + $0x40] sm:$0xff]  ;;  %v60_v13 = vld [vmem:[%s7393_s0 + $0x48] sm:$0xff]  ;;  %v61_v14 = vld [vmem:[%s7393_s0 + $0x50] sm:$0xff]  ;;  %vm905_vm3 = vcmask 261120   ;;  %vm938_vm4 = vcmask 523264   ;;  %vm990_vm5 = vcmask 785408  }
  0x12   :  { %3978 = vmatmul.mubr.msk.f32.gmra.mrb[4].mxu0 %vm101_vm0, %v56_v9  ;;  %v62_v15 = vld [vmem:[%s7393_s0 + $0x58] sm:$0xff]  ;;  %v63_v16 = vld [vmem:[%s7393_s0 + $0x60] sm:$0xff]  ;;  %v64_v17 = vld [vmem:[%s7393_s0 + $0x68] sm:$0xff]  ;;  %vm1532_vm6 = vcmask 519169   ;;  %vm1589_vm7 = vcmask 522244   ;;  %vm1460_vm8 = vcmask 516096  }
  0x13   :  { %3980 = vmatprep.mubr.msk.f32.mxu0 %vm101_vm0, %v57_v10  ;;  %v65_v18 = vld [vmem:[%s7393_s0 + $0x70] sm:$0xff]  ;;  %v66_v19 = vld [vmem:[%s7393_s0 + $0x78] sm:$0xff]  ;;  %v67_v20 = vld [vmem:[%s7393_s0 + $0x80] sm:$0xff]  ;;  %vm1344_vm9 = vcmask 518144   ;;  %vm1401_vm10 = vcmask 521219   ;;  %vm1458_vm11 = vcmask 523270  }
  0x14   :  { %v68_v21 = vld [vmem:[%s7393_s0 + $0x88] sm:$0xff]  ;;  %v69_v22 = vld [vmem:[%s7393_s0 + $0x90] sm:$0xff]  ;;  %v70_v23 = vld [vmem:[%s7393_s0 + $0x98] sm:$0xff]  ;;  %vm1648_vm12 = vcmask 517120   ;;  %vm1720_vm13 = vcmask 520194   ;;  %vm1646_vm14 = vcmask 523271  }
  0x15   :  { %v71_v24 = vld [vmem:[%s7393_s0 + $0xa0] sm:$0xff]  ;;  %v72_v25 = vld [vmem:[%s7393_s0 + $0xa8] sm:$0xff]  ;;  %v73_v26 = vld [vmem:[%s7393_s0 + $0xb0] sm:$0xff]  ;;  %vm1777_vm15 = vcmask 523269   ;;  %s4987_s22 = smov [#allocation2]  }
  0x16   :  { %3981 = vmatmul.mubr.msk.f32.gmra.mrb[6].mxu0 %vm101_vm0, %v58_v11  ;;  %v74_v27 = vld [vmem:[%s7393_s0 + $0xb8] sm:$0xff]  ;;  %v75_v28 = vld [vmem:[%s7393_s0 + $0xc0] sm:$0xff]  ;;  %v76_v29 = vld [vmem:[%s7393_s0 + $0xc8] sm:$0xff]  ;;  %s3737_s23 = sshll.u32 %s4987_s22, 4  ;;  %s3738_s23 = int_to_ptr.vmem [resolvable:$true] %s3737_s23 }
  0x17   :  { %3983 = vmatprep.mubr.msk.f32.mxu0 %vm101_vm0, %v59_v12  ;;  %v77_v30 = vld [vmem:[%s7393_s0 + $0xd0] sm:$0xff]  ;;  %v78_v31 = vld [vmem:[%s7393_s0 + $0xd8] sm:$0xff]  ;;  %v79_v32 = vld [vmem:[%s7393_s0 + $0xe0] sm:$0xff]  ;;  %p4963_p1 = scmp.lt.s32.totalorder %s3738_s23, %s3738_s23 }
  0x18   :  { %v80_v33 = vld [vmem:[%s7393_s0 + $0xe8] sm:$0xff]  ;;  %v81_v34 = vld [vmem:[%s7393_s0 + $0xf0] sm:$0xff]  ;;  %v82_v35 = vld [vmem:[%s7393_s0 + $0xf8] sm:$0xff] }
  0x19   :  { %v83_v36 = vld [vmem:[%s7393_s0 + $0x100] sm:$0xff]  ;;  %v84_v37 = vld [vmem:[%s7393_s0 + $0x108] sm:$0xff]  ;;  %v85_v38 = vld [vmem:[%s7393_s0 + $0x110] sm:$0xff] }
  0x1a   :  { %3984 = vmatmul.mubr.msk.f32.gmra.mrb[8].mxu0 %vm101_vm0, %v60_v13  ;;  %v86_v39 = vld [vmem:[%s7393_s0 + $0x118] sm:$0xff]  ;;  %v87_v40 = vld [vmem:[%s7393_s0 + $0x120] sm:$0xff]  ;;  %v88_v41 = vld [vmem:[%s7393_s0 + $0x128] sm:$0xff] }
  0x1b   :  { %3986 = vmatprep.mubr.msk.f32.mxu0 %vm101_vm0, %v61_v14  ;;  %v89_v42 = vld [vmem:[%s7393_s0 + $0x130] sm:$0xff]  ;;  %v90_v43 = vld [vmem:[%s7393_s0 + $0x138] sm:$0xff]  ;;  %v971_v44 = vld [vmem:[%s7396_s3] sm:$0xff] }
  0x1c   :  { %v972_v45 = vld [vmem:[%s7396_s3 + $0x8] sm:$0xff]  ;;  %v973_v47 = vld [vmem:[%s7396_s3 + $0x10] sm:$0xff]  ;;  %v974_v48 = vld [vmem:[%s7396_s3 + $0x18] sm:$0xff] }
  0x1d   :  { %v4131_v46 = vpack.c.bf16 %v972_v45, %v971_v44  ;;  %v4135_v49 = vpack.c.bf16 %v974_v48, %v973_v47  ;;  %v975_v50 = vld [vmem:[%s7396_s3 + $0x20] sm:$0xff]  ;;  %v976_v51 = vld [vmem:[%s7396_s3 + $0x28] sm:$0xff]  ;;  %v977_v53 = vld [vmem:[%s7396_s3 + $0x30] sm:$0xff] }
  0x1e   :  { %3987 = vmatmul.mubr.msk.f32.gmra.mrb[10].mxu0 %vm101_vm0, %v62_v15  ;;  %v4139_v52 = vpack.c.bf16 %v976_v51, %v975_v50  ;;  %v978_v54 = vld [vmem:[%s7396_s3 + $0x38] sm:$0xff]  ;;  %v979_v56 = vld [vmem:[%s7396_s3 + $0x40] sm:$0xff]  ;;  %v980_v57 = vld [vmem:[%s7396_s3 + $0x48] sm:$0xff] }
  0x1f   :  { %3989 = vmatprep.mubr.msk.f32.mxu0 %vm101_vm0, %v63_v16  ;;  %4132 = vmatprep.subr.bf16.mxu1 %v4131_v46  ;;  %v4143_v55 = vpack.c.bf16 %v978_v54, %v977_v53  ;;  %v4147_v58 = vpack.c.bf16 %v980_v57, %v979_v56  ;;  %v981_v59 = vld [vmem:[%s7396_s3 + $0x50] sm:$0xff]  ;;  %v982_v60 = vld [vmem:[%s7396_s3 + $0x58] sm:$0xff]  ;;  %v5276_v62 = vld [vmem:[%s7395_s2] ss:$0 sm:$0xff]  ;;  %s4982_s2 = smov 64   ;;  %s4983_s3 = smov 32  }
  0x20   :  { %4134 = vmatpush3.bf16.msra.mxu1 %v4131_v46  ;;  %v4151_v61 = vpack.c.bf16 %v982_v60, %v981_v59 }
  0x21   :  { %4136 = vmatprep.subr.bf16.mxu1 %v4135_v49 }
  0x22   :  { %3990 = vmatmul.mubr.msk.f32.gmra.mrb[12].mxu0 %vm101_vm0, %v64_v17 }
  0x23   :  { %3992 = vmatprep.mubr.msk.f32.mxu0 %vm101_vm0, %v65_v18 }
  0x24   :  { %4138 = vmatpush3.bf16.msra.mxu1 %v4135_v49 }
  0x25   :  { %4140 = vmatprep.subr.bf16.mxu1 %v4139_v52 }
  0x26   :  { %3993 = vmatmul.mubr.msk.f32.gmra.mrb[14].mxu0 %vm101_vm0, %v66_v19 }
  0x27   :  { %3995 = vmatprep.mubr.msk.f32.mxu0 %vm101_vm0, %v67_v20 }
  0x28   :  { %4142 = vmatpush3.bf16.msra.mxu1 %v4139_v52 }
  0x29   :  { %4144 = vmatprep.subr.bf16.mxu1 %v4143_v55 }
  0x2a   :  { %3996 = vmatmul.mubr.msk.f32.gmra.mrb[16].mxu0 %vm101_vm0, %v68_v21 }
  0x2b   :  { %3998 = vmatprep.mubr.msk.f32.mxu0 %vm101_vm0, %v69_v22 }
  0x2c   :  { %4146 = vmatpush3.bf16.msra.mxu1 %v4143_v55 }
  0x2d   :  { %4148 = vmatprep.subr.bf16.mxu1 %v4147_v58 }
  0x2e   :  { %3999 = vmatmul.mubr.msk.f32.gmra.mrb[18].mxu0 %vm101_vm0, %v70_v23 }
  0x2f   :  { %4001 = vmatprep.mubr.msk.f32.mxu0 %vm101_vm0, %v71_v24 }
  0x30   :  { %4150 = vmatpush3.bf16.msra.mxu1 %v4147_v58 }
  0x31   :  { %4152 = vmatprep.subr.bf16.mxu1 %v4151_v61 }
  0x32   :  { %4002 = vmatmul.mubr.msk.f32.gmra.mrb[20].mxu0 %vm101_vm0, %v72_v25 }
  0x33   :  { %4004 = vmatprep.mubr.msk.f32.mxu0 %vm101_vm0, %v73_v26 }
  0x34   :  { %4154 = vmatpush3.bf16.msra.mxu1 %v4151_v61 }
  0x36   :  { %4005 = vmatmul.mubr.msk.f32.gmra.mrb[22].mxu0 %vm101_vm0, %v74_v27 }
  0x37   :  { %4007 = vmatprep.mubr.msk.f32.mxu0 %vm101_vm0, %v75_v28 }
  0x3a   :  { %4008 = vmatmul.mubr.msk.f32.gmra.mrb[24].mxu0 %vm101_vm0, %v76_v29 }
  0x3b   :  { %4010 = vmatprep.mubr.msk.f32.mxu0 %vm101_vm0, %v77_v30 }
  0x3e   :  { %4011 = vmatmul.mubr.msk.f32.gmra.mrb[26].mxu0 %vm101_vm0, %v78_v31 }
  0x3f   :  { %4013 = vmatprep.mubr.msk.f32.mxu0 %vm101_vm0, %v79_v32 }
  0x42   :  { %4014 = vmatmul.mubr.msk.f32.gmra.mrb[28].mxu0 %vm101_vm0, %v80_v33 }
  0x43   :  { %4016 = vmatprep.mubr.msk.f32.mxu0 %vm101_vm0, %v81_v34 }
  0x46   :  { %4017 = vmatmul.mubr.msk.f32.gmra.mrb[30].mxu0 %vm101_vm0, %v82_v35 }
  0x47   :  { %4019 = vmatprep.mubr.msk.f32.mxu0 %vm101_vm0, %v83_v36 }
  0x4a   :  { %4020 = vmatmul.mubr.msk.f32.gmra.mrb[32].mxu0 %vm101_vm0, %v84_v37 }
  0x4b   :  { %4022 = vmatprep.mubr.msk.f32.mxu0 %vm101_vm0, %v85_v38 }
  0x4e   :  { %4023 = vmatmul.mubr.msk.f32.gmra.mrb[34].mxu0 %vm101_vm0, %v86_v39 }
  0x4f   :  { %4025 = vmatprep.mubr.msk.f32.mxu0 %vm101_vm0, %v87_v40 }
  0x52   :  { %4026 = vmatmul.mubr.msk.f32.gmra.mrb[36].mxu0 %vm101_vm0, %v88_v41 }
  0x53   :  { %4028 = vmatprep.mubr.msk.f32.mxu0 %vm101_vm0, %v89_v42 }
  0x56   :  { %4029 = vmatmul.mubr.msk.f32.gmra.mrb[38].mxu0 %vm101_vm0, %v90_v43  ;;  %vm1898_vm0 = vcmask 1041409  }
  0xdd   :  { %v3973_v63 = vpop.f32.mrb[0].mxu0 }
  0xde   :  { %v294_v0 = vadd.f32 %v3973_v63, %v5276_v62  ;;  %v288_v1 = vpop.f32.mrb[1].mxu0 }
  0xdf   :  { %v289_v2 = vadd.f32 %v5276_v62, %v288_v1 }
  0xe0   :  { %v5280_v3 = vmax.f32 %v294_v0, 0.0 }
  0xe1   :  { %v5282_v4 = vmax.f32 %v289_v2, 0.0  ;;  %v3976_v5 = vpop.f32.mrb[2].mxu0 }
  0xe2   :  { %v304_v6 = vadd.f32 %v3976_v5, %v5276_v62  ;;  %v298_v7 = vpop.f32.mrb[3].mxu0  ;;  %v738_v8 = vrot.slane %v5280_v3, 2  ;;  %v569_v9 = vrot.slane %v5280_v3, 1 }
  0xe3   :  { %v299_v10 = vadd.f32 %v5276_v62, %v298_v7  ;;  %v737_v11 = vrot.slane %v5282_v4, 2  ;;  %v568_v12 = vrot.slane %v5282_v4, 1 }
  0xe4   :  { %v5290_v13 = vmax.f32 %v304_v6, 0.0 }
  0xe5   :  { %v5292_v14 = vmax.f32 %v299_v10, 0.0  ;;  %v3979_v15 = vpop.f32.mrb[4].mxu0  ;;  %v739_v16 = vsel %vm736_vm1, %v737_v11, %v738_v8  ;;  %v570_v17 = vsel %vm567_vm2, %v568_v12, %v569_v9 }
  0xe6   :  { %v308_v18 = vpop.f32.mrb[5].mxu0  ;;  %809 = vrot.lane.b32.xlu1 %v739_v16, %s4982_s2  ;;  %640 = vrot.lane.b32.xlu0 %v570_v17, %s4983_s3  ;;  %v573_v22 = vrot.slane %v5290_v13, 1  ;;  %v314_v29 = vadd.f32 %v3979_v15, %v5276_v62  ;;  %v742_v32 = vrot.slane %v5290_v13, 2 }
  0xe7   :  { %v571_v19 = vrot.slane %v5292_v14, 1  ;;  %v740_v20 = vrot.slane %v5292_v14, 2  ;;  %v309_v21 = vadd.f32 %v5276_v62, %v308_v18 }
  0xe8   :  { %v5318_v40 = vmax.f32 %v314_v29, 0.0 }
  0xe9   :  { %v491_v23 = vmax.f32 %v309_v21, 0.0  ;;  %v3982_v24 = vpop.f32.mrb[6].mxu0  ;;  %v741_v25 = vsel %vm736_vm1, %v738_v8, %v740_v20  ;;  %v572_v26 = vsel %vm567_vm2, %v569_v9, %v571_v19  ;;  %v574_v38 = vsel %vm567_vm2, %v571_v19, %v573_v22 }
  0xea   :  { %v324_v27 = vadd.f32 %v3982_v24, %v5276_v62  ;;  %v318_v28 = vpop.f32.mrb[7].mxu0  ;;  %811 = vrot.lane.b32.xlu1 %v741_v25, %s4982_s2  ;;  %642 = vrot.lane.b32.xlu0 %v572_v26, %s4983_s3  ;;  %v743_v46 = vsel %vm736_vm1, %v740_v20, %v742_v32  ;;  %v577_v49 = vrot.slane %v5318_v40, 1  ;;  %v746_v58 = vrot.slane %v5318_v40, 2 }
  0xeb   :  { %v575_v30 = vrot.slane %v491_v23, 1  ;;  %v319_v31 = vadd.f32 %v5276_v62, %v318_v28  ;;  %v744_v34 = vrot.slane %v491_v23, 2 }
  0xec   :  { %v5310_v33 = vmax.f32 %v324_v27, 0.0 }
  0xed   :  { %v5312_v35 = vmax.f32 %v319_v31, 0.0  ;;  %v3985_v36 = vpop.f32.mrb[8].mxu0  ;;  %v576_v37 = vsel %vm567_vm2, %v573_v22, %v575_v30  ;;  %v745_v45 = vsel %vm736_vm1, %v742_v32, %v744_v34 }
  0xee   :  { %v328_v39 = vpop.f32.mrb[9].mxu0  ;;  %646 = vrot.lane.b32.xlu1 %v576_v37, %s4983_s3  ;;  %644 = vrot.lane.b32.xlu0 %v574_v38, %s4983_s3  ;;  %v580_v41 = vrot.slane %v5310_v33, 1  ;;  %v334_v42 = vadd.f32 %v3985_v36, %v5276_v62  ;;  %v749_v52 = vrot.slane %v5310_v33, 2 }
  0xef   :  { %v578_v43 = vrot.slane %v5312_v35, 1  ;;  %v329_v44 = vadd.f32 %v5276_v62, %v328_v39  ;;  %v747_v53 = vrot.slane %v5312_v35, 2 }
  0xf0   :  { %v496_v50 = vmax.f32 %v334_v42, 0.0 }
  0xf1   :  { %v3988_v47 = vpop.f32.mrb[10].mxu0  ;;  %v581_v51 = vsel %vm567_vm2, %v578_v43, %v580_v41  ;;  %v5332_v54 = vmax.f32 %v329_v44, 0.0  ;;  %v579_v55 = vsel %vm567_vm2, %v577_v49, %v578_v43  ;;  %v750_v61 = vsel %vm736_vm1, %v747_v53, %v749_v52 }
  0xf2   :  { %815 = vrot.lane.b32.xlu1 %v745_v45, %s4982_s2  ;;  %813 = vrot.lane.b32.xlu0 %v743_v46, %s4982_s2  ;;  %v338_v48 = vpop.f32.mrb[11].mxu0  ;;  %v584_v59 = vrot.slane %v496_v50, 1  ;;  %v344_v60 = vadd.f32 %v3988_v47, %v5276_v62  ;;  %v748_v2 = vsel %vm736_vm1, %v746_v58, %v747_v53  ;;  %v753_v8 = vrot.slane %v496_v50, 2 }
  0xf3   :  { %v582_v63 = vrot.slane %v5332_v54, 1  ;;  %v339_v0 = vadd.f32 %v5276_v62, %v338_v48  ;;  %v751_v10 = vrot.slane %v5332_v54, 2 }
  0xf4   :  { %v5347_v9 = vmax.f32 %v344_v60, 0.0 }
  0xf5   :  { %v3991_v56 = vpop.f32.mrb[12].mxu0  ;;  %v585_v7 = vsel %vm567_vm2, %v582_v63, %v584_v59  ;;  %v5350_v11 = vmax.f32 %v339_v0, 0.0  ;;  %v583_v15 = vsel %vm567_vm2, %v580_v41, %v582_v63  ;;  %v754_v20 = vsel %vm736_vm1, %v751_v10, %v753_v8 }
  0xf6   :  { %650 = vrot.lane.b32.xlu1 %v581_v51, %s4983_s3  ;;  %648 = vrot.lane.b32.xlu0 %v579_v55, %s4983_s3  ;;  %v348_v57 = vpop.f32.mrb[13].mxu0  ;;  %v587_v18 = vrot.slane %v5347_v9, 1  ;;  %v354_v19 = vadd.f32 %v3991_v56, %v5276_v62  ;;  %v752_v24 = vsel %vm736_vm1, %v749_v52, %v751_v10  ;;  %v756_v27 = vrot.slane %v5347_v9, 2 }
  0xf7   :  { %v349_v1 = vadd.f32 %v5276_v62, %v348_v57  ;;  %v586_v21 = vrot.slane %v5350_v11, 1  ;;  %v755_v28 = vrot.slane %v5350_v11, 2 }
  0xf8   :  { %v5368_v29 = vmax.f32 %v354_v19, 0.0 }
  0xf9   :  { %v3994_v5 = vpop.f32.mrb[14].mxu0  ;;  %v5352_v12 = vmax.f32 %v349_v1, 0.0  ;;  %v588_v34 = vsel %vm567_vm2, %v586_v21, %v587_v18  ;;  %v757_v41 = vsel %vm736_vm1, %v755_v28, %v756_v27 }
  0xfa   :  { %819 = vrot.lane.b32.xlu1 %v750_v61, %s4982_s2  ;;  %817 = vrot.lane.b32.xlu0 %v748_v2, %s4982_s2  ;;  %v358_v6 = vpop.f32.mrb[15].mxu0  ;;  %v364_v39 = vadd.f32 %v3994_v5, %v5276_v62  ;;  %v591_v42 = vrot.slane %v5368_v29, 1  ;;  %v760_v49 = vrot.slane %v5368_v29, 2 }
  0xfb   :  { %v589_v22 = vrot.slane %v5352_v12, 1  ;;  %v359_v23 = vadd.f32 %v5276_v62, %v358_v6  ;;  %v758_v30 = vrot.slane %v5352_v12, 2 }
  0xfc   :  { %v5386_v50 = vmax.f32 %v364_v39, 0.0 }
  0xfd   :  { %v3997_v16 = vpop.f32.mrb[16].mxu0  ;;  %v501_v31 = vmax.f32 %v359_v23, 0.0  ;;  %v590_v32 = vsel %vm567_vm2, %v587_v18, %v589_v22  ;;  %v759_v45 = vsel %vm736_vm1, %v756_v27, %v758_v30  ;;  %v592_v55 = vsel %vm567_vm2, %v589_v22, %v591_v42 }
  0xfe   :  { %654 = vrot.lane.b32.xlu1 %v585_v7, %s4983_s3  ;;  %652 = vrot.lane.b32.xlu0 %v583_v15, %s4983_s3  ;;  %v368_v17 = vpop.f32.mrb[17].mxu0  ;;  %v374_v38 = vadd.f32 %v3997_v16, %v5276_v62  ;;  %v595_v60 = vrot.slane %v5386_v50, 1  ;;  %v761_v1 = vsel %vm736_vm1, %v758_v30, %v760_v49  ;;  %v764_v10 = vrot.slane %v5386_v50, 2 }
  0xff   :  { %v593_v43 = vrot.slane %v501_v31, 1  ;;  %v369_v44 = vadd.f32 %v5276_v62, %v368_v17  ;;  %v762_v51 = vrot.slane %v501_v31, 2 }
 0x100   :  { %v5383_v48 = vmax.f32 %v374_v38, 0.0 }
 0x101   :  { %v4000_v25 = vpop.f32.mrb[18].mxu0  ;;  %v5388_v52 = vmax.f32 %v369_v44, 0.0  ;;  %v594_v53 = vsel %vm567_vm2, %v591_v42, %v593_v43  ;;  %v763_v0 = vsel %vm736_vm1, %v760_v49, %v762_v51 }
 0x102   :  { %823 = vrot.lane.b32.xlu1 %v754_v20, %s4982_s2  ;;  %821 = vrot.lane.b32.xlu0 %v752_v24, %s4982_s2  ;;  %v378_v26 = vpop.f32.mrb[19].mxu0  ;;  %v598_v58 = vrot.slane %v5383_v48, 1  ;;  %v384_v59 = vadd.f32 %v4000_v25, %v5276_v62  ;;  %v767_v8 = vrot.slane %v5383_v48, 2 }
 0x103   :  { %v596_v61 = vrot.slane %v5388_v52, 1  ;;  %v379_v63 = vadd.f32 %v5276_v62, %v378_v26  ;;  %v765_v15 = vrot.slane %v5388_v52, 2 }
 0x104   :  { %v506_v6 = vmax.f32 %v384_v59, 0.0 }
 0x105   :  { %v4003_v36 = vpop.f32.mrb[20].mxu0  ;;  %v599_v7 = vsel %vm567_vm2, %v596_v61, %v598_v58  ;;  %v5409_v16 = vmax.f32 %v379_v63, 0.0  ;;  %v597_v17 = vsel %vm567_vm2, %v595_v60, %v596_v61  ;;  %v768_v22 = vsel %vm736_vm1, %v765_v15, %v767_v8 }
 0x106   :  { %658 = vrot.lane.b32.xlu1 %v590_v32, %s4983_s3  ;;  %656 = vrot.lane.b32.xlu0 %v588_v34, %s4983_s3  ;;  %v388_v37 = vpop.f32.mrb[21].mxu0  ;;  %v602_v20 = vrot.slane %v506_v6, 1  ;;  %v394_v21 = vadd.f32 %v4003_v36, %v5276_v62  ;;  %v766_v26 = vsel %vm736_vm1, %v764_v10, %v765_v15  ;;  %v771_v31 = vrot.slane %v506_v6, 2 }
 0x107   :  { %v600_v23 = vrot.slane %v5409_v16, 1  ;;  %v389_v24 = vadd.f32 %v5276_v62, %v388_v37  ;;  %v769_v34 = vrot.slane %v5409_v16, 2 }
 0x108   :  { %v5431_v32 = vmax.f32 %v394_v21, 0.0 }
 0x109   :  { %v4006_v46 = vpop.f32.mrb[22].mxu0  ;;  %v603_v30 = vsel %vm567_vm2, %v600_v23, %v602_v20  ;;  %v5434_v36 = vmax.f32 %v389_v24, 0.0  ;;  %v601_v38 = vsel %vm567_vm2, %v598_v58, %v600_v23  ;;  %v772_v44 = vsel %vm736_vm1, %v769_v34, %v771_v31 }
 0x10a   :  { %827 = vrot.lane.b32.xlu1 %v759_v45, %s4982_s2  ;;  %825 = vrot.lane.b32.xlu0 %v757_v41, %s4982_s2  ;;  %v398_v47 = vpop.f32.mrb[23].mxu0  ;;  %v605_v42 = vrot.slane %v5431_v32, 1  ;;  %v404_v43 = vadd.f32 %v4006_v46, %v5276_v62  ;;  %v770_v51 = vsel %vm736_vm1, %v767_v8, %v769_v34  ;;  %v774_v46 = vrot.slane %v5431_v32, 2 }
 0x10b   :  { %v399_v25 = vadd.f32 %v5276_v62, %v398_v47  ;;  %v604_v45 = vrot.slane %v5434_v36, 1  ;;  %v773_v58 = vrot.slane %v5434_v36, 2 }
 0x10c   :  { %v5460_v59 = vmax.f32 %v404_v43, 0.0 }
 0x10d   :  { %v5392_v56 = vpop.f32.mrb[24].mxu0  ;;  %v5436_v37 = vmax.f32 %v399_v25, 0.0  ;;  %v606_v63 = vsel %vm567_vm2, %v604_v45, %v605_v42  ;;  %v775_v8 = vsel %vm736_vm1, %v773_v58, %v774_v46 }
 0x10e   :  { %662 = vrot.lane.b32.xlu1 %v594_v53, %s4983_s3  ;;  %660 = vrot.lane.b32.xlu0 %v592_v55, %s4983_s3  ;;  %v408_v57 = vpop.f32.mrb[25].mxu0  ;;  %v609_v10 = vrot.slane %v5460_v59, 1 }
 0x10f   :  { %v607_v47 = vrot.slane %v5436_v37, 1  ;;  %v409_v49 = vadd.f32 %v5276_v62, %v408_v57  ;;  %v776_v60 = vrot.slane %v5436_v37, 2 }
 0x111   :  { %v4012_v2 = vpop.f32.mrb[26].mxu0  ;;  %v511_v61 = vmax.f32 %v409_v49, 0.0  ;;  %v608_v57 = vsel %vm567_vm2, %v605_v42, %v607_v47  ;;  %v777_v20 = vsel %vm736_vm1, %v774_v46, %v776_v60 }
 0x112   :  { %831 = vrot.lane.b32.xlu1 %v763_v0, %s4982_s2  ;;  %829 = vrot.lane.b32.xlu0 %v761_v1, %s4982_s2  ;;  %v418_v5 = vpop.f32.mrb[27].mxu0  ;;  %v424_v6 = vadd.f32 %v4012_v2, %v5276_v62 }
 0x113   :  { %v611_v15 = vrot.slane %v511_v61, 1  ;;  %v780_v24 = vrot.slane %v511_v61, 2 }
 0x114   :  { %v5484_v2 = vmax.f32 %v424_v6, 0.0 }
 0x115   :  { %v5412_v18 = vpop.f32.mrb[28].mxu0 }
 0x116   :  { %666 = vrot.lane.b32.xlu1 %v599_v7, %s4983_s3  ;;  %664 = vrot.lane.b32.xlu0 %v597_v17, %s4983_s3  ;;  %v5416_v19 = vpop.f32.mrb[29].mxu0  ;;  %v414_v7 = vadd.f32 %v5392_v56, %v5276_v62  ;;  %v419_v17 = vadd.f32 %v5276_v62, %v418_v5  ;;  %v778_v56 = vrot.slane %v5460_v59, 2  ;;  %v612_v5 = vsel %vm567_vm2, %v609_v10, %v611_v15 }
 0x117   :  { %v434_v31 = vadd.f32 %v5412_v18, %v5276_v62  ;;  %v429_v42 = vadd.f32 %v5276_v62, %v5416_v19  ;;  %v785_v18 = vrot.slane %v5484_v2, 2 }
 0x118   :  { %v5487_v23 = vmax.f32 %v414_v7, 0.0  ;;  %v5489_v25 = vmax.f32 %v419_v17, 0.0  ;;  %v781_v43 = vsel %vm736_vm1, %v778_v56, %v780_v24 }
 0x119   :  { %v5424_v27 = vpop.f32.mrb[30].mxu0  ;;  %v516_v45 = vmax.f32 %v434_v31, 0.0  ;;  %v5510_v46 = vmax.f32 %v429_v42, 0.0 }
 0x11a   :  { %835 = vrot.lane.b32.xlu1 %v768_v22, %s4982_s2  ;;  %833 = vrot.lane.b32.xlu0 %v766_v26, %s4982_s2  ;;  %v5428_v28 = vpop.f32.mrb[31].mxu0  ;;  %v610_v26 = vsel %vm567_vm2, %v607_v47, %v609_v10  ;;  %v613_v34 = vrot.slane %v5487_v23, 1  ;;  %v782_v49 = vrot.slane %v5487_v23, 2 }
 0x11b   :  { %v620_v58 = vrot.slane %v516_v45, 1  ;;  %v789_v10 = vrot.slane %v516_v45, 2  ;;  %v787_v15 = vrot.slane %v5510_v46, 2 }
 0x11d   :  { %v5439_v39 = vpop.f32.mrb[32].mxu0  ;;  %v790_v24 = vsel %vm736_vm1, %v787_v15, %v789_v10 }
 0x11e   :  { %670 = vrot.lane.b32.xlu1 %v603_v30, %s4983_s3  ;;  %668 = vrot.lane.b32.xlu0 %v601_v38, %s4983_s3  ;;  %v5443_v41 = vpop.f32.mrb[33].mxu0  ;;  %v616_v30 = vrot.slane %v5484_v2, 1  ;;  %v614_v38 = vrot.slane %v5489_v25, 1 }
 0x11f   :  { %v449_v6 = vadd.f32 %v5276_v62, %v5443_v41 }
 0x120   :  { %v617_v47 = vsel %vm567_vm2, %v614_v38, %v616_v30  ;;  %v615_v19 = vsel %vm567_vm2, %v613_v34, %v614_v38 }
 0x121   :  { %v5452_v53 = vpop.f32.mrb[34].mxu0 }
 0x122   :  { %839 = vrot.lane.b32.xlu1 %v772_v44, %s4982_s2  ;;  %837 = vrot.lane.b32.xlu0 %v770_v51, %s4982_s2  ;;  %v5456_v55 = vpop.f32.mrb[35].mxu0  ;;  %v779_v44 = vsel %vm736_vm1, %v776_v60, %v778_v56  ;;  %v783_v51 = vrot.slane %v5489_v25, 2  ;;  %v444_v60 = vadd.f32 %v5424_v27, %v5276_v62  ;;  %v454_v56 = vadd.f32 %v5439_v39, %v5276_v62 }
 0x123   :  { %v459_v31 = vadd.f32 %v5276_v62, %v5456_v55 }
 0x124   :  { %v786_v61 = vsel %vm736_vm1, %v783_v51, %v785_v18  ;;  %v784_v7 = vsel %vm736_vm1, %v782_v49, %v783_v51  ;;  %v5527_v27 = vmax.f32 %v444_v60, 0.0  ;;  %v5550_v39 = vmax.f32 %v454_v56, 0.0 }
 0x125   :  { %v5465_v0 = vpop.f32.mrb[36].mxu0 }
 0x126   :  { %674 = vrot.lane.b32.xlu1 %v608_v57, %s4983_s3  ;;  %672 = vrot.lane.b32.xlu0 %v606_v63, %s4983_s3  ;;  %v5469_v1 = vpop.f32.mrb[37].mxu0  ;;  %v618_v57 = vrot.slane %v5510_v46, 1  ;;  %v439_v63 = vadd.f32 %v5276_v62, %v5428_v28  ;;  %v623_v41 = vrot.slane %v5527_v27, 1  ;;  %v792_v34 = vrot.slane %v5527_v27, 2 }
 0x127   :  { %v474_v55 = vadd.f32 %v5465_v0, %v5276_v62  ;;  %v627_v49 = vrot.slane %v5550_v39, 1  ;;  %v796_v0 = vrot.slane %v5550_v39, 2 }
 0x128   :  { %v5530_v17 = vmax.f32 %v439_v63, 0.0  ;;  %v619_v28 = vsel %vm567_vm2, %v616_v30, %v618_v57  ;;  %v788_v30 = vsel %vm736_vm1, %v785_v18, %v787_v15 }
 0x129   :  { %v5478_v21 = vpop.f32.mrb[38].mxu0  ;;  %v5568_v60 = vmax.f32 %v474_v55, 0.0 }
 0x12a   :  { %843 = vrot.lane.b32.xlu1 %v777_v20, %s4982_s2  ;;  %841 = vrot.lane.b32.xlu0 %v775_v8, %s4982_s2  ;;  %v5482_v22 = vpop.f32.mrb[39].mxu0  ;;  %v621_v8 = vsel %vm567_vm2, %v618_v57, %v620_v58  ;;  %v5532_v20 = vmax.f32 %v449_v6, 0.0  ;;  %v791_v38 = vrot.slane %v5530_v17, 2 }
 0x12b   :  { %v479_v15 = vadd.f32 %v5276_v62, %v5482_v22 }
 0x12c   :  { %v794_v42 = vrot.slane %v5532_v20, 2  ;;  %v793_v18 = vsel %vm736_vm1, %v791_v38, %v792_v34 }
 0x12e   :  { %678 = vrot.lane.b32.xlu1 %v612_v5, %s4983_s3  ;;  %676 = vrot.lane.b32.xlu0 %v610_v26, %s4983_s3  ;;  %v622_v5 = vrot.slane %v5530_v17, 1  ;;  %v625_v26 = vrot.slane %v5532_v20, 1  ;;  %v795_v58 = vsel %vm736_vm1, %v792_v34, %v794_v42 }
 0x130   :  { %v624_v45 = vsel %vm567_vm2, %v622_v5, %v623_v41  ;;  %v628_v6 = vsel %vm567_vm2, %v625_v26, %v627_v49  ;;  %v803_v5 = vrot.slane %v5568_v60, 2 }
 0x132   :  { %847 = vrot.lane.b32.xlu1 %v781_v43, %s4982_s2  ;;  %845 = vrot.lane.b32.xlu0 %v779_v44, %s4982_s2  ;;  %v521_v43 = vmax.f32 %v459_v31, 0.0  ;;  %v626_v44 = vsel %vm567_vm2, %v623_v41, %v625_v26  ;;  %v797_v41 = vsel %vm736_vm1, %v794_v42, %v796_v0  ;;  %v5594_v31 = vmax.f32 %v479_v15, 0.0 }
 0x134   :  { %v629_v51 = vrot.slane %v521_v43, 1  ;;  %v636_v38 = vrot.slane %v5594_v31, 1 }
 0x136   :  { %682 = vrot.lane.b32.xlu1 %v617_v47, %s4983_s3  ;;  %680 = vrot.lane.b32.xlu0 %v615_v19, %s4983_s3  ;;  %v464_v47 = vadd.f32 %v5452_v53, %v5276_v62  ;;  %v469_v19 = vadd.f32 %v5276_v62, %v5469_v1  ;;  %v798_v53 = vrot.slane %v521_v43, 2  ;;  %v630_v63 = vsel %vm567_vm2, %v627_v49, %v629_v51 }
 0x137   :  { %v634_v1 = vrot.slane %v5568_v60, 1  ;;  %v805_v51 = vrot.slane %v5594_v31, 2 }
 0x138   :  { %v5573_v57 = vmax.f32 %v469_v19, 0.0 }
 0x139   :  { %v637_v19 = vsel %vm567_vm2, %v634_v1, %v636_v38 }
 0x13a   :  { %851 = vrot.lane.b32.xlu1 %v786_v61, %s4982_s2  ;;  %849 = vrot.lane.b32.xlu0 %v784_v7, %s4982_s2  ;;  %v5571_v61 = vmax.f32 %v464_v47, 0.0  ;;  %v484_v7 = vadd.f32 %v5478_v21, %v5276_v62  ;;  %v632_v10 = vrot.slane %v5573_v57, 1  ;;  %v801_v26 = vrot.slane %v5573_v57, 2 }
 0x13c   :  { %v526_v56 = vmax.f32 %v484_v7, 0.0  ;;  %v800_v21 = vrot.slane %v5571_v61, 2  ;;  %v804_v43 = vsel %vm736_vm1, %v801_v26, %v803_v5 }
 0x13e   :  { %686 = vrot.lane.b32.xlu1 %v621_v8, %s4983_s3  ;;  %684 = vrot.lane.b32.xlu0 %v619_v28, %s4983_s3  ;;  %v631_v8 = vrot.slane %v5571_v61, 1  ;;  %v799_v28 = vsel %vm736_vm1, %v796_v0, %v798_v53  ;;  %v638_v22 = vrot.slane %v526_v56, 1  ;;  %v807_v55 = vrot.slane %v526_v56, 2 }
 0x140   :  { %v633_v62 = vsel %vm567_vm2, %v631_v8, %v632_v10  ;;  %v639_v47 = vsel %vm567_vm2, %v636_v38, %v638_v22  ;;  %v808_v0 = vsel %vm736_vm1, %v805_v51, %v807_v55 }
 0x142   :  { %855 = vrot.lane.b32.xlu1 %v790_v24, %s4982_s2  ;;  %853 = vrot.lane.b32.xlu0 %v788_v30, %s4982_s2  ;;  %v635_v24 = vsel %vm567_vm2, %v632_v10, %v634_v1  ;;  %vm1902_vm2 = vcmask 1043459  }
 0x146   :  { %690 = vrot.lane.b32.xlu1 %v626_v44, %s4983_s3  ;;  %688 = vrot.lane.b32.xlu0 %v624_v45, %s4983_s3  ;;  %v802_v44 = vsel %vm736_vm1, %v800_v21, %v801_v26 }
 0x14a   :  { %859 = vrot.lane.b32.xlu1 %v795_v58, %s4982_s2  ;;  %857 = vrot.lane.b32.xlu0 %v793_v18, %s4982_s2 }
 0x14e   :  { %694 = vrot.lane.b32.xlu1 %v630_v63, %s4983_s3  ;;  %692 = vrot.lane.b32.xlu0 %v628_v6, %s4983_s3  ;;  %v806_v6 = vsel %vm736_vm1, %v803_v5, %v805_v51  ;;  %vm1900_vm1 = vcmask 1042434  }
 0x152   :  { %863 = vrot.lane.b32.xlu1 %v799_v28, %s4982_s2  ;;  %861 = vrot.lane.b32.xlu0 %v797_v41, %s4982_s2 }
 0x156   :  { %698 = vrot.lane.b32.xlu1 %v635_v24, %s4983_s3  ;;  %696 = vrot.lane.b32.xlu0 %v633_v62, %s4983_s3 }
 0x158   :  { %v810_v30 = vpop.permute.xlu1 %809  ;;  %v641_v34 = vpop.permute.xlu0 %640 }
 0x159   :  { %v906_v42 = vsel %vm905_vm3, %v5282_v4, %v641_v34 }
 0x15a   :  { %867 = vrot.lane.b32.xlu1 %v804_v43, %s4982_s2  ;;  %865 = vrot.lane.b32.xlu0 %v802_v44, %s4982_s2  ;;  %v939_v45 = vsel %vm938_vm4, %v906_v42, %v810_v30 }
 0x15b   :  { %4055 = vmatprep.mubr.msk.f32.mxu1 %vm990_vm5, %v939_v45 }
 0x15c   :  { %v812_v18 = vpop.permute.xlu1 %811  ;;  %v643_v49 = vpop.permute.xlu0 %642 }
 0x15d   :  { %v907_v4 = vsel %vm905_vm3, %v5280_v3, %v643_v49 }
 0x15e   :  { %700 = vrot.lane.b32.xlu0 %v637_v19, %s4983_s3  ;;  %702 = vrot.lane.b32.xlu1 %v639_v47, %s4983_s3  ;;  %v940_v58 = vsel %vm938_vm4, %v907_v4, %v812_v18 }
 0x15f   :  { %4056 = vmatmul.mubr.msk.f32.vlgmr.msra.gmra.mrb[0].mxu1 %vm990_vm5, %v940_v58 }
 0x160   :  { %v647_v53 = vpop.permute.xlu1 %646  ;;  %v645_v63 = vpop.permute.xlu0 %644 }
 0x161   :  { %v909_v3 = vsel %vm905_vm3, %v5290_v13, %v647_v53  ;;  %v908_v1 = vsel %vm905_vm3, %v5292_v14, %v645_v63 }
 0x162   :  { %869 = vrot.lane.b32.xlu0 %v806_v6, %s4982_s2  ;;  %871 = vrot.lane.b32.xlu1 %v808_v0, %s4982_s2 }
 0x164   :  { %v816_v7 = vpop.permute.xlu1 %815  ;;  %v814_v8 = vpop.permute.xlu0 %813 }
 0x165   :  { %v942_v10 = vsel %vm938_vm4, %v909_v3, %v816_v7  ;;  %v941_v15 = vsel %vm938_vm4, %v908_v1, %v814_v8 }
 0x166   :  { %4058 = vmatprep.mubr.msk.f32.mxu1 %vm990_vm5, %v941_v15 }
 0x167   :  { %4059 = vmatmul.mubr.msk.f32.gmra.mrb[2].mxu1 %vm990_vm5, %v942_v10 }
 0x168   :  { %v651_v28 = vpop.permute.xlu1 %650  ;;  %v649_v41 = vpop.permute.xlu0 %648 }
 0x169   :  { %v911_v56 = vsel %vm905_vm3, %v5312_v35, %v651_v28  ;;  %v910_v13 = vsel %vm905_vm3, %v5318_v40, %v649_v41 }
 0x16c   :  { %v820_v24 = vpop.permute.xlu1 %819  ;;  %v818_v14 = vpop.permute.xlu0 %817 }
 0x16d   :  { %v944_v21 = vsel %vm938_vm4, %v911_v56, %v820_v24  ;;  %v943_v5 = vsel %vm938_vm4, %v910_v13, %v818_v14 }
 0x16e   :  { %4061 = vmatprep.mubr.msk.f32.mxu1 %vm990_vm5, %v943_v5 }
 0x16f   :  { %4062 = vmatmul.mubr.msk.f32.gmra.mrb[4].mxu1 %vm990_vm5, %v944_v21 }
 0x170   :  { %v655_v26 = vpop.permute.xlu1 %654  ;;  %v653_v62 = vpop.permute.xlu0 %652 }
 0x171   :  { %v913_v22 = vsel %vm905_vm3, %v5332_v54, %v655_v26  ;;  %v912_v35 = vsel %vm905_vm3, %v5310_v33, %v653_v62 }
 0x174   :  { %v824_v30 = vpop.permute.xlu1 %823  ;;  %v822_v40 = vpop.permute.xlu0 %821 }
 0x175   :  { %v946_v34 = vsel %vm938_vm4, %v913_v22, %v824_v30  ;;  %v945_v38 = vsel %vm938_vm4, %v912_v35, %v822_v40 }
 0x176   :  { %4064 = vmatprep.mubr.msk.f32.mxu1 %vm990_vm5, %v945_v38 }
 0x177   :  { %4065 = vmatmul.mubr.msk.f32.gmra.mrb[6].mxu1 %vm990_vm5, %v946_v34 }
 0x178   :  { %v659_v42 = vpop.permute.xlu1 %658  ;;  %v657_v43 = vpop.permute.xlu0 %656 }
 0x179   :  { %v915_v44 = vsel %vm905_vm3, %v5347_v9, %v659_v42  ;;  %v914_v54 = vsel %vm905_vm3, %v5350_v11, %v657_v43 }
 0x17c   :  { %v828_v45 = vpop.permute.xlu1 %827  ;;  %v826_v33 = vpop.permute.xlu0 %825 }
 0x17d   :  { %v948_v55 = vsel %vm938_vm4, %v915_v44, %v828_v45  ;;  %v947_v47 = vsel %vm938_vm4, %v914_v54, %v826_v33 }
 0x17e   :  { %4067 = vmatprep.mubr.msk.f32.mxu1 %vm990_vm5, %v947_v47 }
 0x17f   :  { %4068 = vmatmul.mubr.msk.f32.gmra.mrb[8].mxu1 %vm990_vm5, %v948_v55 }
 0x180   :  { %v663_v18 = vpop.permute.xlu1 %662  ;;  %v661_v49 = vpop.permute.xlu0 %660 }
 0x181   :  { %v917_v51 = vsel %vm905_vm3, %v5368_v29, %v663_v18  ;;  %v916_v9 = vsel %vm905_vm3, %v5352_v12, %v661_v49 }
 0x184   :  { %v832_v4 = vpop.permute.xlu1 %831  ;;  %v830_v11 = vpop.permute.xlu0 %829 }
 0x185   :  { %v950_v19 = vsel %vm938_vm4, %v917_v51, %v832_v4  ;;  %v949_v58 = vsel %vm938_vm4, %v916_v9, %v830_v11 }
 0x186   :  { %4070 = vmatprep.mubr.msk.f32.mxu1 %vm990_vm5, %v949_v58 }
 0x187   :  { %4071 = vmatmul.mubr.msk.f32.gmra.mrb[10].mxu1 %vm990_vm5, %v950_v19 }
 0x188   :  { %v667_v0 = vpop.permute.xlu1 %666  ;;  %v665_v53 = vpop.permute.xlu0 %664 }
 0x189   :  { %v919_v63 = vsel %vm905_vm3, %v5388_v52, %v667_v0  ;;  %v918_v29 = vsel %vm905_vm3, %v5386_v50, %v665_v53 }
 0x18c   :  { %v836_v6 = vpop.permute.xlu1 %835  ;;  %v834_v12 = vpop.permute.xlu0 %833 }
 0x18d   :  { %v952_v3 = vsel %vm938_vm4, %v919_v63, %v836_v6  ;;  %v951_v1 = vsel %vm938_vm4, %v918_v29, %v834_v12 }
 0x18e   :  { %4073 = vmatprep.mubr.msk.f32.mxu1 %vm990_vm5, %v951_v1 }
 0x18f   :  { %4074 = vmatmul.mubr.msk.f32.gmra.mrb[12].mxu1 %vm990_vm5, %v952_v3 }
 0x190   :  { %v671_v7 = vpop.permute.xlu1 %670  ;;  %v669_v8 = vpop.permute.xlu0 %668 }
 0x191   :  { %v921_v10 = vsel %vm905_vm3, %v5409_v16, %v671_v7  ;;  %v920_v52 = vsel %vm905_vm3, %v5383_v48, %v669_v8 }
 0x194   :  { %v840_v15 = vpop.permute.xlu1 %839  ;;  %v838_v50 = vpop.permute.xlu0 %837 }
 0x195   :  { %v954_v28 = vsel %vm938_vm4, %v921_v10, %v840_v15  ;;  %v953_v41 = vsel %vm938_vm4, %v920_v52, %v838_v50 }
 0x196   :  { %4076 = vmatprep.mubr.msk.f32.mxu1 %vm990_vm5, %v953_v41 }
 0x197   :  { %4077 = vmatmul.mubr.msk.f32.gmra.mrb[14].mxu1 %vm990_vm5, %v954_v28 }
 0x198   :  { %v675_v56 = vpop.permute.xlu1 %674  ;;  %v673_v13 = vpop.permute.xlu0 %672 }
 0x199   :  { %v923_v24 = vsel %vm905_vm3, %v5431_v32, %v675_v56  ;;  %v922_v16 = vsel %vm905_vm3, %v5434_v36, %v673_v13 }
 0x19c   :  { %v844_v14 = vpop.permute.xlu1 %843  ;;  %v842_v48 = vpop.permute.xlu0 %841 }
 0x19d   :  { %v956_v21 = vsel %vm938_vm4, %v923_v24, %v844_v14  ;;  %v955_v5 = vsel %vm938_vm4, %v922_v16, %v842_v48  ;;  %v5744_v24 = vld [vmem:[%s7397_s4] ss:$0 sm:$0xff] }
 0x19e   :  { %4079 = vmatprep.mubr.msk.f32.mxu1 %vm990_vm5, %v955_v5 }
 0x19f   :  { %4080 = vmatmul.mubr.msk.f32.gmra.mrb[16].mxu1 %vm990_vm5, %v956_v21 }
 0x1a0   :  { %v679_v26 = vpop.permute.xlu1 %678  ;;  %v677_v62 = vpop.permute.xlu0 %676 }
 0x1a1   :  { %v925_v22 = vsel %vm905_vm3, %v5460_v59, %v679_v26  ;;  %v924_v32 = vsel %vm905_vm3, %v5436_v37, %v677_v62 }
 0x1a4   :  { %v848_v35 = vpop.permute.xlu1 %847  ;;  %v846_v36 = vpop.permute.xlu0 %845 }
 0x1a5   :  { %v958_v30 = vsel %vm938_vm4, %v925_v22, %v848_v35  ;;  %v957_v40 = vsel %vm938_vm4, %v924_v32, %v846_v36 }
 0x1a6   :  { %4082 = vmatprep.mubr.msk.f32.mxu1 %vm990_vm5, %v957_v40 }
 0x1a7   :  { %4083 = vmatmul.mubr.msk.f32.gmra.mrb[18].mxu1 %vm990_vm5, %v958_v30 }
 0x1a8   :  { %v683_v34 = vpop.permute.xlu1 %682  ;;  %v681_v38 = vpop.permute.xlu0 %680 }
 0x1a9   :  { %v927_v42 = vsel %vm905_vm3, %v5489_v25, %v683_v34  ;;  %v926_v59 = vsel %vm905_vm3, %v5487_v23, %v681_v38 }
 0x1ac   :  { %v852_v43 = vpop.permute.xlu1 %851  ;;  %v850_v37 = vpop.permute.xlu0 %849 }
 0x1ad   :  { %v960_v44 = vsel %vm938_vm4, %v927_v42, %v852_v43  ;;  %v959_v54 = vsel %vm938_vm4, %v926_v59, %v850_v37 }
 0x1ae   :  { %4085 = vmatprep.mubr.msk.f32.mxu1 %vm990_vm5, %v959_v54 }
 0x1af   :  { %4086 = vmatmul.mubr.msk.f32.gmra.mrb[20].mxu1 %vm990_vm5, %v960_v44 }
 0x1b0   :  { %v687_v45 = vpop.permute.xlu1 %686  ;;  %v685_v33 = vpop.permute.xlu0 %684 }
 0x1b1   :  { %v929_v55 = vsel %vm905_vm3, %v5510_v46, %v687_v45  ;;  %v928_v25 = vsel %vm905_vm3, %v5484_v2, %v685_v33 }
 0x1b4   :  { %v856_v47 = vpop.permute.xlu1 %855  ;;  %v854_v23 = vpop.permute.xlu0 %853 }
 0x1b5   :  { %v962_v18 = vsel %vm938_vm4, %v929_v55, %v856_v47  ;;  %v961_v49 = vsel %vm938_vm4, %v928_v25, %v854_v23 }
 0x1b6   :  { %4088 = vmatprep.mubr.msk.f32.mxu1 %vm990_vm5, %v961_v49 }
 0x1b7   :  { %4089 = vmatmul.mubr.msk.f32.gmra.mrb[22].mxu1 %vm990_vm5, %v962_v18 }
 0x1b8   :  { %v691_v51 = vpop.permute.xlu1 %690  ;;  %v689_v9 = vpop.permute.xlu0 %688 }
 0x1b9   :  { %v931_v4 = vsel %vm905_vm3, %v5527_v27, %v691_v51  ;;  %v930_v46 = vsel %vm905_vm3, %v5530_v17, %v689_v9 }
 0x1bc   :  { %v860_v11 = vpop.permute.xlu1 %859  ;;  %v858_v2 = vpop.permute.xlu0 %857 }
 0x1bd   :  { %v964_v19 = vsel %vm938_vm4, %v931_v4, %v860_v11  ;;  %v963_v58 = vsel %vm938_vm4, %v930_v46, %v858_v2 }
 0x1be   :  { %4091 = vmatprep.mubr.msk.f32.mxu1 %vm990_vm5, %v963_v58 }
 0x1bf   :  { %4092 = vmatmul.mubr.msk.f32.gmra.mrb[24].mxu1 %vm990_vm5, %v964_v19 }
 0x1c0   :  { %v695_v0 = vpop.permute.xlu1 %694  ;;  %v693_v53 = vpop.permute.xlu0 %692 }
 0x1c1   :  { %v933_v63 = vsel %vm905_vm3, %v5550_v39, %v695_v0  ;;  %v932_v27 = vsel %vm905_vm3, %v5532_v20, %v693_v53 }
 0x1c4   :  { %v864_v29 = vpop.permute.xlu1 %863  ;;  %v862_v17 = vpop.permute.xlu0 %861 }
 0x1c5   :  { %v966_v6 = vsel %vm938_vm4, %v933_v63, %v864_v29  ;;  %v965_v12 = vsel %vm938_vm4, %v932_v27, %v862_v17 }
 0x1c6   :  { %4094 = vmatprep.mubr.msk.f32.mxu1 %vm990_vm5, %v965_v12 }
 0x1c7   :  { %4095 = vmatmul.mubr.msk.f32.gmra.mrb[26].mxu1 %vm990_vm5, %v966_v6 }
 0x1c8   :  { %v699_v3 = vpop.permute.xlu1 %698  ;;  %v697_v1 = vpop.permute.xlu0 %696 }
 0x1c9   :  { %v935_v7 = vsel %vm905_vm3, %v5573_v57, %v699_v3  ;;  %v934_v39 = vsel %vm905_vm3, %v5571_v61, %v697_v1 }
 0x1cc   :  { %v868_v8 = vpop.permute.xlu1 %867  ;;  %v866_v20 = vpop.permute.xlu0 %865 }
 0x1cd   :  { %v968_v10 = vsel %vm938_vm4, %v935_v7, %v868_v8  ;;  %v967_v52 = vsel %vm938_vm4, %v934_v39, %v866_v20 }
 0x1ce   :  { %4097 = vmatprep.mubr.msk.f32.mxu1 %vm990_vm5, %v967_v52 }
 0x1cf   :  { %4098 = vmatmul.mubr.msk.f32.gmra.mrb[28].mxu1 %vm990_vm5, %v968_v10 }
 0x1d0   :  { %v701_v15 = vpop.permute.xlu0 %700  ;;  %v703_v50 = vpop.permute.xlu1 %702 }
 0x1d1   :  { %v937_v28 = vsel %vm905_vm3, %v5594_v31, %v703_v50  ;;  %v936_v57 = vsel %vm905_vm3, %v5568_v60, %v701_v15  ;;  %vm1904_vm3 = vcmask 1044484  }
 0x1d4   :  { %v870_v41 = vpop.permute.xlu0 %869  ;;  %v872_v61 = vpop.permute.xlu1 %871 }
 0x1d5   :  { %v969_v56 = vsel %vm938_vm4, %v936_v57, %v870_v41  ;;  %v970_v13 = vsel %vm938_vm4, %v937_v28, %v872_v61 }
 0x1d6   :  { %4100 = vmatprep.mubr.msk.f32.mxu1 %vm990_vm5, %v969_v56 }
 0x1d7   :  { %4101 = vmatmul.mubr.msk.f32.gmra.mrb[30].mxu1 %vm990_vm5, %v970_v13  ;;  %vm1906_vm5 = vcmask 1045509  }
 0x232   :  { %v4057_v16 = vpop.f32.mrb[0].mxu1 }
 0x233   :  { %v1159_v31 = vadd.f32 %v4057_v16, %v5744_v24  ;;  %v1153_v14 = vpop.f32.mrb[1].mxu1 }
 0x234   :  { %v1154_v60 = vadd.f32 %v5744_v24, %v1153_v14 }
 0x235   :  { %v1313_v48 = vmax.f32 %v1159_v31, 0.0 }
 0x236   :  { %v1312_v21 = vmax.f32 %v1154_v60, 0.0 }
 0x237   :  { %v1533_v5 = vsel %vm1532_vm6, %v1313_v48, -inf  ;;  %v1590_v26 = vsel %vm1589_vm7, %v1313_v48, -inf  ;;  %v1461_v62 = vsel %vm1460_vm8, %v1313_v48, -inf  ;;  %v1647_v63 = vsel %vm1646_vm14, %v1313_v48, -inf }
 0x238   :  { %v1534_v22 = vrot.slane %v1533_v5, 4  ;;  %v1591_v32 = vrot.slane %v1590_v26, 4  ;;  %v1345_v35 = vsel %vm1344_vm9, %v1312_v21, -inf  ;;  %v1402_v36 = vsel %vm1401_vm10, %v1312_v21, -inf }
 0x239   :  { %v1346_v30 = vrot.slane %v1345_v35, 4  ;;  %v1403_v40 = vrot.slane %v1402_v36, 4  ;;  %v1459_v34 = vsel %vm1458_vm11, %v1312_v21, -inf }
 0x23a   :  { %v1535_v38 = vmax.f32 %v1533_v5, %v1534_v22  ;;  %v1592_v42 = vmax.f32 %v1590_v26, %v1591_v32  ;;  %v1462_v59 = vmax.f32 %v1459_v34, %v1461_v62  ;;  %v4060_v43 = vpop.f32.mrb[2].mxu1 }
 0x23b   :  { %v1347_v37 = vmax.f32 %v1345_v35, %v1346_v30  ;;  %v1404_v44 = vmax.f32 %v1402_v36, %v1403_v40  ;;  %v1169_v54 = vadd.f32 %v4060_v43, %v5744_v24  ;;  %v1163_v45 = vpop.f32.mrb[3].mxu1 }
 0x23c   :  { %v1536_v33 = vrot.slane %v1535_v38, 2  ;;  %v1463_v55 = vrot.slane %v1462_v59, 4  ;;  %v1164_v25 = vadd.f32 %v5744_v24, %v1163_v45  ;;  %v1593_v23 = vrot.slane %v1592_v42, 2 }
 0x23d   :  { %v1315_v47 = vmax.f32 %v1169_v54, 0.0  ;;  %v1348_v51 = vrot.slane %v1347_v37, 2  ;;  %v1405_v9 = vrot.slane %v1404_v44, 2 }
 0x23e   :  { %v1464_v18 = vmax.f32 %v1462_v59, %v1463_v55  ;;  %v1314_v49 = vmax.f32 %v1164_v25, 0.0  ;;  %v1537_v46 = vmax.f32 %v1535_v38, %v1536_v33  ;;  %v1594_v58 = vmax.f32 %v1592_v42, %v1593_v23 }
 0x23f   :  { %v1834_v4 = vsel %vm1344_vm9, %v1315_v47, -inf  ;;  %v1349_v29 = vmax.f32 %v1347_v37, %v1348_v51  ;;  %v1406_v17 = vmax.f32 %v1404_v44, %v1405_v9 }
 0x240   :  { %v1835_v11 = vrot.slane %v1834_v4, 4  ;;  %v1649_v2 = vsel %vm1648_vm12, %v1314_v49, -inf  ;;  %v1721_v19 = vsel %vm1720_vm13, %v1314_v49, -inf  ;;  %v1465_v0 = vrot.slane %v1464_v18, 2 }
 0x241   :  { %v1650_v6 = vmax.f32 %v1647_v63, %v1649_v2  ;;  %v1722_v12 = vrot.slane %v1721_v19, 4  ;;  %v1538_v1 = vrot.slane %v1537_v46, 1  ;;  %v1778_v39 = vsel %vm1777_vm15, %v1314_v49, -inf }
 0x242   :  { %v1836_v53 = vmax.f32 %v1834_v4, %v1835_v11  ;;  %v4063_v27 = vpop.f32.mrb[4].mxu1  ;;  %v1779_v52 = vrot.slane %v1778_v39, 4  ;;  %v1595_v50 = vrot.slane %v1594_v58, 1  ;;  %v1466_v28 = vmax.f32 %v1464_v18, %v1465_v0 }
 0x243   :  { %v1173_v3 = vpop.f32.mrb[5].mxu1  ;;  %v1179_v8 = vadd.f32 %v4063_v27, %v5744_v24  ;;  %v1651_v20 = vrot.slane %v1650_v6, 4  ;;  %v1723_v10 = vmax.f32 %v1721_v19, %v1722_v12  ;;  %v1350_v16 = vrot.slane %v1349_v29, 1 }
 0x244   :  { %v1837_v7 = vrot.slane %v1836_v53, 2  ;;  %v1174_v15 = vadd.f32 %v5744_v24, %v1173_v3  ;;  %v1780_v56 = vmax.f32 %v1778_v39, %v1779_v52  ;;  %v5764_v60 = vmax.f32 %v1537_v46, %v1538_v1 }
 0x245   :  { %v1317_v57 = vmax.f32 %v1179_v8, 0.0  ;;  %v1652_v41 = vmax.f32 %v1650_v6, %v1651_v20  ;;  %v1724_v61 = vrot.slane %v1723_v10, 2  ;;  %v1407_v48 = vrot.slane %v1406_v17, 1 }
 0x246   :  { %v1316_v13 = vmax.f32 %v1174_v15, 0.0  ;;  %v1838_v31 = vmax.f32 %v1836_v53, %v1837_v7  ;;  %v1781_v26 = vrot.slane %v1780_v56, 2  ;;  %v5769_v36 = vmax.f32 %v1594_v58, %v1595_v50 }
 0x247   :  { %v1540_v14 = vsel %vm1532_vm6, %v1317_v57, -inf  ;;  %v1653_v21 = vrot.slane %v1652_v41, 2  ;;  %v1725_v5 = vmax.f32 %v1723_v10, %v1724_v61  ;;  %v1597_v62 = vsel %vm1589_vm7, %v1317_v57, -inf }
 0x248   :  { %v1352_v22 = vsel %vm1344_vm9, %v1316_v13, -inf  ;;  %v1409_v32 = vsel %vm1401_vm10, %v1316_v13, -inf  ;;  %v1467_v30 = vrot.slane %v1466_v28, 1  ;;  %v1541_v40 = vrot.slane %v1540_v14, 4 }
 0x249   :  { %v1470_v34 = vsel %vm1460_vm8, %v1317_v57, -inf  ;;  %v1839_v42 = vrot.slane %v1838_v31, 1  ;;  %v1353_v59 = vrot.slane %v1352_v22, 4  ;;  %v1410_v43 = vrot.slane %v1409_v32, 4 }
 0x24a   :  { %v4066_v35 = vpop.f32.mrb[6].mxu1  ;;  %v1469_v37 = vsel %vm1458_vm11, %v1316_v13, -inf  ;;  %v1351_v44 = vmax.f32 %v1349_v29, %v1350_v16  ;;  %v5773_v54 = vmax.f32 %v1652_v41, %v1653_v21  ;;  %v1726_v45 = vrot.slane %v1725_v5, 1 }
 0x24b   :  { %v1183_v38 = vpop.f32.mrb[7].mxu1  ;;  %v1598_v33 = vrot.slane %v1597_v62, 4  ;;  %v1782_v55 = vmax.f32 %v1780_v56, %v1781_v26  ;;  %v1354_v25 = vmax.f32 %v1352_v22, %v1353_v59  ;;  %v1411_v47 = vmax.f32 %v1409_v32, %v1410_v43 }
 0x24c   :  { %v1471_v23 = vmax.f32 %v1469_v37, %v1470_v34  ;;  %v1408_v18 = vmax.f32 %v1406_v17, %v1407_v48  ;;  %v5775_v49 = vmax.f32 %v1466_v28, %v1467_v30  ;;  %v1542_v51 = vmax.f32 %v1540_v14, %v1541_v40 }
 0x24d   :  { %v1189_v9 = vadd.f32 %v4066_v35, %v5744_v24  ;;  %v5778_v4 = vmax.f32 %v1838_v31, %v1839_v42  ;;  %v1355_v46 = vrot.slane %v1354_v25, 2  ;;  %v1412_v11 = vrot.slane %v1411_v47, 2 }
 0x24e   :  { %v1472_v2 = vrot.slane %v1471_v23, 4  ;;  %v1655_v19 = vrot.slane %v5773_v54, 1  ;;  %v1599_v58 = vmax.f32 %v1597_v62, %v1598_v33  ;;  %v1184_v53 = vadd.f32 %v5744_v24, %v1183_v38 }
 0x24f   :  { %v1319_v0 = vmax.f32 %v1189_v9, 0.0  ;;  %v5782_v63 = vmax.f32 %v1725_v5, %v1726_v45  ;;  %v1783_v27 = vrot.slane %v1782_v55, 1  ;;  %v1356_v29 = vmax.f32 %v1354_v25, %v1355_v46 }
 0x250   :  { %v1413_v17 = vmax.f32 %v1411_v47, %v1412_v11  ;;  %v1543_v12 = vrot.slane %v1542_v51, 2  ;;  %v1318_v1 = vmax.f32 %v1184_v53, 0.0  ;;  %v1473_v10 = vmax.f32 %v1471_v23, %v1472_v2 }
 0x251   :  { %v1841_v3 = vsel %vm1344_vm9, %v1319_v0, -inf  ;;  %v1357_v8 = vrot.slane %v1356_v29, 1  ;;  %v1657_v52 = vsel %vm1646_vm14, %v1317_v57, -inf  ;;  %v1600_v61 = vrot.slane %v1599_v58, 2 }
 0x252   :  { %v4069_v6 = vpop.f32.mrb[8].mxu1  ;;  %v1414_v20 = vrot.slane %v1413_v17, 1  ;;  %v1842_v15 = vrot.slane %v1841_v3, 4  ;;  %v1658_v50 = vsel %vm1648_vm12, %v1318_v1, -inf  ;;  %v1728_v28 = vsel %vm1720_vm13, %v1318_v1, -inf }
 0x253   :  { %v1199_v7 = vadd.f32 %v4069_v6, %v5744_v24  ;;  %v1193_v39 = vpop.f32.mrb[9].mxu1  ;;  %v1785_v41 = vsel %vm1777_vm15, %v1318_v1, -inf  ;;  %v1358_v56 = vmax.f32 %v1356_v29, %v1357_v8  ;;  %v1659_v16 = vmax.f32 %v1657_v52, %v1658_v50 }
 0x254   :  { %v1415_v13 = vmax.f32 %v1413_v17, %v1414_v20  ;;  %v1843_v31 = vmax.f32 %v1841_v3, %v1842_v15  ;;  %v1729_v14 = vrot.slane %v1728_v28, 4  ;;  %v1786_v48 = vrot.slane %v1785_v41, 4 }
 0x255   :  { %v5790_v21 = vmax.f32 %v1199_v7, 0.0  ;;  %v1544_v5 = vmax.f32 %v1542_v51, %v1543_v12  ;;  %v1474_v26 = vrot.slane %v1473_v10, 2  ;;  %v5793_v57 = vsel %vm1898_vm0, %v1358_v56, %v1351_v44 }
 0x256   :  { %v5796_v62 = vsel %vm1898_vm0, %v1415_v13, %v1408_v18  ;;  %v1844_v22 = vrot.slane %v1843_v31, 2  ;;  %v1730_v32 = vmax.f32 %v1728_v28, %v1729_v14  ;;  %v1787_v35 = vmax.f32 %v1785_v41, %v1786_v48 }
 0x257   :  { %v1547_v30 = vsel %vm1532_vm6, %v5790_v21, -inf  ;;  %v1601_v40 = vmax.f32 %v1599_v58, %v1600_v61  ;;  %v1660_v34 = vrot.slane %v1659_v16, 4  ;;  %v1604_v42 = vsel %vm1589_vm7, %v5790_v21, -inf }
 0x258   :  { %v1548_v38 = vrot.slane %v1547_v30, 4  ;;  %v1845_v43 = vmax.f32 %v1843_v31, %v1844_v22  ;;  %v1731_v37 = vrot.slane %v1730_v32, 2  ;;  %v1788_v44 = vrot.slane %v1787_v35, 2 }
 0x259   :  { %v1605_v45 = vrot.slane %v1604_v42, 4  ;;  %v5803_v25 = vmax.f32 %v5773_v54, %v1655_v19  ;;  %v1784_v47 = vmax.f32 %v1782_v55, %v1783_v27  ;;  %v1475_v23 = vmax.f32 %v1473_v10, %v1474_v26 }
 0x25a   :  { %v4072_v59 = vpop.f32.mrb[10].mxu1  ;;  %v1194_v18 = vadd.f32 %v5744_v24, %v1193_v39  ;;  %v1545_v51 = vrot.slane %v1544_v5, 1  ;;  %v1846_v9 = vrot.slane %v1845_v43, 1  ;;  %v1732_v46 = vmax.f32 %v1730_v32, %v1731_v37 }
 0x25b   :  { %v1203_v33 = vpop.f32.mrb[11].mxu1  ;;  %7417 = vst [vmem:[#allocation5_spill] sm:$0xff] %v5803_v25  ;;  %v1789_v11 = vmax.f32 %v1787_v35, %v1788_v44  ;;  %v1602_v2 = vrot.slane %v1601_v40, 1  ;;  %v1661_v58 = vmax.f32 %v1659_v16, %v1660_v34  ;;  %v1549_v0 = vmax.f32 %v1547_v30, %v1548_v38 }
 0x25c   :  { %v1320_v53 = vmax.f32 %v1194_v18, 0.0  ;;  %v1847_v29 = vmax.f32 %v1845_v43, %v1846_v9  ;;  %v1733_v17 = vrot.slane %v1732_v46, 1  ;;  %v1606_v12 = vmax.f32 %v1604_v42, %v1605_v45 }
 0x25d   :  { %v1790_v6 = vrot.slane %v1789_v11, 1  ;;  %v1476_v3 = vrot.slane %v1475_v23, 1  ;;  %v1479_v19 = vsel %vm1460_vm8, %v5790_v21, -inf  ;;  %v1209_v39 = vadd.f32 %v4072_v59, %v5744_v24 }
 0x25e   :  { %v1359_v54 = vsel %vm1344_vm9, %v1320_v53, -inf  ;;  %v1416_v55 = vsel %vm1401_vm10, %v1320_v53, -inf  ;;  %v5812_v27 = vsel %vm1898_vm0, %v1847_v29, %v5778_v4  ;;  %v1734_v1 = vmax.f32 %v1732_v46, %v1733_v17 }
 0x25f   :  { %v1791_v7 = vmax.f32 %v1789_v11, %v1790_v6  ;;  %v1662_v8 = vrot.slane %v1661_v58, 2  ;;  %v1550_v20 = vrot.slane %v1549_v0, 2  ;;  %v1360_v10 = vrot.slane %v1359_v54, 4 }
 0x260   :  { %v1417_v52 = vrot.slane %v1416_v55, 4  ;;  %v5817_v50 = vsel %vm1898_vm0, %v1734_v1, %v5782_v63  ;;  %v1607_v41 = vrot.slane %v1606_v12, 2  ;;  %v1478_v4 = vsel %vm1458_vm11, %v1320_v53, -inf }
 0x261   :  { %v5820_v28 = vsel %vm1898_vm0, %v1791_v7, %v1784_v47  ;;  %v5823_v56 = vmax.f32 %v1544_v5, %v1545_v51  ;;  %v1361_v13 = vmax.f32 %v1359_v54, %v1360_v10  ;;  %v1480_v31 = vmax.f32 %v1478_v4, %v1479_v19 }
 0x262   :  { %v4075_v15 = vpop.f32.mrb[12].mxu1  ;;  %7418 = vst [vmem:[#allocation6_spill] sm:$0xff] %v5820_v28  ;;  %v1418_v16 = vmax.f32 %v1416_v55, %v1417_v52  ;;  %v5825_v14 = vmax.f32 %v1601_v40, %v1602_v2  ;;  %v5827_v48 = vmax.f32 %v1475_v23, %v1476_v3  ;;  %v1323_v26 = vmax.f32 %v1209_v39, 0.0 }
 0x263   :  { %v1213_v61 = vpop.f32.mrb[13].mxu1  ;;  %v1204_v63 = vadd.f32 %v5744_v24, %v1203_v33  ;;  %v5830_v22 = vmax.f32 %v1661_v58, %v1662_v8  ;;  %v1362_v32 = vrot.slane %v1361_v13, 2  ;;  %v1481_v35 = vrot.slane %v1480_v31, 4 }
 0x264   :  { %v1219_v30 = vadd.f32 %v4075_v15, %v5744_v24  ;;  %v1551_v34 = vmax.f32 %v1549_v0, %v1550_v20  ;;  %v1608_v38 = vmax.f32 %v1606_v12, %v1607_v41  ;;  %v1848_v5 = vsel %vm1344_vm9, %v1323_v26, -inf }
 0x265   :  { %v1322_v42 = vmax.f32 %v1204_v63, 0.0  ;;  %v1363_v59 = vmax.f32 %v1361_v13, %v1362_v32  ;;  %v1419_v43 = vrot.slane %v1418_v16, 2  ;;  %v1482_v40 = vmax.f32 %v1480_v31, %v1481_v35 }
 0x266   :  { %v1849_v37 = vrot.slane %v1848_v5, 4  ;;  %v5837_v47 = vmax.f32 %v1219_v30, 0.0  ;;  %v1666_v9 = vsel %vm1646_vm14, %v5790_v21, -inf  ;;  %v1214_v12 = vadd.f32 %v5744_v24, %v1213_v61 }
 0x267   :  { %v1667_v44 = vsel %vm1648_vm12, %v1322_v42, -inf  ;;  %v1735_v45 = vsel %vm1720_vm13, %v1322_v42, -inf  ;;  %v1792_v33 = vsel %vm1777_vm15, %v1322_v42, -inf  ;;  %v1364_v23 = vrot.slane %v1363_v59, 1 }
 0x268   :  { %v1483_v18 = vrot.slane %v1482_v40, 2  ;;  %v1850_v51 = vmax.f32 %v1848_v5, %v1849_v37  ;;  %v1668_v11 = vmax.f32 %v1666_v9, %v1667_v44  ;;  %v1736_v2 = vrot.slane %v1735_v45, 4 }
 0x269   :  { %v1793_v58 = vrot.slane %v1792_v33, 4  ;;  %v1554_v0 = vsel %vm1532_vm6, %v5837_v47, -inf  ;;  %v1365_v29 = vmax.f32 %v1363_v59, %v1364_v23  ;;  %v1420_v17 = vmax.f32 %v1418_v16, %v1419_v43 }
 0x26a   :  { %v4078_v46 = vpop.f32.mrb[14].mxu1  ;;  %v1851_v6 = vrot.slane %v1850_v51, 2  ;;  %v1669_v3 = vrot.slane %v1668_v11, 4  ;;  %v1737_v54 = vmax.f32 %v1735_v45, %v1736_v2  ;;  %v1555_v19 = vrot.slane %v1554_v0, 4 }
 0x26b   :  { %v1223_v53 = vpop.f32.mrb[15].mxu1  ;;  %v1794_v55 = vmax.f32 %v1792_v33, %v1793_v58  ;;  %v1484_v1 = vmax.f32 %v1482_v40, %v1483_v18  ;;  %v5846_v21 = vsel %vm1900_vm1, %v1365_v29, %v5793_v57  ;;  %v1611_v39 = vsel %vm1589_vm7, %v5837_v47, -inf }
 0x26c   :  { %7419 = vst [vmem:[#allocation7_spill] sm:$0xff] %v5846_v21  ;;  %v1852_v7 = vmax.f32 %v1850_v51, %v1851_v6  ;;  %v1670_v8 = vmax.f32 %v1668_v11, %v1669_v3  ;;  %v1738_v20 = vrot.slane %v1737_v54, 2  ;;  %v1556_v52 = vmax.f32 %v1554_v0, %v1555_v19 }
 0x26d   :  { %v1795_v10 = vrot.slane %v1794_v55, 2  ;;  %v1664_v15 = vrot.slane %v5830_v22, 1  ;;  %v1612_v4 = vrot.slane %v1611_v39, 4  ;;  %v1324_v61 = vmax.f32 %v1214_v12, 0.0 }
 0x26e   :  { %v1853_v41 = vrot.slane %v1852_v7, 1  ;;  %v1552_v13 = vrot.slane %v1551_v34, 1  ;;  %v1609_v16 = vrot.slane %v1608_v38, 1  ;;  %v1671_v31 = vrot.slane %v1670_v8, 2 }
 0x26f   :  { %v1739_v26 = vmax.f32 %v1737_v54, %v1738_v20  ;;  %v1557_v57 = vrot.slane %v1556_v52, 2  ;;  %v1366_v32 = vsel %vm1344_vm9, %v1324_v61, -inf  ;;  %v1423_v35 = vsel %vm1401_vm10, %v1324_v61, -inf }
 0x270   :  { %v1854_v63 = vmax.f32 %v1852_v7, %v1853_v41  ;;  %v1421_v5 = vrot.slane %v1420_v17, 1  ;;  %v1485_v42 = vrot.slane %v1484_v1, 1  ;;  %v5853_v59 = vmax.f32 %v1794_v55, %v1795_v10 }
 0x271   :  { %v1613_v43 = vmax.f32 %v1611_v39, %v1612_v4  ;;  %v5859_v44 = vmax.f32 %v1670_v8, %v1671_v31  ;;  %v1367_v45 = vrot.slane %v1366_v32, 4  ;;  %v1424_v33 = vrot.slane %v1423_v35, 4 }
 0x272   :  { %v4081_v30 = vpop.f32.mrb[16].mxu1  ;;  %v5857_v37 = vsel %vm1900_vm1, %v1854_v63, %v5812_v27  ;;  %v5862_v23 = vmax.f32 %v5830_v22, %v1664_v15  ;;  %v5864_v18 = vmax.f32 %v1551_v34, %v1552_v13  ;;  %v5866_v51 = vmax.f32 %v1608_v38, %v1609_v16 }
 0x273   :  { %v1233_v40 = vpop.f32.mrb[17].mxu1  ;;  %7420 = vst [vmem:[#allocation8_spill] sm:$0xff] %v5857_v37  ;;  %v1740_v9 = vrot.slane %v1739_v26, 1  ;;  %v5868_v11 = vmax.f32 %v1556_v52, %v1557_v57  ;;  %v1368_v2 = vmax.f32 %v1366_v32, %v1367_v45  ;;  %v1425_v58 = vmax.f32 %v1423_v35, %v1424_v33 }
 0x274   :  { %7421 = vst [vmem:[#allocation9_spill] sm:$0xff] %v5862_v23  ;;  %v1487_v0 = vsel %vm1458_vm11, %v1324_v61, -inf  ;;  %v5871_v27 = vmax.f32 %v1420_v17, %v1421_v5  ;;  %v1614_v29 = vrot.slane %v1613_v43, 2  ;;  %v1488_v6 = vsel %vm1460_vm8, %v5837_v47, -inf }
 0x275   :  { %v1229_v22 = vadd.f32 %v4078_v46, %v5744_v24  ;;  %v5876_v12 = vmax.f32 %v1484_v1, %v1485_v42  ;;  %v1673_v34 = vrot.slane %v5859_v44, 1  ;;  %v1797_v38 = vrot.slane %v5853_v59, 1 }
 0x276   :  { %v1489_v3 = vmax.f32 %v1487_v0, %v1488_v6  ;;  %v5880_v54 = vmax.f32 %v1739_v26, %v1740_v9  ;;  %v1224_v19 = vadd.f32 %v5744_v24, %v1223_v53  ;;  %v1239_v17 = vadd.f32 %v4081_v30, %v5744_v24 }
 0x277   :  { %v1327_v55 = vmax.f32 %v1229_v22, 0.0  ;;  %v1559_v7 = vrot.slane %v5868_v11, 1  ;;  %v1369_v39 = vrot.slane %v1368_v2, 2  ;;  %v1426_v8 = vrot.slane %v1425_v58, 2 }
 0x278   :  { %v1490_v20 = vrot.slane %v1489_v3, 4  ;;  %v1615_v1 = vmax.f32 %v1613_v43, %v1614_v29  ;;  %v1326_v52 = vmax.f32 %v1224_v19, 0.0  ;;  %v5888_v15 = vmax.f32 %v1239_v17, 0.0 }
 0x279   :  { %v1855_v10 = vsel %vm1344_vm9, %v1327_v55, -inf  ;;  %v1675_v53 = vsel %vm1646_vm14, %v5837_v47, -inf  ;;  %v1234_v13 = vadd.f32 %v5744_v24, %v1233_v40  ;;  %v1370_v57 = vmax.f32 %v1368_v2, %v1369_v39 }
 0x27a   :  { %v5885_v46 = vpop.f32.mrb[18].mxu1  ;;  %v1491_v4 = vmax.f32 %v1489_v3, %v1490_v20  ;;  %v1856_v61 = vrot.slane %v1855_v10, 4  ;;  %v1676_v16 = vsel %vm1648_vm12, %v1326_v52, -inf  ;;  %v1742_v31 = vsel %vm1720_vm13, %v1326_v52, -inf }
 0x27b   :  { %v5890_v41 = vpop.f32.mrb[19].mxu1  ;;  %v1799_v26 = vsel %vm1777_vm15, %v1326_v52, -inf  ;;  %v1561_v63 = vsel %vm1532_vm6, %v5888_v15, -inf  ;;  %v1427_v32 = vmax.f32 %v1425_v58, %v1426_v8  ;;  %v1677_v5 = vmax.f32 %v1675_v53, %v1676_v16 }
 0x27c   :  { %v1492_v35 = vrot.slane %v1491_v4, 2  ;;  %v1857_v30 = vmax.f32 %v1855_v10, %v1856_v61  ;;  %v1743_v42 = vrot.slane %v1742_v31, 4  ;;  %v1800_v43 = vrot.slane %v1799_v26, 4 }
 0x27d   :  { %v1562_v45 = vrot.slane %v1561_v63, 4  ;;  %v1618_v40 = vsel %vm1589_vm7, %v5888_v15, -inf  ;;  %v1328_v9 = vmax.f32 %v1234_v13, 0.0  ;;  %v1678_v0 = vrot.slane %v1677_v5, 4 }
 0x27e   :  { %v1493_v47 = vmax.f32 %v1491_v4, %v1492_v35  ;;  %v1858_v33 = vrot.slane %v1857_v30, 2  ;;  %v1744_v29 = vmax.f32 %v1742_v31, %v1743_v42  ;;  %v1801_v6 = vmax.f32 %v1799_v26, %v1800_v43 }
 0x27f   :  { %v1563_v22 = vmax.f32 %v1561_v63, %v1562_v45  ;;  %v1616_v3 = vrot.slane %v1615_v1, 1  ;;  %v1619_v2 = vrot.slane %v1618_v40, 4  ;;  %v1373_v58 = vsel %vm1344_vm9, %v1328_v9, -inf }
 0x280   :  { %v1859_v55 = vmax.f32 %v1857_v30, %v1858_v33  ;;  %v1679_v17 = vmax.f32 %v1677_v5, %v1678_v0  ;;  %v1745_v39 = vrot.slane %v1744_v29, 2  ;;  %v1802_v8 = vrot.slane %v1801_v6, 2 }
 0x281   :  { %v1564_v20 = vrot.slane %v1563_v22, 2  ;;  %v5904_v52 = vmax.f32 %v5853_v59, %v1797_v38  ;;  %v1371_v4 = vrot.slane %v1370_v57, 1  ;;  %v1620_v61 = vmax.f32 %v1618_v40, %v1619_v2 }
 0x282   :  { %v4087_v19 = vpop.f32.mrb[20].mxu1  ;;  %v1374_v53 = vrot.slane %v1373_v58, 4  ;;  %v1428_v13 = vrot.slane %v1427_v32, 1  ;;  %v1494_v16 = vrot.slane %v1493_v47, 1  ;;  %v1680_v31 = vrot.slane %v1679_v17, 2 }
 0x283   :  { %v1253_v10 = vpop.f32.mrb[21].mxu1  ;;  %7422 = vst [vmem:[#allocation10_spill] sm:$0xff] %v5904_v52  ;;  %v1746_v26 = vmax.f32 %v1744_v29, %v1745_v39  ;;  %v5907_v63 = vmax.f32 %v5859_v44, %v1673_v34  ;;  %v1860_v35 = vrot.slane %v1859_v55, 1  ;;  %v1803_v30 = vmax.f32 %v1801_v6, %v1802_v8 }
 0x284   :  { %v1430_v5 = vsel %vm1401_vm10, %v1328_v9, -inf  ;;  %v5911_v42 = vmax.f32 %v5868_v11, %v1559_v7  ;;  %v5913_v43 = vmax.f32 %v1615_v1, %v1616_v3  ;;  %v5915_v59 = vmax.f32 %v1563_v22, %v1564_v20 }
 0x285   :  { %7423 = vst [vmem:[#allocation11_spill] sm:$0xff] %v5907_v63  ;;  %v1621_v38 = vrot.slane %v1620_v61, 2  ;;  %v5917_v45 = vmax.f32 %v1679_v17, %v1680_v31  ;;  %v1375_v33 = vmax.f32 %v1373_v58, %v1374_v53  ;;  %v1431_v40 = vrot.slane %v1430_v5, 4 }
 0x286   :  { %v1496_v0 = vsel %vm1458_vm11, %v1328_v9, -inf  ;;  %v5920_v44 = vmax.f32 %v1370_v57, %v1371_v4  ;;  %v5922_v34 = vmax.f32 %v1427_v32, %v1428_v13  ;;  %v5924_v29 = vmax.f32 %v1493_v47, %v1494_v16 }
 0x287   :  { %v1747_v6 = vrot.slane %v1746_v26, 1  ;;  %v5926_v11 = vmax.f32 %v1859_v55, %v1860_v35  ;;  %v1804_v7 = vrot.slane %v1803_v30, 1  ;;  %v1432_v1 = vmax.f32 %v1430_v5, %v1431_v40 }
 0x288   :  { %7424 = vst [vmem:[#allocation12_spill] sm:$0xff] %v5920_v44  ;;  %v1497_v22 = vsel %vm1460_vm8, %v5888_v15, -inf  ;;  %v1566_v2 = vrot.slane %v5915_v59, 1  ;;  %v1249_v57 = vadd.f32 %v5885_v46, %v5744_v24  ;;  %v1244_v32 = vadd.f32 %v5744_v24, %v5890_v41 }
 0x289   :  { %7425 = vst [vmem:[#allocation13_spill] sm:$0xff] %v5926_v11  ;;  %v1498_v58 = vmax.f32 %v1496_v0, %v1497_v22  ;;  %v1682_v9 = vrot.slane %v5917_v45, 1  ;;  %v5938_v55 = vmax.f32 %v1620_v61, %v1621_v38  ;;  %v1376_v17 = vrot.slane %v1375_v33, 2 }
 0x28a   :  { %v4090_v3 = vpop.f32.mrb[22].mxu1  ;;  %v1259_v39 = vadd.f32 %v4087_v19, %v5744_v24  ;;  %v5941_v8 = vmax.f32 %v1746_v26, %v1747_v6  ;;  %v1331_v4 = vmax.f32 %v1249_v57, 0.0  ;;  %v1330_v53 = vmax.f32 %v1244_v32, 0.0 }
 0x28b   :  { %v5935_v47 = vpop.f32.mrb[23].mxu1  ;;  %v1499_v20 = vrot.slane %v1498_v58, 4  ;;  %v5943_v13 = vmax.f32 %v1803_v30, %v1804_v7  ;;  %v1433_v46 = vrot.slane %v1432_v1, 2  ;;  %v1684_v41 = vsel %vm1646_vm14, %v5888_v15, -inf }
 0x28c   :  { %v5947_v16 = vmax.f32 %v1259_v39, 0.0  ;;  %v1862_v61 = vsel %vm1344_vm9, %v1331_v4, -inf  ;;  %v1685_v35 = vsel %vm1648_vm12, %v1330_v53, -inf  ;;  %v1749_v19 = vsel %vm1720_vm13, %v1330_v53, -inf }
 0x28d   :  { %7426 = vst [vmem:[#allocation14_spill] sm:$0xff] %v5943_v13  ;;  %v1500_v31 = vmax.f32 %v1498_v58, %v1499_v20  ;;  %v1863_v26 = vrot.slane %v1862_v61, 4  ;;  %v1686_v5 = vmax.f32 %v1684_v41, %v1685_v35  ;;  %v1750_v38 = vrot.slane %v1749_v19, 4 }
 0x28e   :  { %v1254_v40 = vadd.f32 %v5744_v24, %v1253_v10  ;;  %v1806_v0 = vsel %vm1777_vm15, %v1330_v53, -inf  ;;  %v1568_v15 = vsel %vm1532_vm6, %v5947_v16, -inf  ;;  %v1625_v6 = vsel %vm1589_vm7, %v5947_v16, -inf }
 0x28f   :  { %v1501_v30 = vrot.slane %v1500_v31, 2  ;;  %v1434_v7 = vmax.f32 %v1432_v1, %v1433_v46  ;;  %v1864_v22 = vmax.f32 %v1862_v61, %v1863_v26  ;;  %v1687_v58 = vrot.slane %v1686_v5, 4 }
 0x290   :  { %v1751_v57 = vmax.f32 %v1749_v19, %v1750_v38  ;;  %v1807_v20 = vrot.slane %v1806_v0, 4  ;;  %v1569_v4 = vrot.slane %v1568_v15, 4  ;;  %v1626_v41 = vrot.slane %v1625_v6, 4 }
 0x291   :  { %v1502_v39 = vmax.f32 %v1500_v31, %v1501_v30  ;;  %v1865_v10 = vrot.slane %v1864_v22, 2  ;;  %v1688_v11 = vmax.f32 %v1686_v5, %v1687_v58  ;;  %v1332_v37 = vmax.f32 %v1254_v40, 0.0 }
 0x292   :  { %v4093_v32 = vpop.f32.mrb[24].mxu1  ;;  %v1752_v53 = vrot.slane %v1751_v57, 2  ;;  %v5960_v44 = vmax.f32 %v1375_v33, %v1376_v17  ;;  %v1808_v21 = vmax.f32 %v1806_v0, %v1807_v20  ;;  %v1570_v13 = vmax.f32 %v1568_v15, %v1569_v4 }
 0x293   :  { %v5958_v35 = vpop.f32.mrb[25].mxu1  ;;  %v1627_v52 = vmax.f32 %v1625_v6, %v1626_v41  ;;  %v1435_v1 = vrot.slane %v1434_v7, 1  ;;  %v1503_v46 = vrot.slane %v1502_v39, 1  ;;  %v1689_v61 = vrot.slane %v1688_v11, 2 }
 0x294   :  { %7427 = vst [vmem:[#allocation15_spill] sm:$0xff] %v5960_v44  ;;  %v1380_v19 = vsel %vm1344_vm9, %v1332_v37, -inf  ;;  %v5964_v31 = vmax.f32 %v5915_v59, %v1566_v2  ;;  %v5967_v38 = vmax.f32 %v1864_v22, %v1865_v10  ;;  %v1753_v5 = vmax.f32 %v1751_v57, %v1752_v53 }
 0x295   :  { %v1809_v30 = vrot.slane %v1808_v21, 2  ;;  %v1571_v40 = vrot.slane %v1570_v13, 2  ;;  %v1381_v33 = vrot.slane %v1380_v19, 4  ;;  %v1269_v17 = vadd.f32 %v4090_v3, %v5744_v24 }
 0x296   :  { %7428 = vst [vmem:[#allocation16_spill] sm:$0xff] %v5967_v38  ;;  %v5971_v0 = vmax.f32 %v5917_v45, %v1682_v9  ;;  %v1628_v6 = vrot.slane %v1627_v52, 2  ;;  %v1437_v58 = vsel %vm1401_vm10, %v1332_v37, -inf  ;;  %v5975_v59 = vmax.f32 %v1434_v7, %v1435_v1 }
 0x297   :  { %v5977_v2 = vmax.f32 %v1502_v39, %v1503_v46  ;;  %v1690_v22 = vmax.f32 %v1688_v11, %v1689_v61  ;;  %v1382_v20 = vmax.f32 %v1380_v19, %v1381_v33  ;;  %v1754_v41 = vrot.slane %v1753_v5, 1 }
 0x298   :  { %7429 = vst [vmem:[#allocation17_spill] sm:$0xff] %v5971_v0  ;;  %v1438_v3 = vrot.slane %v1437_v58, 4  ;;  %v1505_v45 = vsel %vm1458_vm11, %v1332_v37, -inf  ;;  %v1810_v10 = vmax.f32 %v1808_v21, %v1809_v30  ;;  %v5985_v53 = vmax.f32 %v1570_v13, %v1571_v40 }
 0x299   :  { %v1506_v7 = vsel %vm1460_vm8, %v5947_v16, -inf  ;;  %v1335_v39 = vmax.f32 %v1269_v17, 0.0  ;;  %v5989_v1 = vmax.f32 %v1627_v52, %v1628_v6  ;;  %v1264_v61 = vadd.f32 %v5744_v24, %v5935_v47 }
 0x29a   :  { %v5979_v57 = vpop.f32.mrb[26].mxu1  ;;  %v1439_v11 = vmax.f32 %v1437_v58, %v1438_v3  ;;  %v1507_v46 = vmax.f32 %v1505_v45, %v1506_v7  ;;  %v1691_v19 = vrot.slane %v1690_v22, 1  ;;  %v1383_v33 = vrot.slane %v1382_v20, 2 }
 0x29b   :  { %v5983_v9 = vpop.f32.mrb[27].mxu1  ;;  %v1869_v37 = vsel %vm1344_vm9, %v1335_v39, -inf  ;;  %v1279_v4 = vadd.f32 %v4093_v32, %v5744_v24  ;;  %v1334_v40 = vmax.f32 %v1264_v61, 0.0  ;;  %v5995_v15 = vmax.f32 %v1753_v5, %v1754_v41 }
 0x29c   :  { %v1440_v21 = vrot.slane %v1439_v11, 2  ;;  %v1508_v13 = vrot.slane %v1507_v46, 4  ;;  %v1870_v30 = vrot.slane %v1869_v37, 4  ;;  %v1811_v17 = vrot.slane %v1810_v10, 1 }
 0x29d   :  { %7430 = vst [vmem:[#allocation18_spill] sm:$0xff] %v5995_v15  ;;  %v5998_v6 = vmax.f32 %v1279_v4, 0.0  ;;  %v1693_v47 = vsel %vm1646_vm14, %v5947_v16, -inf  ;;  %v1694_v45 = vsel %vm1648_vm12, %v1334_v40, -inf  ;;  %v6003_v7 = vmax.f32 %v1382_v20, %v1383_v33 }
 0x29e   :  { %v1509_v58 = vmax.f32 %v1507_v46, %v1508_v13  ;;  %v1871_v3 = vmax.f32 %v1869_v37, %v1870_v30  ;;  %v1695_v32 = vmax.f32 %v1693_v47, %v1694_v45  ;;  %v1756_v39 = vsel %vm1720_vm13, %v1334_v40, -inf }
 0x29f   :  { %7431 = vst [vmem:[#allocation19_spill] sm:$0xff] %v6003_v7  ;;  %v1813_v5 = vsel %vm1777_vm15, %v1334_v40, -inf  ;;  %v1441_v61 = vmax.f32 %v1439_v11, %v1440_v21  ;;  %v1757_v52 = vrot.slane %v1756_v39, 4  ;;  %v1274_v4 = vadd.f32 %v5744_v24, %v5958_v35 }
 0x2a0   :  { %v1510_v26 = vrot.slane %v1509_v58, 2  ;;  %v1696_v37 = vrot.slane %v1695_v32, 4  ;;  %v1814_v13 = vrot.slane %v1813_v5, 4  ;;  %v1575_v16 = vsel %vm1532_vm6, %v5998_v6, -inf }
 0x2a1   :  { %v1632_v20 = vsel %vm1589_vm7, %v5998_v6, -inf  ;;  %v6013_v33 = vmax.f32 %v1690_v22, %v1691_v19  ;;  %v6015_v30 = vmax.f32 %v1810_v10, %v1811_v17  ;;  %v1872_v40 = vrot.slane %v1871_v3, 2 }
 0x2a2   :  { %v4099_v41 = vpop.f32.mrb[28].mxu1  ;;  %v1758_v11 = vmax.f32 %v1756_v39, %v1757_v52  ;;  %v1697_v21 = vmax.f32 %v1695_v32, %v1696_v37  ;;  %v1815_v47 = vmax.f32 %v1813_v5, %v1814_v13  ;;  %v1576_v45 = vrot.slane %v1575_v16, 4 }
 0x2a3   :  { %v1293_v46 = vpop.f32.mrb[29].mxu1  ;;  %7432 = vst [vmem:[#allocation20_spill] sm:$0xff] %v6013_v33  ;;  %7433 = vst [vmem:[#allocation21_spill] sm:$0xff] %v6015_v30  ;;  %v1633_v38 = vrot.slane %v1632_v20, 4  ;;  %v1442_v44 = vrot.slane %v1441_v61, 1  ;;  %v1336_v0 = vmax.f32 %v1274_v4, 0.0  ;;  %v6018_v63 = vmax.f32 %v1509_v58, %v1510_v26 }
 0x2a4   :  { %v1759_v28 = vrot.slane %v1758_v11, 2  ;;  %v1698_v23 = vrot.slane %v1697_v21, 2  ;;  %v1816_v25 = vrot.slane %v1815_v47, 2  ;;  %v1577_v15 = vmax.f32 %v1575_v16, %v1576_v45 }
 0x2a5   :  { %v6020_v22 = vmax.f32 %v1871_v3, %v1872_v40  ;;  %v1387_v19 = vsel %vm1344_vm9, %v1336_v0, -inf  ;;  %v1444_v17 = vsel %vm1401_vm10, %v1336_v0, -inf  ;;  %v6026_v39 = vmax.f32 %v1632_v20, %v1633_v38 }
 0x2a6   :  { %v1760_v10 = vmax.f32 %v1758_v11, %v1759_v28  ;;  %v6024_v52 = vmax.f32 %v1697_v21, %v1698_v23  ;;  %v1817_v32 = vmax.f32 %v1815_v47, %v1816_v25  ;;  %v1289_v5 = vadd.f32 %v5979_v57, %v5744_v24 }
 0x2a7   :  { %7434 = vst [vmem:[#allocation22_spill] sm:$0xff] %v6020_v22  ;;  %v1578_v58 = vrot.slane %v1577_v15, 2  ;;  %v1388_v4 = vrot.slane %v1387_v19, 4  ;;  %v1445_v37 = vrot.slane %v1444_v17, 4  ;;  %v1514_v3 = vsel %vm1458_vm11, %v1336_v0, -inf }
 0x2a8   :  { %v6033_v28 = vmax.f32 %v1441_v61, %v1442_v44  ;;  %v1761_v16 = vrot.slane %v1760_v10, 1  ;;  %v1818_v40 = vrot.slane %v1817_v32, 1  ;;  %v1515_v25 = vsel %vm1460_vm8, %v5998_v6, -inf  ;;  %v4957_v44 = vld [vmem:[%s7397_s4] ss:$0 sm:$0xff] }
 0x2a9   :  { %v1389_v24 = vmax.f32 %v1387_v19, %v1388_v4  ;;  %v1516_v57 = vmax.f32 %v1514_v3, %v1515_v25  ;;  %v1339_v0 = vmax.f32 %v1289_v5, 0.0  ;;  %v1284_v61 = vadd.f32 %v4957_v44, %v5983_v9 }
 0x2aa   :  { %v4102_v26 = vpop.f32.mrb[30].mxu1  ;;  %v6045_v21 = vmax.f32 %v1577_v15, %v1578_v58  ;;  %v1446_v47 = vmax.f32 %v1444_v17, %v1445_v37  ;;  %v1299_v35 = vadd.f32 %v4957_v44, %v4099_v41  ;;  %v6047_v23 = vmax.f32 %v1760_v10, %v1761_v16 }
 0x2ab   :  { %v6031_v13 = vpop.f32.mrb[31].mxu1  ;;  %v1517_v45 = vrot.slane %v1516_v57, 4  ;;  %v6049_v19 = vmax.f32 %v1817_v32, %v1818_v40  ;;  %v1876_v4 = vsel %vm1344_vm9, %v1339_v0, -inf  ;;  %v1338_v3 = vmax.f32 %v1284_v61, 0.0 }
 0x2ac   :  { %7435 = vst [vmem:[#allocation23_spill] sm:$0xff] %v6047_v23  ;;  %v1390_v25 = vrot.slane %v1389_v24, 2  ;;  %v1877_v5 = vrot.slane %v1876_v4, 4  ;;  %v1702_v38 = vsel %vm1646_vm14, %v5998_v6, -inf  ;;  %v1294_v20 = vadd.f32 %v4957_v44, %v1293_v46 }
 0x2ad   :  { %7436 = vst [vmem:[#allocation24_spill] sm:$0xff] %v6049_v19  ;;  %v1703_v9 = vsel %vm1648_vm12, %v1338_v3, -inf  ;;  %v1763_v15 = vsel %vm1720_vm13, %v1338_v3, -inf  ;;  %v1820_v17 = vsel %vm1777_vm15, %v1338_v3, -inf  ;;  %v1341_v41 = vmax.f32 %v1299_v35, 0.0 }
 0x2ae   :  { %v1447_v10 = vrot.slane %v1446_v47, 2  ;;  %v6057_v58 = vmax.f32 %v1516_v57, %v1517_v45  ;;  %v1878_v32 = vmax.f32 %v1876_v4, %v1877_v5  ;;  %v1704_v37 = vmax.f32 %v1702_v38, %v1703_v9 }
 0x2af   :  { %v1764_v16 = vrot.slane %v1763_v15, 4  ;;  %v1821_v40 = vrot.slane %v1820_v17, 4  ;;  %v1582_v0 = vsel %vm1532_vm6, %v1341_v41, -inf  ;;  %v1639_v61 = vsel %vm1589_vm7, %v1341_v41, -inf }
 0x2b0   :  { %v1879_v6 = vrot.slane %v1878_v32, 2  ;;  %v1705_v46 = vrot.slane %v1704_v37, 4  ;;  %v1583_v11 = vrot.slane %v1582_v0, 4  ;;  %v1309_v22 = vadd.f32 %v4957_v44, %v4102_v26 }
 0x2b1   :  { %v1765_v7 = vmax.f32 %v1763_v15, %v1764_v16  ;;  %v1822_v19 = vmax.f32 %v1820_v17, %v1821_v40  ;;  %v1640_v30 = vrot.slane %v1639_v61, 4  ;;  %v1340_v3 = vmax.f32 %v1294_v20, 0.0 }
 0x2b2   :  { %v6061_v35 = vmax.f32 %v1389_v24, %v1390_v25  ;;  %v6063_v57 = vmax.f32 %v1446_v47, %v1447_v10  ;;  %v1519_v38 = vrot.slane %v6057_v58, 2  ;;  %v6066_v45 = vmax.f32 %v1704_v37, %v1705_v46 }
 0x2b3   :  { %v1766_v4 = vrot.slane %v1765_v7, 2  ;;  %v1823_v5 = vrot.slane %v1822_v19, 2  ;;  %v1394_v9 = vsel %vm1344_vm9, %v1340_v3, -inf  ;;  %v1524_v33 = vsel %vm1460_vm8, %v1341_v41, -inf }
 0x2b4   :  { %v6070_v23 = vmax.f32 %v1878_v32, %v1879_v6  ;;  %v1584_v26 = vmax.f32 %v1582_v0, %v1583_v11  ;;  %v1395_v15 = vrot.slane %v1394_v9, 4  ;;  %v1451_v20 = vsel %vm1401_vm10, %v1340_v3, -inf }
 0x2b5   :  { %v1707_v24 = vrot.slane %v6066_v45, 2  ;;  %v6074_v47 = vmax.f32 %v1639_v61, %v1640_v30  ;;  %v1452_v25 = vrot.slane %v1451_v20, 4  ;;  %v1523_v17 = vsel %vm1458_vm11, %v1340_v3, -inf }
 0x2b6   :  { %v6077_v10 = vmax.f32 %v1765_v7, %v1766_v4  ;;  %v1396_v37 = vmax.f32 %v1394_v9, %v1395_v15  ;;  %v1525_v16 = vmax.f32 %v1523_v17, %v1524_v33  ;;  %v1343_v40 = vmax.f32 %v1309_v22, 0.0 }
 0x2b7   :  { %v6079_v32 = vmax.f32 %v1822_v19, %v1823_v5  ;;  %v1453_v11 = vmax.f32 %v1451_v20, %v1452_v25  ;;  %v1304_v0 = vadd.f32 %v4957_v44, %v6031_v13  ;;  %v1711_v6 = vsel %vm1646_vm14, %v1341_v41, -inf }
 0x2b8   :  { %v1397_v46 = vrot.slane %v1396_v37, 2  ;;  %v1526_v30 = vrot.slane %v1525_v16, 4  ;;  %v1883_v61 = vsel %vm1344_vm9, %v1343_v40, -inf  ;;  %v7437_v3 = vrot.slane %v5985_v53, 1 }
 0x2b9   :  { %vm1908_vm6 = vcmask 1046534   ;;  %v1454_v33 = vrot.slane %v1453_v11, 2  ;;  %v1884_v22 = vrot.slane %v1883_v61, 4  ;;  %v1342_v4 = vmax.f32 %v1304_v0, 0.0 }
 0x2ba   :  { %v1574_v7 = vmax.f32 %v5985_v53, %v7437_v3  ;;  %v1585_v19 = vrot.slane %v1584_v26, 2  ;;  %vm1910_vm7 = vcmask 1047559   ;;  %v6087_v5 = vmax.f32 %v1396_v37, %v1397_v46 }
 0x2bb   :  { %v1527_v13 = vmax.f32 %v1525_v16, %v1526_v30  ;;  %v1580_v44 = vrot.slane %v6045_v21, 1  ;;  %v2063_v41 = vsel %vm1898_vm0, %v5823_v56, %v5764_v60  ;;  %v1885_v9 = vmax.f32 %v1883_v61, %v1884_v22 }
 0x2bc   :  { %v1712_v15 = vsel %vm1648_vm12, %v1342_v4, -inf  ;;  %v1770_v53 = vsel %vm1720_vm13, %v1342_v4, -inf  ;;  %v1827_v20 = vsel %vm1777_vm15, %v1342_v4, -inf  ;;  %v1586_v0 = vmax.f32 %v1584_v26, %v1585_v19 }
 0x2bd   :  { %v1713_v25 = vmax.f32 %v1711_v6, %v1712_v15  ;;  %v1771_v17 = vrot.slane %v1770_v53, 4  ;;  %v1828_v40 = vrot.slane %v1827_v20, 4  ;;  %v1886_v37 = vrot.slane %v1885_v9, 2 }
 0x2be   :  { %v2064_v16 = vsel %vm1900_vm1, %v5864_v18, %v2063_v41  ;;  %v1449_v46 = vrot.slane %v6063_v57, 1  ;;  %v1455_v30 = vmax.f32 %v1453_v11, %v1454_v33  ;;  %v1587_v61 = vrot.slane %v1586_v0, 1 }
 0x2bf   :  { %v1714_v3 = vrot.slane %v1713_v25, 4  ;;  %v1772_v60 = vmax.f32 %v1770_v53, %v1771_v17  ;;  %v6099_v56 = vmax.f32 %v1827_v20, %v1828_v40  ;;  %v6101_v22 = vmax.f32 %v1885_v9, %v1886_v37 }
 0x2c0   :  { %v1581_v4 = vmax.f32 %v6045_v21, %v1580_v44  ;;  %v2065_v6 = vsel %vm1902_vm2, %v5911_v42, %v2064_v16  ;;  %v1456_v26 = vrot.slane %v1455_v30, 1  ;;  %v1588_v18 = vmax.f32 %v1586_v0, %v1587_v61 }
 0x2c1   :  { %v6106_v19 = vmax.f32 %v1713_v25, %v1714_v3  ;;  %v1773_v15 = vrot.slane %v1772_v60, 2  ;;  %v1450_v41 = vmax.f32 %v6063_v57, %v1449_v46  ;;  %v1830_v11 = vrot.slane %v6099_v56, 2 }
 0x2c2   :  { %v2066_v33 = vsel %vm1904_vm3, %v5964_v31, %v2065_v6  ;;  %v1457_v53 = vmax.f32 %v1455_v30, %v1456_v26  ;;  %v1922_v21 = vsel %vm1900_vm1, %v5871_v27, %v5796_v62  ;;  %v7438_v9 = vrot.slane %v6018_v63, 1 }
 0x2c3   :  { %v2067_v44 = vsel %vm1906_vm5, %v1574_v7, %v2066_v33  ;;  %v1923_v42 = vsel %vm1902_vm2, %v5922_v34, %v1922_v21  ;;  %v1520_v57 = vmax.f32 %v6057_v58, %v1519_v38  ;;  %v1528_v17 = vrot.slane %v1527_v13, 2 }
 0x2c4   :  { %v1513_v20 = vmax.f32 %v6018_v63, %v7438_v9  ;;  %v2068_v31 = vsel %vm1908_vm6, %v1581_v4, %v2067_v44  ;;  %v1924_v25 = vsel %vm1904_vm3, %v5975_v59, %v1923_v42  ;;  %v1939_v62 = vsel %vm1898_vm0, %v5827_v48, %v5775_v49  ;;  %v7443_v9 = vld [vmem:[#allocation23_spill] sm:$0xff] }
 0x2c5   :  { %v6131_v27 = vsel %vm1910_vm7, %v1588_v18, %v2068_v31  ;;  %v1925_v63 = vsel %vm1906_vm5, %v6033_v28, %v1924_v25  ;;  %v1521_v34 = vrot.slane %v1520_v57, 1  ;;  %v1940_v58 = vsel %vm1900_vm1, %v5876_v12, %v1939_v62  ;;  %v7445_v31 = vld [vmem:[#allocation9_spill] sm:$0xff] }
 0x2c6   :  { %3821 = vmatprep.mubr.msk.f32.mxu1 %vm938_vm4, %v6131_v27  ;;  %v1926_v59 = vsel %vm1908_vm6, %v1450_v41, %v1925_v63  ;;  %v1529_v38 = vmax.f32 %v1527_v13, %v1528_v17  ;;  %v1941_v7 = vsel %vm1902_vm2, %v5924_v29, %v1940_v58  ;;  %v7439_v49 = vrot.slane %v5938_v55, 1  ;;  %v7446_v63 = vld [vmem:[#allocation11_spill] sm:$0xff]  ;;  %v7447_v58 = vld [vmem:[#allocation17_spill] sm:$0xff] }
 0x2c7   :  { %v6146_v40 = vsel %vm1910_vm7, %v1457_v53, %v1926_v59  ;;  %v1522_v28 = vmax.f32 %v1520_v57, %v1521_v34  ;;  %v1942_v12 = vsel %vm1904_vm3, %v5977_v2, %v1941_v7  ;;  %v1630_v0 = vrot.slane %v5989_v1, 1  ;;  %v7442_v53 = vld [vmem:[#allocation18_spill] sm:$0xff]  ;;  %v7444_v57 = vld [vmem:[#allocation5_spill] sm:$0xff] }
 0x2c8   :  { %v1624_v48 = vmax.f32 %v5938_v55, %v7439_v49  ;;  %1928 = vrot.lane.b32.xlu0 %v6146_v40, %s4982_s2  ;;  %v1530_v13 = vrot.slane %v1529_v38, 1  ;;  %v1943_v37 = vsel %vm1906_vm5, %v1513_v20, %v1942_v12  ;;  %v7440_v29 = vrot.slane %v6026_v39, 2  ;;  %v7448_v49 = vld [vmem:[#allocation20_spill] sm:$0xff]  ;;  %v7449_v12 = vld [vmem:[#allocation6_spill] sm:$0xff] }
 0x2c9   :  { %v1642_v55 = vrot.slane %v6074_v47, 2  ;;  %v1944_v46 = vsel %vm1908_vm6, %v1522_v28, %v1943_v37  ;;  %v1631_v30 = vmax.f32 %v5989_v1, %v1630_v0  ;;  %v2156_v2 = vsel %vm1898_vm0, %v5825_v14, %v5769_v36  ;;  %v7450_v0 = vld [vmem:[#allocation10_spill] sm:$0xff]  ;;  %v1948_v37 = vld [vmem:[%s7398_s5 + $0x8] sm:$0xff] }
 0x2ca   :  { %v1636_v16 = vmax.f32 %v6026_v39, %v7440_v29  ;;  %v1768_v3 = vrot.slane %v6077_v10, 1  ;;  %v1531_v61 = vmax.f32 %v1529_v38, %v1530_v13  ;;  %v2157_v26 = vsel %vm1900_vm1, %v5866_v51, %v2156_v2  ;;  %v7452_v2 = vld [vmem:[#allocation21_spill] sm:$0xff] }
 0x2cb   :  { %v1643_v6 = vmax.f32 %v6074_v47, %v1642_v55  ;;  %v2158_v39 = vsel %vm1902_vm2, %v5913_v43, %v2157_v26  ;;  %v1774_v41 = vmax.f32 %v1772_v60, %v1773_v15  ;;  %v2343_v1 = vsel %vm1900_vm1, %v5880_v54, %v5817_v50  ;;  %v7453_v26 = vld [vmem:[#allocation24_spill] sm:$0xff] }
 0x2cc   :  { %v1637_v4 = vrot.slane %v1636_v16, 1  ;;  %v1769_v18 = vmax.f32 %v6077_v10, %v1768_v3  ;;  %v6174_v36 = vsel %vm1910_vm7, %v1531_v61, %v1944_v46  ;;  %2145 = vrot.lane.b32.xlu0 %v6131_v27, %s4982_s2  ;;  %v2159_v51 = vsel %vm1904_vm3, %v1624_v48, %v2158_v39  ;;  %v7451_v46 = vld [vmem:[#allocation14_spill] sm:$0xff] }
 0x2cd   :  { %v1644_v47 = vrot.slane %v1643_v6, 1  ;;  %2052 = vrot.lane.b32.xlu1 %v6174_v36, %s4982_s2  ;;  %3820 = vmatprep.mubr.msk.f32.mxu0 %vm938_vm4, %v6174_v36  ;;  %v2160_v43 = vsel %vm1906_vm5, %v1631_v30, %v2159_v51  ;;  %v1775_v10 = vrot.slane %v1774_v41, 1  ;;  %v2344_v50 = vsel %vm1902_vm2, %v5941_v8, %v2343_v1  ;;  %v1949_v61 = vld [vmem:[%s7398_s5 + $0x10] sm:$0xff] }
 0x2ce   :  { %v1638_v14 = vmax.f32 %v1636_v16, %v1637_v4  ;;  %v7441_v54 = vrot.slane %v6024_v52, 1  ;;  %v2345_v21 = vsel %vm1904_vm3, %v7442_v53, %v2344_v50  ;;  %v1708_v44 = vmax.f32 %v6066_v45, %v1707_v24  ;;  %v1950_v4 = vld [vmem:[%s7398_s5 + $0x18] sm:$0xff]  ;;  %v1952_v53 = vld [vmem:[%s7398_s5 + $0x28] sm:$0xff] }
 0x2cf   :  { %v1645_v15 = vmax.f32 %v1643_v6, %v1644_v47  ;;  %v1776_v42 = vmax.f32 %v1774_v41, %v1775_v10  ;;  %v2346_v20 = vsel %vm1906_vm5, %v7443_v9, %v2345_v21  ;;  %v1716_v8 = vrot.slane %v6106_v19, 2  ;;  %v7456_v21 = vld [vmem:[#allocation16_spill] sm:$0xff]  ;;  %v7458_v9 = vld [vmem:[#allocation19_spill] sm:$0xff] }
 0x2d0   :  { %v1701_v60 = vmax.f32 %v6024_v52, %v7441_v54  ;;  %v2161_v33 = vsel %vm1908_vm6, %v1638_v14, %v2160_v43  ;;  %v2249_v52 = vsel %vm1898_vm0, %v7445_v31, %v7444_v57  ;;  %v2347_v17 = vsel %vm1908_vm6, %v1769_v18, %v2346_v20  ;;  %v7454_v43 = vld [vmem:[#allocation15_spill] sm:$0xff]  ;;  %v7460_v31 = vld [vmem:[#allocation22_spill] sm:$0xff] }
 0x2d1   :  { %v6202_v25 = vsel %vm1910_vm7, %v1645_v15, %v2161_v33  ;;  %v1709_v62 = vrot.slane %v1708_v44, 1  ;;  %v2250_v34 = vsel %vm1900_vm1, %v7446_v63, %v2249_v52  ;;  %v6210_v45 = vsel %vm1910_vm7, %v1776_v42, %v2347_v17  ;;  %v1951_v33 = vld [vmem:[%s7398_s5 + $0x20] sm:$0xff] }
 0x2d2   :  { %2238 = vrot.lane.b32.xlu1 %v6202_v25, %s4982_s2  ;;  %v1717_v24 = vmax.f32 %v6106_v19, %v1716_v8  ;;  %v2251_v59 = vsel %vm1902_vm2, %v7447_v58, %v2250_v34  ;;  %v1825_v38 = vrot.slane %v6079_v32, 1  ;;  %v1831_v28 = vmax.f32 %v6099_v56, %v1830_v11  ;;  %v1947_v19 = vld [vmem:[%s7398_s5] sm:$0xff]  ;;  %v7462_v58 = vld [vmem:[#allocation7_spill] sm:$0xff] }
 0x2d3   :  { %v1710_v7 = vmax.f32 %v1708_v44, %v1709_v62  ;;  %v2252_v48 = vsel %vm1904_vm3, %v7448_v49, %v2251_v59  ;;  %v2436_v13 = vsel %vm1900_vm1, %v7450_v0, %v7449_v12  ;;  %v1392_v6 = vrot.slane %v6061_v35, 1  ;;  %v7463_v59 = vld [vmem:[#allocation12_spill] sm:$0xff] }
 0x2d4   :  { %v1718_v29 = vrot.slane %v1717_v24, 1  ;;  %v2253_v16 = vsel %vm1906_vm5, %v1701_v60, %v2252_v48  ;;  %v1826_v55 = vmax.f32 %v6079_v32, %v1825_v38  ;;  %v2437_v56 = vsel %vm1902_vm2, %v7451_v46, %v2436_v13  ;;  %v7464_v49 = vld [vmem:[#allocation8_spill] sm:$0xff]  ;;  %v7465_v48 = vld [vmem:[#allocation13_spill] sm:$0xff] }
 0x2d5   :  { %v2254_v11 = vsel %vm1908_vm6, %v1710_v7, %v2253_v16  ;;  %v1832_v30 = vrot.slane %v1831_v28, 1  ;;  %v2438_v3 = vsel %vm1904_vm3, %v7452_v2, %v2437_v56  ;;  %v4984_v18 = vmov 0.0|0.0   ;;  %v1956_v46 = vld [vmem:[%s7398_s5 + $0x48] sm:$0xff] }
 0x2d6   :  { %2424 = vrot.lane.b32.xlu1 %v6210_v45, %s4982_s2  ;;  %v1719_v32 = vmax.f32 %v1717_v24, %v1718_v29  ;;  %v2439_v39 = vsel %vm1906_vm5, %v7453_v26, %v2438_v3  ;;  %4155 = vmatprep.subr.bf16.mxu0 %v4984_v18  ;;  %v6249_v41 = vpack.c.bf16 %v1948_v37, %v1947_v19  ;;  %v1881_v1 = vrot.slane %v6070_v23, 1  ;;  %v1959_v3 = vld [vmem:[%s7398_s5 + $0x60] sm:$0xff] }
 0x2d7   :  { %v1833_v14 = vmax.f32 %v1831_v28, %v1832_v30  ;;  %v2440_v47 = vsel %vm1908_vm6, %v1826_v55, %v2439_v39  ;;  %4191 = vmatprep.subr.bf16.mxu1 %v4984_v18  ;;  %v1399_v51 = vrot.slane %v6087_v5, 1  ;;  %v7455_v10 = vrot.slane %v7454_v43, 1  ;;  %v1954_v28 = vld [vmem:[%s7398_s5 + $0x38] sm:$0xff]  ;;  %v1955_v55 = vld [vmem:[%s7398_s5 + $0x40] sm:$0xff] }
 0x2d8   :  { %v1888_v54 = vrot.slane %v6101_v22, 1  ;;  %v6260_v60 = vsel %vm1910_vm7, %v1719_v32, %v2254_v11  ;;  %4157 = vmatpush1.bf16.msra.mxu0 %v6249_v41  ;;  %v6263_v15 = vpack.c.bf16 %v1950_v4, %v1949_v61  ;;  %4193 = vmatpush1.bf16.msra.mxu1 %v6249_v41  ;;  %v7457_v44 = vrot.slane %v7456_v21, 1  ;;  %v1957_v11 = vld [vmem:[%s7398_s5 + $0x50] sm:$0xff]  ;;  %v1958_v30 = vld [vmem:[%s7398_s5 + $0x58] sm:$0xff]  ;;  %v1960_v61 = vld [vmem:[%s7398_s5 + $0x68] sm:$0xff] }
 0x2d9   :  { %v1379_v50 = vmax.f32 %v7454_v43, %v7455_v10  ;;  %v7459_v20 = vrot.slane %v7458_v9, 1  ;;  %2331 = vrot.lane.b32.xlu0 %v6260_v60, %s4982_s2  ;;  %v6281_v57 = vsel %vm1910_vm7, %v1833_v14, %v2440_v47  ;;  %4158 = vmatprep.subr.bf16.mxu0 %v4984_v18  ;;  %v7461_v52 = vrot.slane %v7460_v31, 1  ;;  %v1962_v32 = vld [vmem:[%s7398_s5 + $0x78] sm:$0xff]  ;;  %v1963_v39 = vld [vmem:[%s7398_s5 + $0x80] sm:$0xff]  ;;  %v1965_v47 = vld [vmem:[%s7398_s5 + $0x90] sm:$0xff] }
 0x2da   :  { %v1868_v42 = vmax.f32 %v7456_v21, %v7457_v44  ;;  %v1393_v62 = vmax.f32 %v6061_v35, %v1392_v6  ;;  %4194 = vmatprep.subr.bf16.mxu1 %v4984_v18  ;;  %v1882_v63 = vmax.f32 %v6070_v23, %v1881_v1  ;;  %v6290_v34 = vpack.c.bf16 %v1952_v53, %v1951_v33  ;;  %v1961_v6 = vld [vmem:[%s7398_s5 + $0x70] sm:$0xff]  ;;  %v1964_v1 = vld [vmem:[%s7398_s5 + $0x88] sm:$0xff]  ;;  %v1967_v10 = vld [vmem:[%s7398_s5 + $0xa0] sm:$0xff] }
 0x2db   :  { %v1386_v8 = vmax.f32 %v7458_v9, %v7459_v20  ;;  %v1875_v17 = vmax.f32 %v7460_v31, %v7461_v52  ;;  %v1400_v24 = vmax.f32 %v6087_v5, %v1399_v51  ;;  %v1903_v38 = vsel %vm1902_vm2, %v7463_v59, %v7462_v58  ;;  %v1953_v5 = vld [vmem:[%s7398_s5 + $0x30] sm:$0xff]  ;;  %v1966_v51 = vld [vmem:[%s7398_s5 + $0x98] sm:$0xff]  ;;  %v2614_v58 = vld [vmem:[%s7400_s7 + $0x28] sm:$0xff] }
 0x2dc   :  { %4160 = vmatpush1.bf16.msra.mxu0 %v6263_v15  ;;  %4196 = vmatpush1.bf16.msra.mxu1 %v6263_v15  ;;  %v1905_v7 = vsel %vm1904_vm3, %v1379_v50, %v1903_v38  ;;  %v1889_v35 = vmax.f32 %v6101_v22, %v1888_v54  ;;  %v2530_v23 = vsel %vm1902_vm2, %v7465_v48, %v7464_v49  ;;  %v1968_v50 = vld [vmem:[%s7398_s5 + $0xa8] sm:$0xff]  ;;  %v1969_v33 = vld [vmem:[%s7398_s5 + $0xb0] sm:$0xff]  ;;  %v1970_v53 = vld [vmem:[%s7398_s5 + $0xb8] sm:$0xff]  ;;  %vm4986_vm8 = vmmov 0  }
 0x2dd   :  { %2517 = vrot.lane.b32.xlu0 %v6281_v57, %s4982_s2  ;;  %4161 = vmatprep.subr.bf16.mxu0 %v4984_v18  ;;  %v1907_v12 = vsel %vm1906_vm5, %v1386_v8, %v1905_v7  ;;  %v2531_v22 = vsel %vm1904_vm3, %v1868_v42, %v2530_v23  ;;  %v6322_v29 = vpack.c.bf16 %v1954_v28, %v1953_v5  ;;  %v2618_v48 = vld [vmem:[%s7400_s7 + $0x48] sm:$0xff]  ;;  %v2620_v23 = vld [vmem:[%s7400_s7 + $0x58] sm:$0xff]  ;;  %v2617_v28 = vld [vmem:[%s7400_s7 + $0x40] sm:$0xff]  ;;  %vm3656_vm9 = vcmask 64512  }
 0x2de   :  { %4197 = vmatprep.subr.bf16.mxu1 %v4984_v18  ;;  %v1909_v0 = vsel %vm1908_vm6, %v1393_v62, %v1907_v12  ;;  %v2532_v13 = vsel %vm1906_vm5, %v1875_v17, %v2531_v22  ;;  %v6337_v56 = vpack.c.bf16 %v1956_v46, %v1955_v55  ;;  %v6349_v2 = vpack.c.bf16 %v1958_v30, %v1957_v11  ;;  %v2619_v12 = vld [vmem:[%s7400_s7 + $0x50] sm:$0xff]  ;;  %v2624_v22 = vld [vmem:[%s7400_s7 + $0x78] sm:$0xff]  ;;  %v2625_v11 = vld [vmem:[%s7400_s7 + $0x80] sm:$0xff] }
 0x2df   :  { %v6318_v19 = vsel %vm1910_vm7, %v1400_v24, %v1909_v0  ;;  %v2533_v37 = vsel %vm1908_vm6, %v1882_v63, %v2532_v13  ;;  %v6361_v4 = vpack.c.bf16 %v1960_v61, %v1959_v3  ;;  %v6373_v26 = vpack.c.bf16 %v1962_v32, %v1961_v6  ;;  %v2609_v63 = vld [vmem:[%s7400_s7] sm:$0xff]  ;;  %v2611_v24 = vld [vmem:[%s7400_s7 + $0x10] sm:$0xff]  ;;  %v2632_v3 = vld [vmem:[%s7400_s7 + $0xb8] sm:$0xff] }
 0x2e0   :  { %4163 = vmatpush1.bf16.msra.mxu0 %v6290_v34  ;;  %4199 = vmatpush1.bf16.msra.mxu1 %v6290_v34  ;;  %v6326_v16 = vsel %vm1910_vm7, %v1889_v35, %v2533_v37  ;;  %v6385_v14 = vpack.c.bf16 %v1964_v1, %v1963_v39  ;;  %v6397_v43 = vpack.c.bf16 %v1966_v51, %v1965_v47  ;;  %v2613_v35 = vld [vmem:[%s7400_s7 + $0x20] sm:$0xff]  ;;  %v2623_v37 = vld [vmem:[%s7400_s7 + $0x70] sm:$0xff]  ;;  %v2636_v1 = vld [vmem:[%s7400_s7 + $0xd8] sm:$0xff] }
 0x2e1   :  { %4164 = vmatprep.subr.bf16.mxu0 %v4984_v18  ;;  %4200 = vmatprep.subr.bf16.mxu1 %v4984_v18  ;;  %v6409_v54 = vpack.c.bf16 %v1968_v50, %v1967_v10  ;;  %v6421_v21 = vpack.c.bf16 %v1970_v53, %v1969_v33  ;;  %v6567_v38 = vpack.c.bf16 %v2611_v24, %v2609_v63  ;;  %v2627_v30 = vld [vmem:[%s7400_s7 + $0x90] sm:$0xff]  ;;  %v2629_v32 = vld [vmem:[%s7400_s7 + $0xa0] sm:$0xff]  ;;  %v2640_v33 = vld [vmem:[%s7400_s7 + $0xf8] sm:$0xff] }
 0x2e2   :  { %v6609_v0 = vpack.c.bf16 %v2619_v12, %v2617_v28  ;;  %v6649_v61 = vpack.c.bf16 %v2627_v30, %v2625_v11  ;;  %v2631_v39 = vld [vmem:[%s7400_s7 + $0xb0] sm:$0xff]  ;;  %v2633_v10 = vld [vmem:[%s7400_s7 + $0xc0] sm:$0xff]  ;;  %v2652_v24 = vld [vmem:[%s7400_s7 + $0x158] sm:$0xff] }
 0x2e3   :  { %v6669_v47 = vpack.c.bf16 %v2631_v39, %v2629_v32  ;;  %v2635_v50 = vld [vmem:[%s7400_s7 + $0xd0] sm:$0xff]  ;;  %v2666_v32 = vld [vmem:[%s7400_s7 + $0x1c8] sm:$0xff]  ;;  %v2668_v39 = vld [vmem:[%s7400_s7 + $0x1d8] sm:$0xff] }
 0x2e4   :  { %4166 = vmatpush1.bf16.msra.mxu0 %v6322_v29  ;;  %4202 = vmatpush1.bf16.msra.mxu1 %v6322_v29  ;;  %v6689_v53 = vpack.c.bf16 %v2635_v50, %v2633_v10  ;;  %v2647_v63 = vld [vmem:[%s7400_s7 + $0x130] sm:$0xff]  ;;  %v2665_v10 = vld [vmem:[%s7400_s7 + $0x1c0] sm:$0xff] }
 0x2e5   :  { %4167 = vmatprep.subr.bf16.mxu0 %v4984_v18  ;;  %4203 = vmatprep.subr.bf16.mxu1 %v4984_v18  ;;  %v2655_v28 = vld [vmem:[%s7400_s7 + $0x170] sm:$0xff] }
 0x2e6   :  { %v2667_v50 = vld [vmem:[%s7400_s7 + $0x1d0] sm:$0xff] }
 0x2e8   :  { %4169 = vmatpush1.bf16.msra.mxu0 %v6337_v56  ;;  %4205 = vmatpush1.bf16.msra.mxu1 %v6337_v56 }
 0x2e9   :  { %4170 = vmatprep.subr.bf16.mxu0 %v4984_v18  ;;  %4206 = vmatprep.subr.bf16.mxu1 %v4984_v18 }
 0x2ec   :  { %4172 = vmatpush1.bf16.msra.mxu0 %v6349_v2  ;;  %4208 = vmatpush1.bf16.msra.mxu1 %v6349_v2 }
 0x2ed   :  { %4173 = vmatprep.subr.bf16.mxu0 %v4984_v18  ;;  %4209 = vmatprep.subr.bf16.mxu1 %v4984_v18 }
 0x2f0   :  { %4175 = vmatpush1.bf16.msra.mxu0 %v6361_v4  ;;  %4211 = vmatpush1.bf16.msra.mxu1 %v6361_v4 }
 0x2f1   :  { %4176 = vmatprep.subr.bf16.mxu0 %v4984_v18  ;;  %4212 = vmatprep.subr.bf16.mxu1 %v4984_v18 }
 0x2f4   :  { %4178 = vmatpush1.bf16.msra.mxu0 %v6373_v26  ;;  %4214 = vmatpush1.bf16.msra.mxu1 %v6373_v26 }
 0x2f5   :  { %4179 = vmatprep.subr.bf16.mxu0 %v4984_v18  ;;  %4215 = vmatprep.subr.bf16.mxu1 %v4984_v18 }
 0x2f8   :  { %4181 = vmatpush1.bf16.msra.mxu0 %v6385_v14  ;;  %4217 = vmatpush1.bf16.msra.mxu1 %v6385_v14 }
 0x2f9   :  { %4182 = vmatprep.subr.bf16.mxu0 %v4984_v18  ;;  %4218 = vmatprep.subr.bf16.mxu1 %v4984_v18 }
 0x2fc   :  { %4184 = vmatpush1.bf16.msra.mxu0 %v6397_v43  ;;  %4220 = vmatpush1.bf16.msra.mxu1 %v6397_v43 }
 0x2fd   :  { %4185 = vmatprep.subr.bf16.mxu0 %v4984_v18  ;;  %4221 = vmatprep.subr.bf16.mxu1 %v4984_v18 }
 0x300   :  { %4187 = vmatpush1.bf16.msra.mxu0 %v6409_v54  ;;  %4223 = vmatpush1.bf16.msra.mxu1 %v6409_v54 }
 0x301   :  { %4188 = vmatprep.subr.bf16.mxu0 %v4984_v18  ;;  %4224 = vmatprep.subr.bf16.mxu1 %v4984_v18 }
 0x304   :  { %4190 = vmatpush1.bf16.msra.mxu0 %v6421_v21  ;;  %4226 = vmatpush1.bf16.msra.mxu1 %v6421_v21 }
 0x305   :  { %4227 = vmatprep.subr.bf16.mxu0 %v4984_v18  ;;  %4263 = vmatprep.subr.bf16.mxu1 %v4984_v18 }
 0x33a   :  { %v1929_v44 = vpop.permute.xlu0 %1928 }
 0x33b   :  { %v1946_v42 = vsel %vm938_vm4, %v6318_v19, %v1929_v44  ;;  %v2621_v19 = vld [vmem:[%s7400_s7 + $0x60] sm:$0xff] }
 0x33c   :  { %2045 = vmatmul.mubr.f32.vlgmr.msra.gmra.mrb[40].mxu0 %v1946_v42  ;;  %v6629_v55 = vpack.c.bf16 %v2623_v37, %v2621_v19  ;;  %v2637_v42 = vld [vmem:[%s7400_s7 + $0xe0] sm:$0xff] }
 0x33d   :  { %4229 = vmatpush1.bf16.msra.mxu0 %v6249_v41  ;;  %3822 = vmatprep.mubr.msk.f32.mxu0 %vm938_vm4, %v6202_v25 }
 0x33e   :  { %4230 = vmatprep.subr.bf16.mxu0 %v4984_v18 }
 0x33f   :  { %v2053_v9 = vpop.permute.xlu1 %2052 }
 0x340   :  { %v2070_v20 = vsel %vm938_vm4, %v6146_v40, %v2053_v9  ;;  %v2146_v40 = vpop.permute.xlu0 %2145  ;;  %v2639_v9 = vld [vmem:[%s7400_s7 + $0xf0] sm:$0xff] }
 0x341   :  { %2138 = vmatmul.mubr.f32.vlgmr.msra.gmra.mrb[32].mxu1 %v2070_v20  ;;  %4232 = vmatpush1.bf16.msra.mxu0 %v6263_v15  ;;  %v2163_v8 = vsel %vm938_vm4, %v6174_v36, %v2146_v40  ;;  %v2610_v36 = vld [vmem:[%s7400_s7 + $0x8] sm:$0xff]  ;;  %v2644_v20 = vld [vmem:[%s7400_s7 + $0x118] sm:$0xff]  ;;  %v6709_v40 = vpack.c.bf16 %v2639_v9, %v2637_v42  ;;  %v6851_v42 = vpack.c.bf16 %v2667_v50, %v2665_v10  ;;  %v2681_v10 = vld [vmem:[%s7400_s7 + $0x240] sm:$0xff] }
 0x342   :  { %4265 = vmatpush1.bf16.msra.mxu1 %v6249_v41  ;;  %3823 = vmatprep.mubr.msk.f32.mxu1 %vm938_vm4, %v6260_v60  ;;  %v2683_v50 = vld [vmem:[%s7400_s7 + $0x250] sm:$0xff] }
 0x343   :  { %4266 = vmatprep.subr.bf16.mxu1 %v4984_v18  ;;  %4233 = vmatprep.subr.bf16.mxu0 %v4984_v18 }
 0x344   :  { %v2239_v31 = vpop.permute.xlu1 %2238 }
 0x345   :  { %4235 = vmatpush1.bf16.msra.mxu0 %v6290_v34  ;;  %v2256_v52 = vsel %vm938_vm4, %v6131_v27, %v2239_v31  ;;  %v2641_v31 = vld [vmem:[%s7400_s7 + $0x100] sm:$0xff] }
 0x346   :  { %4268 = vmatpush1.bf16.msra.mxu1 %v6263_v15  ;;  %4236 = vmatprep.subr.bf16.mxu0 %v4984_v18 }
 0x347   :  { %4269 = vmatprep.subr.bf16.mxu1 %v4984_v18 }
 0x348   :  { %v2425_v59 = vpop.permute.xlu1 %2424 }
 0x349   :  { %4238 = vmatpush1.bf16.msra.mxu0 %v6322_v29  ;;  %v2442_v49 = vsel %vm938_vm4, %v6260_v60, %v2425_v59  ;;  %v6592_v60 = vpack.c.bf16 %v2620_v23, %v2618_v48  ;;  %v2649_v59 = vld [vmem:[%s7400_s7 + $0x140] sm:$0xff] }
 0x34a   :  { %4271 = vmatpush1.bf16.msra.mxu1 %v6290_v34  ;;  %4239 = vmatprep.subr.bf16.mxu0 %v4984_v18  ;;  %v2653_v23 = vld [vmem:[%s7400_s7 + $0x160] sm:$0xff] }
 0x34b   :  { %4272 = vmatprep.subr.bf16.mxu1 %v4984_v18  ;;  %v2332_v27 = vpop.permute.xlu0 %2331 }
 0x34c   :  { %v2349_v17 = vsel %vm938_vm4, %v6202_v25, %v2332_v27  ;;  %v2616_v25 = vld [vmem:[%s7400_s7 + $0x38] sm:$0xff] }
 0x34d   :  { %4241 = vmatpush1.bf16.msra.mxu0 %v6337_v56  ;;  %v6570_v7 = vpack.c.bf16 %v2616_v25, %v2614_v58  ;;  %v2648_v27 = vld [vmem:[%s7400_s7 + $0x138] sm:$0xff] }
 0x34e   :  { %4274 = vmatpush1.bf16.msra.mxu1 %v6322_v29  ;;  %4242 = vmatprep.subr.bf16.mxu0 %v4984_v18 }
 0x34f   :  { %4275 = vmatprep.subr.bf16.mxu1 %v4984_v18  ;;  %v2518_v12 = vpop.permute.xlu0 %2517 }
 0x350   :  { %v2535_v19 = vsel %vm938_vm4, %v6210_v45, %v2518_v12  ;;  %v2680_v12 = vld [vmem:[%s7400_s7 + $0x238] sm:$0xff] }
 0x351   :  { %4244 = vmatpush1.bf16.msra.mxu0 %v6349_v2 }
 0x352   :  { %4277 = vmatpush1.bf16.msra.mxu1 %v6337_v56  ;;  %4245 = vmatprep.subr.bf16.mxu0 %v4984_v18 }
 0x353   :  { %4278 = vmatprep.subr.bf16.mxu1 %v4984_v18 }
 0x355   :  { %4247 = vmatpush1.bf16.msra.mxu0 %v6361_v4 }
 0x356   :  { %4280 = vmatpush1.bf16.msra.mxu1 %v6349_v2  ;;  %4248 = vmatprep.subr.bf16.mxu0 %v4984_v18 }
 0x357   :  { %4281 = vmatprep.subr.bf16.mxu1 %v4984_v18 }
 0x359   :  { %4250 = vmatpush1.bf16.msra.mxu0 %v6373_v26 }
 0x35a   :  { %4283 = vmatpush1.bf16.msra.mxu1 %v6361_v4  ;;  %4251 = vmatprep.subr.bf16.mxu0 %v4984_v18 }
 0x35b   :  { %4284 = vmatprep.subr.bf16.mxu1 %v4984_v18 }
 0x35d   :  { %4253 = vmatpush1.bf16.msra.mxu0 %v6385_v14 }
 0x35e   :  { %4286 = vmatpush1.bf16.msra.mxu1 %v6373_v26  ;;  %4254 = vmatprep.subr.bf16.mxu0 %v4984_v18 }
 0x35f   :  { %4287 = vmatprep.subr.bf16.mxu1 %v4984_v18 }
 0x361   :  { %4256 = vmatpush1.bf16.msra.mxu0 %v6397_v43 }
 0x362   :  { %4289 = vmatpush1.bf16.msra.mxu1 %v6385_v14  ;;  %4257 = vmatprep.subr.bf16.mxu0 %v4984_v18 }
 0x363   :  { %4290 = vmatprep.subr.bf16.mxu1 %v4984_v18 }
 0x365   :  { %4259 = vmatpush1.bf16.msra.mxu0 %v6409_v54 }
 0x366   :  { %4292 = vmatpush1.bf16.msra.mxu1 %v6397_v43  ;;  %4260 = vmatprep.subr.bf16.mxu0 %v4984_v18 }
 0x367   :  { %4293 = vmatprep.subr.bf16.mxu1 %v4984_v18 }
 0x369   :  { %4262 = vmatpush1.bf16.msra.mxu0 %v6421_v21 }
 0x36a   :  { %4295 = vmatpush1.bf16.msra.mxu1 %v6409_v54  ;;  %4299 = vmatprep.subr.bf16.mxu0 %v4984_v18 }
 0x36b   :  { %4296 = vmatprep.subr.bf16.mxu1 %v4984_v18 }
 0x36c   :  { %2231 = vmatmul.mubr.f32.vlgmr.msra.gmra.mrb[42].mxu0 %v2163_v8 }
 0x36d   :  { %4301 = vmatpush1.bf16.msra.mxu0 %v6249_v41  ;;  %3824 = vmatprep.mubr.msk.f32.mxu0 %vm938_vm4, %v6210_v45  ;;  %v2664_v45 = vld [vmem:[%s7400_s7 + $0x1b8] sm:$0xff] }
 0x36e   :  { %4298 = vmatpush1.bf16.msra.mxu1 %v6421_v21  ;;  %4302 = vmatprep.subr.bf16.mxu0 %v4984_v18 }
 0x36f   :  { %4335 = vmatprep.subr.bf16.mxu1 %v4984_v18 }
 0x371   :  { %2324 = vmatmul.mubr.f32.vlgmr.msra.gmra.mrb[34].mxu1 %v2256_v52  ;;  %4304 = vmatpush1.bf16.msra.mxu0 %v6263_v15  ;;  %v2643_v52 = vld [vmem:[%s7400_s7 + $0x110] sm:$0xff] }
 0x372   :  { %4337 = vmatpush1.bf16.msra.mxu1 %v6249_v41  ;;  %3825 = vmatprep.mubr.msk.f32.mxu1 %vm938_vm4, %v6281_v57  ;;  %v2612_v57 = vld [vmem:[%s7400_s7 + $0x18] sm:$0xff] }
 0x373   :  { %4338 = vmatprep.subr.bf16.mxu1 %v4984_v18  ;;  %4305 = vmatprep.subr.bf16.mxu0 %v4984_v18  ;;  %v6548_v62 = vpack.c.bf16 %v2612_v57, %v2610_v36  ;;  %v6729_v36 = vpack.c.bf16 %v2643_v52, %v2641_v31  ;;  %v2674_v31 = vld [vmem:[%s7400_s7 + $0x208] sm:$0xff]  ;;  %v2676_v52 = vld [vmem:[%s7400_s7 + $0x218] sm:$0xff] }
 0x375   :  { %4307 = vmatpush1.bf16.msra.mxu0 %v6290_v34 }
 0x376   :  { %4340 = vmatpush1.bf16.msra.mxu1 %v6263_v15  ;;  %4308 = vmatprep.subr.bf16.mxu0 %v4984_v18 }
 0x377   :  { %4341 = vmatprep.subr.bf16.mxu1 %v4984_v18 }
 0x379   :  { %4310 = vmatpush1.bf16.msra.mxu0 %v6322_v29 }
 0x37a   :  { %4343 = vmatpush1.bf16.msra.mxu1 %v6290_v34  ;;  %4311 = vmatprep.subr.bf16.mxu0 %v4984_v18 }
 0x37b   :  { %4344 = vmatprep.subr.bf16.mxu1 %v4984_v18 }
 0x37d   :  { %4313 = vmatpush1.bf16.msra.mxu0 %v6337_v56 }
 0x37e   :  { %4346 = vmatpush1.bf16.msra.mxu1 %v6322_v29  ;;  %4314 = vmatprep.subr.bf16.mxu0 %v4984_v18 }
 0x37f   :  { %4347 = vmatprep.subr.bf16.mxu1 %v4984_v18 }
 0x381   :  { %4316 = vmatpush1.bf16.msra.mxu0 %v6349_v2 }
 0x382   :  { %4349 = vmatpush1.bf16.msra.mxu1 %v6337_v56  ;;  %4317 = vmatprep.subr.bf16.mxu0 %v4984_v18 }
 0x383   :  { %4350 = vmatprep.subr.bf16.mxu1 %v4984_v18 }
 0x385   :  { %4319 = vmatpush1.bf16.msra.mxu0 %v6361_v4 }
 0x386   :  { %4352 = vmatpush1.bf16.msra.mxu1 %v6349_v2  ;;  %4320 = vmatprep.subr.bf16.mxu0 %v4984_v18 }
 0x387   :  { %4353 = vmatprep.subr.bf16.mxu1 %v4984_v18 }
 0x389   :  { %4322 = vmatpush1.bf16.msra.mxu0 %v6373_v26 }
 0x38a   :  { %4355 = vmatpush1.bf16.msra.mxu1 %v6361_v4  ;;  %4323 = vmatprep.subr.bf16.mxu0 %v4984_v18 }
 0x38b   :  { %4356 = vmatprep.subr.bf16.mxu1 %v4984_v18 }
 0x38d   :  { %4325 = vmatpush1.bf16.msra.mxu0 %v6385_v14 }
 0x38e   :  { %4358 = vmatpush1.bf16.msra.mxu1 %v6373_v26  ;;  %4326 = vmatprep.subr.bf16.mxu0 %v4984_v18 }
 0x38f   :  { %4359 = vmatprep.subr.bf16.mxu1 %v4984_v18 }
 0x391   :  { %4328 = vmatpush1.bf16.msra.mxu0 %v6397_v43 }
 0x392   :  { %4361 = vmatpush1.bf16.msra.mxu1 %v6385_v14  ;;  %4329 = vmatprep.subr.bf16.mxu0 %v4984_v18 }
 0x393   :  { %4362 = vmatprep.subr.bf16.mxu1 %v4984_v18 }
 0x395   :  { %4331 = vmatpush1.bf16.msra.mxu0 %v6409_v54 }
 0x396   :  { %4364 = vmatpush1.bf16.msra.mxu1 %v6397_v43  ;;  %4332 = vmatprep.subr.bf16.mxu0 %v4984_v18 }
 0x397   :  { %4365 = vmatprep.subr.bf16.mxu1 %v4984_v18 }
 0x399   :  { %4334 = vmatpush1.bf16.msra.mxu0 %v6421_v21 }
 0x39a   :  { %4367 = vmatpush1.bf16.msra.mxu1 %v6409_v54  ;;  %4371 = vmatprep.subr.bf16.mxu0 %v4984_v18 }
 0x39b   :  { %4368 = vmatprep.subr.bf16.mxu1 %v4984_v18 }
 0x39c   :  { %2417 = vmatmul.mubr.f32.vlgmr.msra.gmra.mrb[44].mxu0 %v2349_v17  ;;  %v2645_v17 = vld [vmem:[%s7400_s7 + $0x120] sm:$0xff] }
 0x39d   :  { %4373 = vmatpush1.bf16.msra.mxu0 %v6249_v41  ;;  %3826 = vmatprep.mubr.msk.f32.mxu0 %vm938_vm4, %v6326_v16  ;;  %v2615_v41 = vld [vmem:[%s7400_s7 + $0x30] sm:$0xff]  ;;  %v2628_v16 = vld [vmem:[%s7400_s7 + $0x98] sm:$0xff]  ;;  %v6749_v58 = vpack.c.bf16 %v2647_v63, %v2645_v17 }
 0x39e   :  { %4370 = vmatpush1.bf16.msra.mxu1 %v6421_v21  ;;  %4374 = vmatprep.subr.bf16.mxu0 %v4984_v18  ;;  %v6589_v5 = vpack.c.bf16 %v2615_v41, %v2613_v35  ;;  %v2651_v35 = vld [vmem:[%s7400_s7 + $0x150] sm:$0xff]  ;;  %v2656_v41 = vld [vmem:[%s7400_s7 + $0x178] sm:$0xff] }
 0x39f   :  { %4408 = vmatprep.subr.bf16.mxu1 %v6548_v62 }
 0x3a1   :  { %2510 = vmatmul.mubr.f32.vlgmr.msra.gmra.mrb[36].mxu1 %v2442_v49  ;;  %4376 = vmatpush1.bf16.msra.mxu0 %v6263_v15  ;;  %v2622_v15 = vld [vmem:[%s7400_s7 + $0x68] sm:$0xff]  ;;  %v6769_v49 = vpack.c.bf16 %v2651_v35, %v2649_v59  ;;  %v2673_v35 = vld [vmem:[%s7400_s7 + $0x200] sm:$0xff] }
 0x3a2   :  { %4377 = vmatprep.subr.bf16.mxu0 %v4984_v18  ;;  %4410 = vmatpush1.bf16.msra.mxu1 %v6567_v38  ;;  %v6612_v13 = vpack.c.bf16 %v2624_v22, %v2622_v15  ;;  %v2660_v15 = vld [vmem:[%s7400_s7 + $0x198] sm:$0xff]  ;;  %v6789_v22 = vpack.c.bf16 %v2655_v28, %v2653_v23  ;;  %v2678_v28 = vld [vmem:[%s7400_s7 + $0x228] sm:$0xff] }
 0x3a3   :  { %4412 = vmatprep.subr.bf16.mxu1 %v6570_v7 }
 0x3a5   :  { %4379 = vmatpush1.bf16.msra.mxu0 %v6290_v34  ;;  %v2626_v34 = vld [vmem:[%s7400_s7 + $0x88] sm:$0xff] }
 0x3a6   :  { %4380 = vmatprep.subr.bf16.mxu0 %v4984_v18  ;;  %4414 = vmatpush1.bf16.msra.mxu1 %v6589_v5  ;;  %v6632_v46 = vpack.c.bf16 %v2628_v16, %v2626_v34  ;;  %v2657_v34 = vld [vmem:[%s7400_s7 + $0x180] sm:$0xff]  ;;  %v2662_v16 = vld [vmem:[%s7400_s7 + $0x1a8] sm:$0xff] }
 0x3a7   :  { %4416 = vmatprep.subr.bf16.mxu1 %v6592_v60  ;;  %v6814_v30 = vpack.c.bf16 %v2664_v45, %v2662_v16  ;;  %v2679_v16 = vld [vmem:[%s7400_s7 + $0x230] sm:$0xff]  ;;  %v2682_v45 = vld [vmem:[%s7400_s7 + $0x248] sm:$0xff] }
 0x3a9   :  { %4382 = vmatpush1.bf16.msra.mxu0 %v6322_v29  ;;  %v2630_v29 = vld [vmem:[%s7400_s7 + $0xa8] sm:$0xff] }
 0x3aa   :  { %4383 = vmatprep.subr.bf16.mxu0 %v4984_v18  ;;  %4418 = vmatpush1.bf16.msra.mxu1 %v6609_v0  ;;  %v6652_v6 = vpack.c.bf16 %v2632_v3, %v2630_v29  ;;  %v2661_v29 = vld [vmem:[%s7400_s7 + $0x1a0] sm:$0xff]  ;;  %v2663_v3 = vld [vmem:[%s7400_s7 + $0x1b0] sm:$0xff] }
 0x3ab   :  { %4420 = vmatprep.subr.bf16.mxu1 %v6612_v13 }
 0x3ad   :  { %4385 = vmatpush1.bf16.msra.mxu0 %v6337_v56  ;;  %v2634_v56 = vld [vmem:[%s7400_s7 + $0xc8] sm:$0xff] }
 0x3ae   :  { %4386 = vmatprep.subr.bf16.mxu0 %v4984_v18  ;;  %4422 = vmatpush1.bf16.msra.mxu1 %v6629_v55  ;;  %v6672_v51 = vpack.c.bf16 %v2636_v1, %v2634_v56  ;;  %v6831_v56 = vpack.c.bf16 %v2663_v3, %v2661_v29  ;;  %v6834_v1 = vpack.c.bf16 %v2668_v39, %v2666_v32  ;;  %v2684_v29 = vld [vmem:[%s7400_s7 + $0x258] sm:$0xff]  ;;  %v4985_v32 = vmov 0.0  }
 0x3af   :  { %4424 = vmatprep.subr.bf16.mxu1 %v6632_v46  ;;  %v6947_v39 = vpack.c.bf16 %v2684_v29, %v2682_v45  ;;  %v2698_v45 = vld [vmem:[%s7400_s7 + $0x2c8] sm:$0xff]  ;;  %v2700_v29 = vld [vmem:[%s7400_s7 + $0x2d8] sm:$0xff] }
 0x3b1   :  { %4388 = vmatpush1.bf16.msra.mxu0 %v6349_v2  ;;  %v2638_v2 = vld [vmem:[%s7400_s7 + $0xe8] sm:$0xff] }
 0x3b2   :  { %4389 = vmatprep.subr.bf16.mxu0 %v4984_v18  ;;  %4426 = vmatpush1.bf16.msra.mxu1 %v6649_v61  ;;  %v6692_v44 = vpack.c.bf16 %v2640_v33, %v2638_v2  ;;  %v2670_v2 = vld [vmem:[%s7400_s7 + $0x1e8] sm:$0xff]  ;;  %v2672_v33 = vld [vmem:[%s7400_s7 + $0x1f8] sm:$0xff] }
 0x3b3   :  { %4428 = vmatprep.subr.bf16.mxu1 %v6652_v6  ;;  %v6854_v9 = vpack.c.bf16 %v2672_v33, %v2670_v2  ;;  %v2686_v2 = vld [vmem:[%s7400_s7 + $0x268] sm:$0xff]  ;;  %v2688_v33 = vld [vmem:[%s7400_s7 + $0x278] sm:$0xff] }
 0x3b5   :  { %4391 = vmatpush1.bf16.msra.mxu0 %v6361_v4  ;;  %v2642_v4 = vld [vmem:[%s7400_s7 + $0x108] sm:$0xff] }
 0x3b6   :  { %4392 = vmatprep.subr.bf16.mxu0 %v4984_v18  ;;  %4430 = vmatpush1.bf16.msra.mxu1 %v6669_v47  ;;  %v6712_v8 = vpack.c.bf16 %v2644_v20, %v2642_v4  ;;  %v2669_v4 = vld [vmem:[%s7400_s7 + $0x1e0] sm:$0xff]  ;;  %v2671_v20 = vld [vmem:[%s7400_s7 + $0x1f0] sm:$0xff] }
 0x3b7   :  { %4432 = vmatprep.subr.bf16.mxu1 %v6672_v51 }
 0x3b9   :  { %4394 = vmatpush1.bf16.msra.mxu0 %v6373_v26  ;;  %v2646_v26 = vld [vmem:[%s7400_s7 + $0x128] sm:$0xff] }
 0x3ba   :  { %4395 = vmatprep.subr.bf16.mxu0 %v4984_v18  ;;  %4434 = vmatpush1.bf16.msra.mxu1 %v6689_v53  ;;  %v6732_v57 = vpack.c.bf16 %v2648_v27, %v2646_v26  ;;  %v6871_v26 = vpack.c.bf16 %v2671_v20, %v2669_v4  ;;  %v6874_v27 = vpack.c.bf16 %v2676_v52, %v2674_v31  ;;  %v2685_v31 = vld [vmem:[%s7400_s7 + $0x260] sm:$0xff]  ;;  %v2687_v52 = vld [vmem:[%s7400_s7 + $0x270] sm:$0xff] }
 0x3bb   :  { %4436 = vmatprep.subr.bf16.mxu1 %v6692_v44  ;;  %v6962_v4 = vpack.c.bf16 %v2683_v50, %v2681_v10  ;;  %v6965_v20 = vpack.c.bf16 %v2688_v33, %v2686_v2  ;;  %v7019_v50 = vpack.c.bf16 %v2700_v29, %v2698_v45  ;;  %v2697_v2 = vld [vmem:[%s7400_s7 + $0x2c0] sm:$0xff]  ;;  %v2699_v33 = vld [vmem:[%s7400_s7 + $0x2d0] sm:$0xff] }
 0x3bd   :  { %4397 = vmatpush1.bf16.msra.mxu0 %v6385_v14  ;;  %v2650_v14 = vld [vmem:[%s7400_s7 + $0x148] sm:$0xff] }
 0x3be   :  { %4398 = vmatprep.subr.bf16.mxu0 %v4984_v18  ;;  %4438 = vmatpush1.bf16.msra.mxu1 %v6709_v40  ;;  %v6752_v25 = vpack.c.bf16 %v2652_v24, %v2650_v14  ;;  %v6905_v14 = vld [vmem:[%s7399_s6] ss:$0 sm:$0xff] }
 0x3bf   :  { %4440 = vmatprep.subr.bf16.mxu1 %v6712_v8 }
 0x3c1   :  { %4400 = vmatpush1.bf16.msra.mxu0 %v6397_v43  ;;  %v2654_v43 = vld [vmem:[%s7400_s7 + $0x168] sm:$0xff] }
 0x3c2   :  { %4401 = vmatprep.subr.bf16.mxu0 %v4984_v18  ;;  %4442 = vmatpush1.bf16.msra.mxu1 %v6729_v36  ;;  %v6772_v48 = vpack.c.bf16 %v2656_v41, %v2654_v43  ;;  %v2675_v43 = vld [vmem:[%s7400_s7 + $0x210] sm:$0xff] }
 0x3c3   :  { %4444 = vmatprep.subr.bf16.mxu1 %v6732_v57 }
 0x3c5   :  { %4403 = vmatpush1.bf16.msra.mxu0 %v6409_v54  ;;  %v2658_v54 = vld [vmem:[%s7400_s7 + $0x188] sm:$0xff] }
 0x3c6   :  { %4404 = vmatprep.subr.bf16.mxu0 %v4984_v18  ;;  %4446 = vmatpush1.bf16.msra.mxu1 %v6749_v58  ;;  %v6794_v37 = vpack.c.bf16 %v2660_v15, %v2658_v54  ;;  %v6924_v15 = vpack.c.bf16 %v2675_v43, %v2673_v35  ;;  %v2689_v35 = vld [vmem:[%s7400_s7 + $0x280] sm:$0xff]  ;;  %v2691_v43 = vld [vmem:[%s7400_s7 + $0x290] sm:$0xff] }
 0x3c7   :  { %4448 = vmatprep.subr.bf16.mxu1 %v6752_v25 }
 0x3c9   :  { %4406 = vmatpush1.bf16.msra.mxu0 %v6421_v21  ;;  %v2659_v21 = vld [vmem:[%s7400_s7 + $0x190] sm:$0xff] }
 0x3ca   :  { %4450 = vmatpush1.bf16.msra.mxu1 %v6769_v49  ;;  %4504 = vmatprep.subr.bf16.mxu0 %v6548_v62  ;;  %v6811_v11 = vpack.c.bf16 %v2659_v21, %v2657_v34  ;;  %v6926_v34 = vpack.c.bf16 %v2680_v12, %v2678_v28  ;;  %v2677_v21 = vld [vmem:[%s7400_s7 + $0x220] sm:$0xff]  ;;  %v2696_v28 = vld [vmem:[%s7400_s7 + $0x2b8] sm:$0xff]  ;;  %v6998_v12 = vpack.c.bf16 %v2691_v43, %v2689_v35  ;;  %v2703_v43 = vld [vmem:[%s7400_s7 + $0x2f0] sm:$0xff] }
 0x3cb   :  { %4452 = vmatprep.subr.bf16.mxu1 %v6772_v48  ;;  %v6943_v3 = vpack.c.bf16 %v2679_v16, %v2677_v21  ;;  %v2693_v21 = vld [vmem:[%s7400_s7 + $0x2a0] sm:$0xff]  ;;  %v2695_v16 = vld [vmem:[%s7400_s7 + $0x2b0] sm:$0xff] }
 0x3cc   :  { %2603 = vmatmul.mubr.f32.vlgmr.msra.gmra.mrb[46].mxu0 %v2535_v19  ;;  %v7016_v10 = vpack.c.bf16 %v2695_v16, %v2693_v21  ;;  %v2701_v35 = vld [vmem:[%s7400_s7 + $0x2e0] sm:$0xff] }
 0x3cd   :  { %4506 = vmatpush1.bf16.msra.mxu0 %v6567_v38 }
 0x3ce   :  { %4454 = vmatpush1.bf16.msra.mxu1 %v6789_v22  ;;  %4508 = vmatprep.subr.bf16.mxu0 %v6570_v7 }
 0x3cf   :  { %4456 = vmatprep.subr.bf16.mxu1 %v6794_v37 }
 0x3d1   :  { %4510 = vmatpush1.bf16.msra.mxu0 %v6589_v5 }
 0x3d2   :  { %4458 = vmatpush1.bf16.msra.mxu1 %v6811_v11  ;;  %4512 = vmatprep.subr.bf16.mxu0 %v6592_v60 }
 0x3d3   :  { %4460 = vmatprep.subr.bf16.mxu1 %v6814_v30 }
 0x3d5   :  { %4514 = vmatpush1.bf16.msra.mxu0 %v6609_v0 }
 0x3d6   :  { %4462 = vmatpush1.bf16.msra.mxu1 %v6831_v56  ;;  %4516 = vmatprep.subr.bf16.mxu0 %v6612_v13 }
 0x3d7   :  { %4464 = vmatprep.subr.bf16.mxu1 %v6834_v1 }
 0x3d9   :  { %4518 = vmatpush1.bf16.msra.mxu0 %v6629_v55 }
 0x3da   :  { %4466 = vmatpush1.bf16.msra.mxu1 %v6851_v42  ;;  %4520 = vmatprep.subr.bf16.mxu0 %v6632_v46 }
 0x3db   :  { %4468 = vmatprep.subr.bf16.mxu1 %v6854_v9 }
 0x3dd   :  { %4522 = vmatpush1.bf16.msra.mxu0 %v6649_v61 }
 0x3de   :  { %4470 = vmatpush1.bf16.msra.mxu1 %v6871_v26  ;;  %4524 = vmatprep.subr.bf16.mxu0 %v6652_v6 }
 0x3df   :  { %4472 = vmatprep.subr.bf16.mxu1 %v6874_v27 }
 0x3e1   :  { %4526 = vmatpush1.bf16.msra.mxu0 %v6669_v47 }
 0x3e2   :  { %4528 = vmatprep.subr.bf16.mxu0 %v6672_v51 }
 0x3e5   :  { %4530 = vmatpush1.bf16.msra.mxu0 %v6689_v53 }
 0x3e6   :  { %4532 = vmatprep.subr.bf16.mxu0 %v6692_v44 }
 0x3e9   :  { %4534 = vmatpush1.bf16.msra.mxu0 %v6709_v40 }
 0x3ea   :  { %4536 = vmatprep.subr.bf16.mxu0 %v6712_v8 }
 0x3ed   :  { %4538 = vmatpush1.bf16.msra.mxu0 %v6729_v36 }
 0x3ee   :  { %4540 = vmatprep.subr.bf16.mxu0 %v6732_v57 }
 0x3f1   :  { %4542 = vmatpush1.bf16.msra.mxu0 %v6749_v58 }
 0x3f2   :  { %4544 = vmatprep.subr.bf16.mxu0 %v6752_v25 }
 0x3f5   :  { %4546 = vmatpush1.bf16.msra.mxu0 %v6769_v49 }
 0x3f6   :  { %4548 = vmatprep.subr.bf16.mxu0 %v6772_v48 }
 0x3f9   :  { %4550 = vmatpush1.bf16.msra.mxu0 %v6789_v22 }
 0x3fa   :  { %4552 = vmatprep.subr.bf16.mxu0 %v6794_v37 }
 0x3fd   :  { %4554 = vmatpush1.bf16.msra.mxu0 %v6811_v11 }
 0x3fe   :  { %4556 = vmatprep.subr.bf16.mxu0 %v6814_v30 }
 0x401   :  { %4558 = vmatpush1.bf16.msra.mxu0 %v6831_v56 }
 0x402   :  { %4560 = vmatprep.subr.bf16.mxu0 %v6834_v1 }
 0x405   :  { %4562 = vmatpush1.bf16.msra.mxu0 %v6851_v42 }
 0x406   :  { %4564 = vmatprep.subr.bf16.mxu0 %v6854_v9 }
 0x409   :  { %4566 = vmatpush1.bf16.msra.mxu0 %v6871_v26 }
 0x40a   :  { %4568 = vmatprep.subr.bf16.mxu0 %v6874_v27 }
 0x40f   :  { %v2046_v17 = vpop.f32.mrb[40].mxu0 }
 0x410   :  { %v2048_v63 = vpop.f32.mrb[41].mxu0  ;;  %v2047_v24 = vadd.f32 %v6905_v14, %v2046_v17  ;;  %v2690_v17 = vld [vmem:[%s7400_s7 + $0x288] sm:$0xff] }
 0x411   :  { %v2692_v63 = vld [vmem:[%s7400_s7 + $0x298] sm:$0xff] }
 0x412   :  { %v2050_v19 = vmax.f32 %v2047_v24, 0.0  ;;  %v6980_v24 = vpack.c.bf16 %v2687_v52, %v2685_v31  ;;  %v2702_v31 = vld [vmem:[%s7400_s7 + $0x2e8] sm:$0xff]  ;;  %v2704_v52 = vld [vmem:[%s7400_s7 + $0x2f8] sm:$0xff] }
 0x414   :  { %v2139_v59 = vpop.f32.mrb[32].mxu1 }
 0x415   :  { %v6915_v41 = vadd.f32 %v6905_v14, %v2139_v59  ;;  %v2141_v23 = vpop.f32.mrb[33].mxu1  ;;  %v6983_v59 = vpack.c.bf16 %v2692_v63, %v2690_v17  ;;  %v7034_v17 = vpack.c.bf16 %v2699_v33, %v2697_v2  ;;  %v7037_v63 = vpack.c.bf16 %v2704_v52, %v2702_v31 }
 0x416   :  { %v2694_v23 = vld [vmem:[%s7400_s7 + $0x2a8] sm:$0xff] }
 0x417   :  { %v2143_v54 = vmax.f32 %v6915_v41, 0.0 }
 0x419   :  { %2781 = vmatprep.mubr.f32.mxu1 %v2143_v54 }
 0x41a   :  { %2782 = vmatmul.mubr.f32.vlgmr.msra.gmra.mrb[38].mxu1 %v2050_v19  ;;  %v7001_v19 = vpack.c.bf16 %v2696_v28, %v2694_v23  ;;  %v7046_v23 = vpack.c.bf16 %v2703_v43, %v2701_v35 }
 0x41b   :  { %4474 = vmatpush1.bf16.msra.mxu1 %v6924_v15  ;;  %2852 = vmatprep.mubr.f32.mxu1 %v4985_v32 }
 0x41c   :  { %4476 = vmatprep.subr.bf16.mxu1 %v6926_v34 }
 0x41f   :  { %4478 = vmatpush1.bf16.msra.mxu1 %v6943_v3 }
 0x420   :  { %4480 = vmatprep.subr.bf16.mxu1 %v6947_v39 }
 0x423   :  { %4482 = vmatpush1.bf16.msra.mxu1 %v6962_v4 }
 0x424   :  { %4484 = vmatprep.subr.bf16.mxu1 %v6965_v20 }
 0x427   :  { %4486 = vmatpush1.bf16.msra.mxu1 %v6980_v24 }
 0x428   :  { %4488 = vmatprep.subr.bf16.mxu1 %v6983_v59 }
 0x42b   :  { %4490 = vmatpush1.bf16.msra.mxu1 %v6998_v12 }
 0x42c   :  { %4492 = vmatprep.subr.bf16.mxu1 %v7001_v19 }
 0x42f   :  { %4494 = vmatpush1.bf16.msra.mxu1 %v7016_v10 }
 0x430   :  { %4496 = vmatprep.subr.bf16.mxu1 %v7019_v50 }
 0x433   :  { %4498 = vmatpush1.bf16.msra.mxu1 %v7034_v17 }
 0x434   :  { %4500 = vmatprep.subr.bf16.mxu1 %v7037_v63 }
 0x437   :  { %4502 = vmatpush1.bf16.msra.mxu1 %v7046_v23 }
 0x438   :  { %4600 = vmatprep.subr.bf16.mxu1 %v6548_v62 }
 0x43f   :  { %v2232_v28 = vpop.f32.mrb[42].mxu0 }
 0x440   :  { %v2233_v21 = vadd.f32 %v6905_v14, %v2232_v28  ;;  %v2234_v16 = vpop.f32.mrb[43].mxu0 }
 0x442   :  { %v7052_v45 = vmax.f32 %v2233_v21, 0.0 }
 0x444   :  { %v2325_v29 = vpop.f32.mrb[34].mxu1  ;;  %2853 = vmatmul.mubr.f32.vlgmr.msra.gmra.mrb[38].mxu1 %v7052_v45  ;;  %2927 = vmatprep.mubr.f32.mxu0 %v7052_v45 }
 0x445   :  { %v2326_v2 = vadd.f32 %v6905_v14, %v2325_v29  ;;  %v2327_v33 = vpop.f32.mrb[35].mxu1  ;;  %4602 = vmatpush1.bf16.msra.mxu1 %v6567_v38  ;;  %2928 = vmatmul.mubr.f32.vlgmr.msra.gmra.mrb[48].mxu0 %v2143_v54 }
 0x446   :  { %4570 = vmatpush1.bf16.msra.mxu0 %v6924_v15  ;;  %4604 = vmatprep.subr.bf16.mxu1 %v6570_v7 }
 0x447   :  { %v7062_v31 = vmax.f32 %v2326_v2, 0.0  ;;  %4572 = vmatprep.subr.bf16.mxu0 %v6926_v34  ;;  %2998 = vmatprep.mubr.f32.mxu0 %v4985_v32 }
 0x449   :  { %3073 = vmatprep.mubr.f32.mxu1 %v7062_v31  ;;  %4606 = vmatpush1.bf16.msra.mxu1 %v6589_v5 }
 0x44a   :  { %4574 = vmatpush1.bf16.msra.mxu0 %v6943_v3  ;;  %4608 = vmatprep.subr.bf16.mxu1 %v6592_v60 }
 0x44b   :  { %4576 = vmatprep.subr.bf16.mxu0 %v6947_v39 }
 0x44d   :  { %4610 = vmatpush1.bf16.msra.mxu1 %v6609_v0 }
 0x44e   :  { %4578 = vmatpush1.bf16.msra.mxu0 %v6962_v4  ;;  %4612 = vmatprep.subr.bf16.mxu1 %v6612_v13 }
 0x44f   :  { %4580 = vmatprep.subr.bf16.mxu0 %v6965_v20 }
 0x451   :  { %4614 = vmatpush1.bf16.msra.mxu1 %v6629_v55 }
 0x452   :  { %4582 = vmatpush1.bf16.msra.mxu0 %v6980_v24  ;;  %4616 = vmatprep.subr.bf16.mxu1 %v6632_v46 }
 0x453   :  { %4584 = vmatprep.subr.bf16.mxu0 %v6983_v59 }
 0x455   :  { %4618 = vmatpush1.bf16.msra.mxu1 %v6649_v61 }
 0x456   :  { %4586 = vmatpush1.bf16.msra.mxu0 %v6998_v12  ;;  %4620 = vmatprep.subr.bf16.mxu1 %v6652_v6 }
 0x457   :  { %4588 = vmatprep.subr.bf16.mxu0 %v7001_v19 }
 0x459   :  { %4622 = vmatpush1.bf16.msra.mxu1 %v6669_v47 }
 0x45a   :  { %4590 = vmatpush1.bf16.msra.mxu0 %v7016_v10  ;;  %4624 = vmatprep.subr.bf16.mxu1 %v6672_v51 }
 0x45b   :  { %4592 = vmatprep.subr.bf16.mxu0 %v7019_v50 }
 0x45d   :  { %4626 = vmatpush1.bf16.msra.mxu1 %v6689_v53 }
 0x45e   :  { %4594 = vmatpush1.bf16.msra.mxu0 %v7034_v17  ;;  %4628 = vmatprep.subr.bf16.mxu1 %v6692_v44 }
 0x45f   :  { %4596 = vmatprep.subr.bf16.mxu0 %v7037_v63 }
 0x461   :  { %4630 = vmatpush1.bf16.msra.mxu1 %v6709_v40 }
 0x462   :  { %4598 = vmatpush1.bf16.msra.mxu0 %v7046_v23  ;;  %4632 = vmatprep.subr.bf16.mxu1 %v6712_v8 }
 0x463   :  { %4696 = vmatprep.subr.bf16.mxu0 %v6548_v62 }
 0x465   :  { %2999 = vmatmul.mubr.f32.vlgmr.msra.gmra.mrb[48].mxu0 %v7062_v31  ;;  %4634 = vmatpush1.bf16.msra.mxu1 %v6729_v36 }
 0x466   :  { %4698 = vmatpush1.bf16.msra.mxu0 %v6567_v38  ;;  %4636 = vmatprep.subr.bf16.mxu1 %v6732_v57 }
 0x467   :  { %4700 = vmatprep.subr.bf16.mxu0 %v6570_v7 }
 0x469   :  { %4638 = vmatpush1.bf16.msra.mxu1 %v6749_v58 }
 0x46a   :  { %4702 = vmatpush1.bf16.msra.mxu0 %v6589_v5  ;;  %4640 = vmatprep.subr.bf16.mxu1 %v6752_v25 }
 0x46b   :  { %4704 = vmatprep.subr.bf16.mxu0 %v6592_v60 }
 0x46d   :  { %4642 = vmatpush1.bf16.msra.mxu1 %v6769_v49 }
 0x46e   :  { %4706 = vmatpush1.bf16.msra.mxu0 %v6609_v0  ;;  %4644 = vmatprep.subr.bf16.mxu1 %v6772_v48 }
 0x46f   :  { %v2418_v41 = vpop.f32.mrb[44].mxu0  ;;  %4708 = vmatprep.subr.bf16.mxu0 %v6612_v13 }
 0x470   :  { %v2419_v54 = vadd.f32 %v6905_v14, %v2418_v41  ;;  %v2420_v52 = vpop.f32.mrb[45].mxu0 }
 0x471   :  { %4646 = vmatpush1.bf16.msra.mxu1 %v6789_v22 }
 0x472   :  { %v7110_v35 = vmax.f32 %v2419_v54, 0.0  ;;  %4710 = vmatpush1.bf16.msra.mxu0 %v6629_v55  ;;  %4648 = vmatprep.subr.bf16.mxu1 %v6794_v37 }
 0x473   :  { %4712 = vmatprep.subr.bf16.mxu0 %v6632_v46 }
 0x474   :  { %v2511_v43 = vpop.f32.mrb[36].mxu1  ;;  %3219 = vmatprep.mubr.f32.mxu0 %v7110_v35 }
 0x475   :  { %v2513_v28 = vpop.f32.mrb[37].mxu1  ;;  %4650 = vmatpush1.bf16.msra.mxu1 %v6811_v11  ;;  %v2512_v16 = vadd.f32 %v6905_v14, %v2511_v43  ;;  %v3459_v43 = vld [vmem:[%s7402_s9 + $0x50] sm:$0xff] }
 0x476   :  { %4714 = vmatpush1.bf16.msra.mxu0 %v6649_v61  ;;  %4652 = vmatprep.subr.bf16.mxu1 %v6814_v30  ;;  %v3460_v28 = vld [vmem:[%s7402_s9 + $0x58] sm:$0xff] }
 0x477   :  { %4716 = vmatprep.subr.bf16.mxu0 %v6652_v6  ;;  %v2515_v29 = vmax.f32 %v2512_v16, 0.0  ;;  %v3477_v16 = vld [vmem:[%s7402_s9 + $0xe0] sm:$0xff] }
 0x479   :  { %4654 = vmatpush1.bf16.msra.mxu1 %v6831_v56 }
 0x47a   :  { %4718 = vmatpush1.bf16.msra.mxu0 %v6669_v47  ;;  %4656 = vmatprep.subr.bf16.mxu1 %v6834_v1 }
 0x47b   :  { %4720 = vmatprep.subr.bf16.mxu0 %v6672_v51 }
 0x47d   :  { %4658 = vmatpush1.bf16.msra.mxu1 %v6851_v42 }
 0x47e   :  { %4722 = vmatpush1.bf16.msra.mxu0 %v6689_v53  ;;  %4660 = vmatprep.subr.bf16.mxu1 %v6854_v9 }
 0x47f   :  { %4724 = vmatprep.subr.bf16.mxu0 %v6692_v44 }
 0x481   :  { %4662 = vmatpush1.bf16.msra.mxu1 %v6871_v26 }
 0x482   :  { %4726 = vmatpush1.bf16.msra.mxu0 %v6709_v40  ;;  %4664 = vmatprep.subr.bf16.mxu1 %v6874_v27 }
 0x483   :  { %4728 = vmatprep.subr.bf16.mxu0 %v6712_v8 }
 0x484   :  { %3074 = vmatmul.mubr.f32.vlgmr.msra.gmra.mrb[40].mxu1 %v7052_v45 }
 0x485   :  { %4666 = vmatpush1.bf16.msra.mxu1 %v6924_v15  ;;  %3144 = vmatprep.mubr.f32.mxu1 %v4985_v32 }
 0x486   :  { %4730 = vmatpush1.bf16.msra.mxu0 %v6729_v36  ;;  %4668 = vmatprep.subr.bf16.mxu1 %v6926_v34 }
 0x487   :  { %4732 = vmatprep.subr.bf16.mxu0 %v6732_v57 }
 0x489   :  { %4670 = vmatpush1.bf16.msra.mxu1 %v6943_v3 }
 0x48a   :  { %4734 = vmatpush1.bf16.msra.mxu0 %v6749_v58  ;;  %4672 = vmatprep.subr.bf16.mxu1 %v6947_v39 }
 0x48b   :  { %4736 = vmatprep.subr.bf16.mxu0 %v6752_v25 }
 0x48d   :  { %4674 = vmatpush1.bf16.msra.mxu1 %v6962_v4 }
 0x48e   :  { %4738 = vmatpush1.bf16.msra.mxu0 %v6769_v49  ;;  %4676 = vmatprep.subr.bf16.mxu1 %v6965_v20 }
 0x48f   :  { %4740 = vmatprep.subr.bf16.mxu0 %v6772_v48 }
 0x491   :  { %4678 = vmatpush1.bf16.msra.mxu1 %v6980_v24 }
 0x492   :  { %4742 = vmatpush1.bf16.msra.mxu0 %v6789_v22  ;;  %4680 = vmatprep.subr.bf16.mxu1 %v6983_v59 }
 0x493   :  { %4744 = vmatprep.subr.bf16.mxu0 %v6794_v37 }
 0x495   :  { %4682 = vmatpush1.bf16.msra.mxu1 %v6998_v12 }
 0x496   :  { %4746 = vmatpush1.bf16.msra.mxu0 %v6811_v11  ;;  %4684 = vmatprep.subr.bf16.mxu1 %v7001_v19 }
 0x497   :  { %4748 = vmatprep.subr.bf16.mxu0 %v6814_v30 }
 0x499   :  { %4686 = vmatpush1.bf16.msra.mxu1 %v7016_v10 }
 0x49a   :  { %4750 = vmatpush1.bf16.msra.mxu0 %v6831_v56  ;;  %4688 = vmatprep.subr.bf16.mxu1 %v7019_v50 }
 0x49b   :  { %4752 = vmatprep.subr.bf16.mxu0 %v6834_v1 }
 0x49d   :  { %4690 = vmatpush1.bf16.msra.mxu1 %v7034_v17 }
 0x49e   :  { %4754 = vmatpush1.bf16.msra.mxu0 %v6851_v42  ;;  %4692 = vmatprep.subr.bf16.mxu1 %v7037_v63 }
 0x49f   :  { %v7161_v21 = vpop.f32.mrb[46].mxu0  ;;  %4756 = vmatprep.subr.bf16.mxu0 %v6854_v9 }
 0x4a0   :  { %v2606_v45 = vpop.f32.mrb[47].mxu0 }
 0x4a1   :  { %4694 = vmatpush1.bf16.msra.mxu1 %v7046_v23  ;;  %v3478_v45 = vld [vmem:[%s7402_s9 + $0xe8] sm:$0xff] }
 0x4a2   :  { %4758 = vmatpush1.bf16.msra.mxu0 %v6871_v26  ;;  %4792 = vmatprep.subr.bf16.mxu1 %v6548_v62  ;;  %v2605_v62 = vadd.f32 %v6905_v14, %v7161_v21  ;;  %v3457_v14 = vld [vmem:[%s7402_s9 + $0x40] sm:$0xff]  ;;  %v4909_v21 = vpack.c.bf16 %v3460_v28, %v3459_v43 }
 0x4a3   :  { %4760 = vmatprep.subr.bf16.mxu0 %v6874_v27 }
 0x4a4   :  { %3145 = vmatmul.mubr.f32.vlgmr.msra.gmra.mrb[40].mxu1 %v7110_v35 }
 0x4a5   :  { %3220 = vmatmul.mubr.f32.vlgmr.msra.gmra.mrb[50].mxu0 %v7062_v31  ;;  %4794 = vmatpush1.bf16.msra.mxu1 %v6567_v38  ;;  %v2608_v38 = vmax.f32 %v2605_v62, 0.0  ;;  %v4911_v62 = vpack.c.bf16 %v3478_v45, %v3477_v16 }
 0x4a6   :  { %3365 = vmatprep.mubr.f32.mxu1 %v2515_v29  ;;  %4762 = vmatpush1.bf16.msra.mxu0 %v6924_v15 }
 0x4a7   :  { %4796 = vmatprep.subr.bf16.mxu1 %v6570_v7  ;;  %4764 = vmatprep.subr.bf16.mxu0 %v6926_v34 }
 0x4a8   :  { %3290 = vmatprep.mubr.f32.mxu0 %v4985_v32 }
 0x4a9   :  { %4798 = vmatpush1.bf16.msra.mxu1 %v6589_v5 }
 0x4aa   :  { %4766 = vmatpush1.bf16.msra.mxu0 %v6943_v3  ;;  %4800 = vmatprep.subr.bf16.mxu1 %v6592_v60  ;;  %v3465_v60 = vld [vmem:[%s7402_s9 + $0x80] sm:$0xff] }
 0x4ab   :  { %4768 = vmatprep.subr.bf16.mxu0 %v6947_v39 }
 0x4ad   :  { %4802 = vmatpush1.bf16.msra.mxu1 %v6609_v0  ;;  %v3466_v0 = vld [vmem:[%s7402_s9 + $0x88] sm:$0xff] }
 0x4ae   :  { %4770 = vmatpush1.bf16.msra.mxu0 %v6962_v4  ;;  %4804 = vmatprep.subr.bf16.mxu1 %v6612_v13  ;;  %v3449_v13 = vld [vmem:[%s7402_s9] sm:$0xff] }
 0x4af   :  { %4772 = vmatprep.subr.bf16.mxu0 %v6965_v20 }
 0x4b1   :  { %4806 = vmatpush1.bf16.msra.mxu1 %v6629_v55  ;;  %v4887_v55 = vpack.c.bf16 %v3466_v0, %v3465_v60 }
 0x4b2   :  { %4774 = vmatpush1.bf16.msra.mxu0 %v6980_v24  ;;  %4808 = vmatprep.subr.bf16.mxu1 %v6632_v46  ;;  %v3450_v46 = vld [vmem:[%s7402_s9 + $0x8] sm:$0xff] }
 0x4b3   :  { %4776 = vmatprep.subr.bf16.mxu0 %v6983_v59 }
 0x4b5   :  { %4810 = vmatpush1.bf16.msra.mxu1 %v6649_v61  ;;  %v3467_v61 = vld [vmem:[%s7402_s9 + $0x90] sm:$0xff] }
 0x4b6   :  { %4778 = vmatpush1.bf16.msra.mxu0 %v6998_v12  ;;  %4812 = vmatprep.subr.bf16.mxu1 %v6652_v6  ;;  %v3468_v6 = vld [vmem:[%s7402_s9 + $0x98] sm:$0xff] }
 0x4b7   :  { %4780 = vmatprep.subr.bf16.mxu0 %v7001_v19 }
 0x4b9   :  { %4814 = vmatpush1.bf16.msra.mxu1 %v6669_v47  ;;  %v4889_v47 = vpack.c.bf16 %v3450_v46, %v3449_v13  ;;  %v3463_v13 = vld [vmem:[%s7402_s9 + $0x70] sm:$0xff] }
 0x4ba   :  { %4782 = vmatpush1.bf16.msra.mxu0 %v7016_v10  ;;  %4816 = vmatprep.subr.bf16.mxu1 %v6672_v51  ;;  %v4891_v51 = vpack.c.bf16 %v3468_v6, %v3467_v61 }
 0x4bb   :  { %4784 = vmatprep.subr.bf16.mxu0 %v7019_v50 }
 0x4bd   :  { %4818 = vmatpush1.bf16.msra.mxu1 %v6689_v53  ;;  %v3451_v53 = vld [vmem:[%s7402_s9 + $0x10] sm:$0xff] }
 0x4be   :  { %4786 = vmatpush1.bf16.msra.mxu0 %v7034_v17  ;;  %4820 = vmatprep.subr.bf16.mxu1 %v6692_v44  ;;  %v3452_v44 = vld [vmem:[%s7402_s9 + $0x18] sm:$0xff] }
 0x4bf   :  { %4788 = vmatprep.subr.bf16.mxu0 %v7037_v63 }
 0x4c1   :  { %4822 = vmatpush1.bf16.msra.mxu1 %v6709_v40  ;;  %v3469_v40 = vld [vmem:[%s7402_s9 + $0xa0] sm:$0xff] }
 0x4c2   :  { %4790 = vmatpush1.bf16.msra.mxu0 %v7046_v23  ;;  %4824 = vmatprep.subr.bf16.mxu1 %v6712_v8  ;;  %v3470_v8 = vld [vmem:[%s7402_s9 + $0xa8] sm:$0xff] }
 0x4c3   :  { %4888 = vmatprep.subr.bf16.mxu0 %v4887_v55  ;;  %v3464_v55 = vld [vmem:[%s7402_s9 + $0x78] sm:$0xff] }
 0x4c4   :  { %v4917_v46 = vpack.c.bf16 %v3464_v55, %v3463_v13 }
 0x4c5   :  { %3291 = vmatmul.mubr.f32.vlgmr.msra.gmra.mrb[50].mxu0 %v2515_v29  ;;  %4826 = vmatpush1.bf16.msra.mxu1 %v6729_v36  ;;  %v4893_v36 = vpack.c.bf16 %v3452_v44, %v3451_v53  ;;  %v3461_v29 = vld [vmem:[%s7402_s9 + $0x60] sm:$0xff] }
 0x4c6   :  { %4828 = vmatprep.subr.bf16.mxu1 %v6732_v57  ;;  %4890 = vmatpush3.bf16.msra.mxu0 %v4889_v47  ;;  %v4895_v57 = vpack.c.bf16 %v3470_v8, %v3469_v40 }
 0x4c7   :  { %4892 = vmatprep.subr.bf16.mxu0 %v4891_v51 }
 0x4c9   :  { %4830 = vmatpush1.bf16.msra.mxu1 %v6749_v58  ;;  %v3453_v58 = vld [vmem:[%s7402_s9 + $0x20] sm:$0xff] }
 0x4ca   :  { %4832 = vmatprep.subr.bf16.mxu1 %v6752_v25  ;;  %v3454_v25 = vld [vmem:[%s7402_s9 + $0x28] sm:$0xff]  ;;  %4894 = vmatpush3.bf16.msra.mxu0 %v4893_v36 }
 0x4cb   :  { %4896 = vmatprep.subr.bf16.mxu0 %v4895_v57 }
 0x4cd   :  { %4834 = vmatpush1.bf16.msra.mxu1 %v6769_v49  ;;  %v3471_v49 = vld [vmem:[%s7402_s9 + $0xb0] sm:$0xff] }
 0x4ce   :  { %4836 = vmatprep.subr.bf16.mxu1 %v6772_v48  ;;  %v3472_v48 = vld [vmem:[%s7402_s9 + $0xb8] sm:$0xff] }
 0x4d1   :  { %4838 = vmatpush1.bf16.msra.mxu1 %v6789_v22  ;;  %v4897_v22 = vpack.c.bf16 %v3454_v25, %v3453_v58 }
 0x4d2   :  { %4840 = vmatprep.subr.bf16.mxu1 %v6794_v37  ;;  %v2707_v37 = vlaneseq }
 0x4d3   :  { %4898 = vmatpush3.bf16.msra.mxu0 %v4897_v22 }
 0x4d5   :  { %4842 = vmatpush1.bf16.msra.mxu1 %v6811_v11  ;;  %v4899_v11 = vpack.c.bf16 %v3472_v48, %v3471_v49 }
 0x4d6   :  { %4844 = vmatprep.subr.bf16.mxu1 %v6814_v30  ;;  %v3455_v30 = vld [vmem:[%s7402_s9 + $0x30] sm:$0xff] }
 0x4d7   :  { %4900 = vmatprep.subr.bf16.mxu0 %v4899_v11 }
 0x4d9   :  { %4846 = vmatpush1.bf16.msra.mxu1 %v6831_v56  ;;  %v3456_v56 = vld [vmem:[%s7402_s9 + $0x38] sm:$0xff] }
 0x4da   :  { %4848 = vmatprep.subr.bf16.mxu1 %v6834_v1  ;;  %v3473_v1 = vld [vmem:[%s7402_s9 + $0xc0] sm:$0xff] }
 0x4dd   :  { %4850 = vmatpush1.bf16.msra.mxu1 %v6851_v42  ;;  %v3474_v42 = vld [vmem:[%s7402_s9 + $0xc8] sm:$0xff] }
 0x4de   :  { %4852 = vmatprep.subr.bf16.mxu1 %v6854_v9  ;;  %v4901_v9 = vpack.c.bf16 %v3456_v56, %v3455_v30 }
 0x4e0   :  { %4902 = vmatpush3.bf16.msra.mxu0 %v4901_v9 }
 0x4e1   :  { %4854 = vmatpush1.bf16.msra.mxu1 %v6871_v26  ;;  %v2708_v26 = vshrl.u32 %v2707_v37, 7 }
 0x4e2   :  { %4856 = vmatprep.subr.bf16.mxu1 %v6874_v27  ;;  %v4903_v27 = vpack.c.bf16 %v3474_v42, %v3473_v1 }
 0x4e4   :  { %3366 = vmatmul.mubr.f32.vlgmr.msra.gmra.mrb[42].mxu1 %v7110_v35  ;;  %4904 = vmatprep.subr.bf16.mxu0 %v4903_v27  ;;  %v3559_v27 = vld [vmem:[%s7404_s11] sm:$0xff] }
 0x4e5   :  { %4858 = vmatpush1.bf16.msra.mxu1 %v6924_v15  ;;  %3436 = vmatprep.mubr.f32.mxu1 %v4985_v32  ;;  %v3458_v15 = vld [vmem:[%s7402_s9 + $0x48] sm:$0xff] }
 0x4e6   :  { %4860 = vmatprep.subr.bf16.mxu1 %v6926_v34  ;;  %v3475_v34 = vld [vmem:[%s7402_s9 + $0xd0] sm:$0xff] }
 0x4e9   :  { %4862 = vmatpush1.bf16.msra.mxu1 %v6943_v3  ;;  %v3476_v3 = vld [vmem:[%s7402_s9 + $0xd8] sm:$0xff] }
 0x4ea   :  { %4864 = vmatprep.subr.bf16.mxu1 %v6947_v39  ;;  %v4905_v39 = vpack.c.bf16 %v3458_v15, %v3457_v14  ;;  %v3560_v14 = vld [vmem:[%s7404_s11 + $0x8] sm:$0xff] }
 0x4ec   :  { %4906 = vmatpush3.bf16.msra.mxu0 %v4905_v39 }
 0x4ed   :  { %4866 = vmatpush1.bf16.msra.mxu1 %v6962_v4  ;;  %v2709_v4 = vsub.s32 0, %v2708_v26 }
 0x4ee   :  { %4868 = vmatprep.subr.bf16.mxu1 %v6965_v20  ;;  %v4907_v20 = vpack.c.bf16 %v3476_v3, %v3475_v34  ;;  %v4920_v3 = vpack.c.bf16 %v3560_v14, %v3559_v27 }
 0x4f0   :  { %4908 = vmatprep.subr.bf16.mxu0 %v4907_v20  ;;  %v3562_v20 = vld [vmem:[%s7404_s11 + $0x18] sm:$0xff] }
 0x4f1   :  { %4870 = vmatpush1.bf16.msra.mxu1 %v6980_v24  ;;  %v2705_v24 = vld [vmem:[%s7401_s8] sm:$0x3]  ;;  %4910 = vmatpush3.bf16.msra.mxu0 %v4909_v21 }
 0x4f2   :  { %4872 = vmatprep.subr.bf16.mxu1 %v6983_v59  ;;  %v2713_v59 = vsub.s32 1, %v2708_v26  ;;  %4912 = vmatprep.subr.bf16.mxu0 %v4911_v62  ;;  %v3830_v21 = vld [vmem:[%s7407_s14] ss:$0 sm:$0xff] }
 0x4f5   :  { %4874 = vmatpush1.bf16.msra.mxu1 %v6998_v12  ;;  %v2710_v12 = vrot.slane %v2705_v24, %v2709_v4  ;;  %v3561_v4 = vld [vmem:[%s7404_s11 + $0x10] sm:$0xff] }
 0x4f6   :  { %4876 = vmatprep.subr.bf16.mxu1 %v7001_v19  ;;  %v2714_v19 = vrot.slane %v2705_v24, %v2713_v59  ;;  %v4923_v24 = vpack.c.bf16 %v3562_v20, %v3561_v4  ;;  %v3563_v59 = vld [vmem:[%s7404_s11 + $0x20] sm:$0xff] }
 0x4f9   :  { %4878 = vmatpush1.bf16.msra.mxu1 %v7016_v10 }
 0x4fa   :  { %4880 = vmatprep.subr.bf16.mxu1 %v7019_v50 }
 0x4fd   :  { %4882 = vmatpush1.bf16.msra.mxu1 %v7034_v17 }
 0x4fe   :  { %4884 = vmatprep.subr.bf16.mxu1 %v7037_v63 }
 0x501   :  { %4886 = vmatpush1.bf16.msra.mxu1 %v7046_v23 }
 0x504   :  { %3437 = vmatmul.mubr.f32.vlgmr.msra.gmra.mrb[42].mxu1 %v2608_v38  ;;  %v3462_v38 = vld [vmem:[%s7402_s9 + $0x68] sm:$0xff] }
 0x505   :  { %v4913_v60 = vpack.c.bf16 %v3462_v38, %v3461_v29 }
 0x507   :  { %4914 = vmatpush3.bf16.msra.mxu0 %v4913_v60 }
 0x517   :  { %v2854_v7 = vpop.f32.mrb[38].mxu1 }
 0x518   :  { %v2856_v5 = vpop.f32.mrb[39].mxu1  ;;  %v4931_v10 = vadd.f32 %v2854_v7, %v2710_v12  ;;  %v3479_v7 = vld [vmem:[%s7402_s9 + $0xf0] sm:$0xff] }
 0x519   :  { %v4932_v50 = vadd.f32 %v2856_v5, %v2714_v19  ;;  %v3480_v5 = vld [vmem:[%s7402_s9 + $0xf8] sm:$0xff] }
 0x51a   :  { %v2859_v33 = vmax.f32 %v4931_v10, 0.0  ;;  %v4915_v0 = vpack.c.bf16 %v3480_v5, %v3479_v7 }
 0x51b   :  { %v2860_v41 = vmax.f32 %v4932_v50, 0.0  ;;  %v3566_v50 = vld [vmem:[%s7404_s11 + $0x38] sm:$0xff] }
 0x51c   :  { %4916 = vmatprep.subr.bf16.mxu0 %v4915_v0 }
 0x51d   :  { %4918 = vmatpush3.bf16.msra.mxu0 %v4917_v46 }
 0x51e   :  { %4919 = vmatprep.subr.bf16.mxu0 %v4984_v18 }
 0x538   :  { %v3000_v17 = vpop.f32.mrb[48].mxu0 }
 0x539   :  { %v4933_v63 = vadd.f32 %v3000_v17, %v2710_v12  ;;  %v3002_v23 = vpop.f32.mrb[49].mxu0 }
 0x53a   :  { %v4934_v2 = vadd.f32 %v3002_v23, %v2714_v19  ;;  %v3827_v23 = vld [vmem:[%s7403_s10] ss:$0 sm:$0xff] }
 0x53b   :  { %v3005_v31 = vmax.f32 %v4933_v63, 0.0 }
 0x53c   :  { %v3006_v54 = vmax.f32 %v4934_v2, 0.0 }
 0x53d   :  { %v3007_v52 = vadd.f32 %v3005_v31, %v2859_v33 }
 0x53e   :  { %v3008_v35 = vadd.f32 %v3006_v54, %v2860_v41  ;;  %v3828_v54 = vld [vmem:[%s7405_s12] ss:$0 sm:$0xff] }
 0x577   :  { %v3146_v61 = vpop.f32.mrb[40].mxu1 }
 0x578   :  { %v4935_v6 = vadd.f32 %v3146_v61, %v2710_v12  ;;  %v3148_v47 = vpop.f32.mrb[41].mxu1 }
 0x579   :  { %v4936_v51 = vadd.f32 %v3148_v47, %v2714_v19 }
 0x57a   :  { %v3151_v53 = vmax.f32 %v4935_v6, 0.0 }
 0x57b   :  { %v3152_v44 = vmax.f32 %v4936_v51, 0.0 }
 0x57c   :  { %v3153_v40 = vadd.f32 %v3151_v53, %v3007_v52 }
 0x57d   :  { %v3154_v8 = vadd.f32 %v3152_v44, %v3008_v35 }
 0x598   :  { %v3292_v36 = vpop.f32.mrb[50].mxu0 }
 0x599   :  { %v4937_v57 = vadd.f32 %v3292_v36, %v2710_v12  ;;  %v3294_v58 = vpop.f32.mrb[51].mxu0 }
 0x59a   :  { %v4938_v25 = vadd.f32 %v3294_v58, %v2714_v19 }
 0x59b   :  { %v3297_v49 = vmax.f32 %v4937_v57, 0.0 }
 0x59c   :  { %v3298_v48 = vmax.f32 %v4938_v25, 0.0 }
 0x59d   :  { %v3299_v22 = vadd.f32 %v3297_v49, %v3153_v40 }
 0x59e   :  { %v3300_v37 = vadd.f32 %v3298_v48, %v3154_v8 }
 0x5d7   :  { %v3438_v11 = vpop.f32.mrb[42].mxu1 }
 0x5d8   :  { %v4939_v30 = vadd.f32 %v3438_v11, %v2710_v12  ;;  %v3440_v56 = vpop.f32.mrb[43].mxu1  ;;  %v3564_v12 = vld [vmem:[%s7404_s11 + $0x28] sm:$0xff] }
 0x5d9   :  { %v4940_v1 = vadd.f32 %v3440_v56, %v2714_v19  ;;  %v3565_v19 = vld [vmem:[%s7404_s11 + $0x30] sm:$0xff]  ;;  %v4926_v10 = vpack.c.bf16 %v3564_v12, %v3563_v59 }
 0x5da   :  { %v3443_v42 = vmax.f32 %v4939_v30, 0.0  ;;  %v4929_v17 = vpack.c.bf16 %v3566_v50, %v3565_v19 }
 0x5db   :  { %v3444_v9 = vmax.f32 %v4940_v1, 0.0 }
 0x5dc   :  { %v3445_v26 = vadd.f32 %v3443_v42, %v3299_v22 }
 0x5dd   :  { %v3446_v15 = vadd.f32 %v3444_v9, %v3300_v37 }
 0x5de   :  { %v3447_v39 = vmul.f32 0.2, %v3445_v26 }
 0x5df   :  { %v3448_v34 = vmul.f32 0.2, %v3446_v15 }
 0x5e1   :  { %3552 = vmatprep.mubr.f32.mxu0 %v3448_v34 }
 0x5e2   :  { %3553 = vmatmul.mubr.f32.vlgmr.msra.gmra.mrb[52].mxu0 %v3447_v39 }
 0x5e3   :  { %4921 = vmatpush3.bf16.msra.mxu0 %v4920_v3  ;;  %4119 = vmatprep.mubr.msk.f32.mxu0 %vm4986_vm8, %v4985_v32 }
 0x5e4   :  { %4922 = vmatprep.subr.bf16.mxu0 %v4984_v18 }
 0x5e7   :  { %4924 = vmatpush3.bf16.msra.mxu0 %v4923_v24 }
 0x5e8   :  { %4925 = vmatprep.subr.bf16.mxu0 %v4984_v18 }
 0x5eb   :  { %4927 = vmatpush3.bf16.msra.mxu0 %v4926_v10 }
 0x5ec   :  { %4928 = vmatprep.subr.bf16.mxu0 %v4984_v18  ;;  %v3648_v18 = vld [vmem:[%s7406_s13] sm:$0xff]  ;;  %s4958_s13 = scalar_lea.vmem %s3738_s23, 128 }
 0x5ed   :  { %p4959_p0 = scmp.ne.s32.totalorder %s3738_s23, %s4958_s13  ;;  %p4964_p2 = scmp.lt.s32.totalorder %s4958_s13, %s4958_s13 }
 0x5ef   :  { %4930 = vmatpush3.bf16.msra.mxu0 %v4929_v17  ;;  %p4965_p3 = por %p4964_p2, %p4963_p1 }
 0x5f0   :  { %4122 = vmatprep.subr.mxu0 %v4985_v32 }
 0x5f1   :  { %p4966_p4 = pnand %p4965_p3, %p4959_p0 }
 0x6b5   :  { %v3951_v63 = vpop.f32.mrb[52].mxu0 }
 0x6b6   :  { %v3952_v2 = vpop.f32.mrb[53].mxu0 }
 0x6b7   :  { %v3953_v33 = vadd.f32 %v3952_v2, %v3951_v63 }
 0x6b9   :  { %v3555_v31 = vadd.f32 %v3953_v33, %v3827_v23 }
 0x6bb   :  { %v3558_v41 = vmax.f32 %v3555_v31, 0.0 }
 0x6bd   :  { %4120 = vmatmul.mubr.msk.f32.vlgmr.msra.gmra.mrb[54].mxu0 %vm938_vm4, %v3558_v41 }
 0x6be   :  { %4124 = vmatprep.mubr.msk.f32.mxu0 %vm4986_vm8, %v4985_v32  ;;  %4123 = vmatpush3.msra.mxu0 %v3648_v18 }
 0x790   :  { %v3643_v52 = vpop.f32.mrb[54].mxu0 }
 0x791   :  { %v3644_v35 = vadd.f32 %v3828_v54, %v3643_v52  ;;  %v4121_v43 = vpop.f32.mrb[55].mxu0 }
 0x793   :  { %v3647_v28 = vmax.f32 %v3644_v35, 0.0 }
 0x795   :  { %4125 = vmatmul.mubr.msk.f32.vlgmr.msra.gmra.mrb[56].mxu0 %vm3656_vm9, %v3647_v28 }
 0x868   :  { %v3726_v32 = vpop.f32.mrb[56].mxu0 }
 0x869   :  { %v3727_v16 = vadd.f32 %v3830_v21, %v3726_v32  ;;  %v4126_v45 = vpop.f32.mrb[57].mxu0 }
 0x86b   :  { %3730 = vst [vmem:[#allocation2] sm:$0xff] %v3727_v16 }
 0x86c   :  { %4969 = shalt.err (!%p4966_p4)
}
 0x86d   :  { %s4970_s9 = scalar_lea.hbm %s7408_s15, 128 }
 0x86e   :  { %p4971_p5 = scmp.ne.s32.totalorder %s7408_s15, %s4970_s9  ;;  %p4974_p6 = scmp.lt.u32.totalorder %s4970_s9, %s7408_s15 }
 0x870   :  { %p4976_p7 = pnand %p4974_p6, %p4971_p5 }
 0x872   :  { %4979 = shalt.err (!%p4976_p7)
}
 0x873   :  { %3740 = dma.vmem_to_hbm [thread:$0]  %s3738_s23, 128, %s7408_s15, [#allocation3]  }
 0x874   :  { %4980 = dma.done.wait [#allocation3], 128  }
 0x875   :  { %4981 = vsyncadd [#allocation3], 4294967168 }
 0x876   :  { %3744 = vsyncpa [#allocation3], 1 }

</bundles_post_ra>
